<compile_context>
chip_gen: v5e
topology: v5e:2x2
jax: 0.10.0
libtpu: 0.0.40
codegen_flags: <defaults>
</compile_context>

<pallas_src>
import functools

import jax
import jax.numpy as jnp
from jax.experimental import pallas as pl
from jax.experimental.pallas import tpu as pltpu

EPS = 1e-5            # nn.BatchNorm2d default eps
MAX_TM = 256          # matmul tile caps (good for v6e/v7x 256-wide MXUs, fine on v5e)
MAX_TN = 256
MAX_TK = 512


def _round_up(x, m):
    return (x + m - 1) // m * m


def _pad_tile(d, unit, max_tile):
    """Return (padded_dim, tile) with tile | padded_dim, tile multiple of `unit`."""
    t = min(max_tile, _round_up(d, unit))
    return _round_up(d, t), t


# ----------------------------------------------------------------------------
# Pallas kernels
# ----------------------------------------------------------------------------
def _matmul_kernel(a_ref, b_ref, scale_ref, shift_ref, o_ref, stats_ref, acc_ref,
                   *, act):
    """Tiled matmul with fused scale/shift + activation epilogue and fused
    per-column (channel) sum / sum-of-squares partials of the raw product."""
    k = pl.program_id(2)

    @pl.when(k == 0)
    def _():
        acc_ref[...] = jnp.zeros_like(acc_ref)

    acc_ref[...] += jnp.dot(a_ref[...], b_ref[...],
                            preferred_element_type=jnp.float32)

    @pl.when(k == pl.num_programs(2) - 1)
    def _():
        acc = acc_ref[...]
        # BatchNorm batch-statistic partials of the raw (pre-epilogue) output.
        s = jnp.sum(acc, axis=0, keepdims=True)
        sq = jnp.sum(acc * acc, axis=0, keepdims=True)
        rows = jax.lax.broadcasted_iota(jnp.int32, stats_ref.shape, 0)
        stats_ref[...] = jnp.where(rows == 0, s, jnp.where(rows == 1, sq, 0.0))
        y = acc * scale_ref[...] + shift_ref[...]
        if act == "relu":
            y = jnp.maximum(y, 0.0)
        elif act == "tanh":
            y = jnp.tanh(y)
        o_ref[...] = y.astype(o_ref.dtype)


def _scale_shift_act_kernel(y_ref, scale_ref, shift_ref, o_ref, *, act):
    y = y_ref[...] * scale_ref[...] + shift_ref[...]
    if act == "relu":
        y = jnp.maximum(y, 0.0)
    elif act == "tanh":
        y = jnp.tanh(y)
    o_ref[...] = y


# ----------------------------------------------------------------------------
# Pallas wrappers
# ----------------------------------------------------------------------------
def matmul_fused(a, b, scale, shift, act="none", with_stats=False):
    """(M,K) @ (K,N) with fused per-column scale/shift + activation.

    Returns (y_padded (Mp,Np) f32, stats (2,Np) or None).  stats[0]/stats[1] hold
    the per-column sum / sum-of-squares of the raw product over all rows (zero-
    padded rows contribute nothing)."""
    M, K = a.shape
    Kb, N = b.shape
    assert K == Kb
    Mp, tm = _pad_tile(M, 8, MAX_TM)
    Kp, tk = _pad_tile(K, 128, MAX_TK)
    Np, tn = _pad_tile(N, 128, MAX_TN)
    a_p = jnp.pad(a.astype(jnp.float32), ((0, Mp - M), (0, Kp - K)))
    b_p = jnp.pad(b.astype(jnp.float32), ((0, Kp - K), (0, Np - N)))
    sc_p = jnp.pad(scale.astype(jnp.float32).reshape(1, N), ((0, 0), (0, Np - N)))
    sh_p = jnp.pad(shift.astype(jnp.float32).reshape(1, N), ((0, 0), (0, Np - N)))
    gm, gn, gk = Mp // tm, Np // tn, Kp // tk

    y_pad, stats_part = pl.pallas_call(
        functools.partial(_matmul_kernel, act=act),
        out_shape=(jax.ShapeDtypeStruct((Mp, Np), jnp.float32),
                   jax.ShapeDtypeStruct((gm * 8, Np), jnp.float32)),
        grid_spec=pltpu.PrefetchScalarGridSpec(
            num_scalar_prefetch=0,
            grid=(gm, gn, gk),
            in_specs=[
                pl.BlockSpec((tm, tk), lambda i, j, k: (i, k)),
                pl.BlockSpec((tk, tn), lambda i, j, k: (k, j)),
                pl.BlockSpec((1, tn), lambda i, j, k: (0, j)),
                pl.BlockSpec((1, tn), lambda i, j, k: (0, j)),
            ],
            out_specs=[
                pl.BlockSpec((tm, tn), lambda i, j, k: (i, j)),
                pl.BlockSpec((8, tn), lambda i, j, k: (i, j)),
            ],
            scratch_shapes=[pltpu.VMEM((tm, tn), jnp.float32)],
        ),
        compiler_params=pltpu.CompilerParams(
            dimension_semantics=("parallel", "parallel", "arbitrary"),
            vmem_limit_bytes=32 * 1024 * 1024),
    )(a_p, b_p, sc_p, sh_p)

    stats = None
    if with_stats:
        # Reduce the per-(i-block) partials (tiny) on the host side of the kernel.
        stats = stats_part.reshape(gm, 8, Np)[:, :2, :].sum(axis=0)   # (2, Np)
    return y_pad, stats


def scale_shift_act_padded(y_pad, sc_row, sh_row, act):
    """Elementwise y*scale + shift (+act) over an already channel-padded slab."""
    Mp, Np = y_pad.shape
    tm = next((t for t in (512, 256, 128, 64, 32, 16, 8) if Mp % t == 0), Mp)
    return pl.pallas_call(
        functools.partial(_scale_shift_act_kernel, act=act),
        out_shape=jax.ShapeDtypeStruct((Mp, Np), jnp.float32),
        grid_spec=pltpu.PrefetchScalarGridSpec(
            num_scalar_prefetch=0,
            grid=(Mp // tm,),
            in_specs=[pl.BlockSpec((tm, Np), lambda i: (i, 0)),
                      pl.BlockSpec((1, Np), lambda i: (0, 0)),
                      pl.BlockSpec((1, Np), lambda i: (0, 0))],
            out_specs=pl.BlockSpec((tm, Np), lambda i: (i, 0)),
        ),
        compiler_params=pltpu.CompilerParams(
            dimension_semantics=("parallel",),
            vmem_limit_bytes=32 * 1024 * 1024),
    )(y_pad, sc_row, sh_row)


# ----------------------------------------------------------------------------
# im2col glue (plain JAX, static shapes, stride 1 only)
# ----------------------------------------------------------------------------
def _im2col(x, kh, kw, pad_h, pad_w):
    """x: (N,H,W,C) NHWC -> cols: (N*Ho*Wo, kh*kw*C), feature order (kh,kw,c)."""
    N, H, W, C = x.shape
    x = jnp.pad(x, ((0, 0), pad_h, pad_w, (0, 0)))
    Hp, Wp = H + pad_h[0] + pad_h[1], W + pad_w[0] + pad_w[1]
    Ho, Wo = Hp - kh + 1, Wp - kw + 1
    slabs = [x[:, i:i + Ho, j:j + Wo, :] for i in range(kh) for j in range(kw)]
    cols = jnp.concatenate(slabs, axis=-1)
    return cols.reshape(N * Ho * Wo, kh * kw * C), (N, Ho, Wo)


# ----------------------------------------------------------------------------
# ConvDecoder layers
# ----------------------------------------------------------------------------
def dconv_bn_relu(x, w_t, gamma, beta, stride, padding):
    """ConvTranspose2d(bias=False) -> BatchNorm2d(training stats) -> ReLU.

    stride==1 : lowered to a single stride-1 conv (flipped/transposed weights).
    stride==2 : sub-pixel decomposition into 4 stride-1 2x2 convs (K shrinks 4x,
                no zero-dilated input materialized).  BN batch statistics are
                produced by the matmul epilogue of each sub-conv and combined."""
    C_in, C_out, KH, KW = w_t.shape
    ones = jnp.ones((C_out,), jnp.float32)
    zeros = jnp.zeros((C_out,), jnp.float32)

    slabs = []          # [(y_padded, (N, Ho, Wo))]
    tot_sum = jnp.zeros((C_out,), jnp.float32)
    tot_sq = jnp.zeros((C_out,), jnp.float32)
    count = 0

    if stride == 1:
        # transposed conv (stride 1) == conv with flipped/transposed kernel, pad K-1-p
        w_conv = jnp.flip(w_t, axis=(2, 3)).transpose(1, 0, 2, 3)   # (Cout,Cin,KH,KW)
        w_mat = w_conv.transpose(2, 3, 1, 0).reshape(KH * KW * C_in, C_out)
        p = KH - 1 - padding
        cols, (N, Ho, Wo) = _im2col(x, KH, KW, (p, p), (p, p))
        y_pad, st = matmul_fused(cols, w_mat, ones, zeros, act="none",
                                 with_stats=True)
        slabs.append((y_pad, (N, Ho, Wo)))
        tot_sum += st[0, :C_out]
        tot_sq += st[1, :C_out]
        count += N * Ho * Wo
    else:
        assert stride == 2 and KH == 4 and KW == 4 and padding == 1, \
            "sub-pixel path specialized to the UpConv dconv config (4,2,1)"
        # out[2t+a, 2u+b] = sum over a 2x2 window of x with per-parity taps:
        #   a==0: window rows {t-1, t}, kernel taps {3, 1}   (pad 1 on top)
        #   a==1: window rows {t, t+1}, kernel taps {2, 0}   (pad 1 on bottom)
        tap_sel = ((3, 1), (2, 0))
        pad_sel = ((1, 0), (0, 1))
        for a in range(2):
            for b in range(2):
                w_sub = w_t[:, :, jnp.array(tap_sel[a]), :]          # (Cin,Cout,2,KW)
                w_sub = w_sub[:, :, :, jnp.array(tap_sel[b])]        # (Cin,Cout,2,2)
                w_mat = w_sub.transpose(2, 3, 0, 1).reshape(4 * C_in, C_out)
                cols, (N, Ho, Wo) = _im2col(x, 2, 2, pad_sel[a], pad_sel[b])
                y_pad, st = matmul_fused(cols, w_mat, ones, zeros, act="none",
                                         with_stats=True)
                slabs.append((y_pad, (N, Ho, Wo)))
                tot_sum += st[0, :C_out]
                tot_sq += st[1, :C_out]
                count += N * Ho * Wo

    # training-mode BatchNorm2d: biased batch stats over (N,H,W) per channel
    mean = tot_sum / count
    var = tot_sq / count - mean * mean
    scale = gamma / jnp.sqrt(var + EPS)
    shift = beta - mean * scale

    outs = []
    for y_pad, (N, Ho, Wo) in slabs:
        Np = y_pad.shape[1]
        sc_row = jnp.pad(scale, (0, Np - C_out)).reshape(1, Np)
        sh_row = jnp.pad(shift, (0, Np - C_out)).reshape(1, Np)
        yn = scale_shift_act_padded(y_pad, sc_row, sh_row, "relu")
        outs.append(yn[:N * Ho * Wo, :C_out].reshape(N, Ho, Wo, C_out))

    if stride == 1:
        return outs[0]

    # interleave the 4 sub-pixel outputs: out[:, 2t+a, 2u+b] = sub[a][b][:, t, u]
    s00, s01, s10, s11 = outs
    N, Ho, Wo, C = s00.shape
    r0 = jnp.stack([s00, s01], axis=3).reshape(N, Ho, 2 * Wo, C)
    r1 = jnp.stack([s10, s11], axis=3).reshape(N, Ho, 2 * Wo, C)
    return jnp.stack([r0, r1], axis=2).reshape(N, 2 * Ho, 2 * Wo, C)


def conv2d(x, w, b, padding, act):
    """Conv2d(stride=1) with bias (fused as the matmul shift) + optional activation."""
    C_out, C_in, KH, KW = w.shape
    w_mat = w.transpose(2, 3, 1, 0).reshape(KH * KW * C_in, C_out)
    cols, (N, Ho, Wo) = _im2col(x, KH, KW, (padding, padding), (padding, padding))
    ones = jnp.ones((C_out,), jnp.float32)
    y_pad, _ = matmul_fused(cols, w_mat, ones, b, act=act)
    M = N * Ho * Wo
    return y_pad[:M, :C_out].reshape(N, Ho, Wo, C_out)


def conv_decoder_forward(z_nchw, params, cfg):
    """cfg: static tuple of (stride, padding) per dconv layer (kept out of the
    traced pytree so `if stride == ...` stays a Python bool)."""
    x = jnp.transpose(z_nchw, (0, 2, 3, 1))  # NCHW -> NHWC
    for layer, (stride, padding) in zip(params["dconv"], cfg):
        x = dconv_bn_relu(x, layer["w"], layer["gamma"], layer["beta"],
                          stride, padding)
    # nn.Upsample(scale_factor=2, mode='nearest')
    x = jnp.repeat(jnp.repeat(x, 2, axis=1), 2, axis=2)
    # Conv2d(d,d,5,1,2) ; Conv2d(d,d,5,1,2) ; Conv2d(d,out,5,1,2) ; Tanh
    w, b = params["convs"][0]
    x = conv2d(x, w, b, padding=2, act="none")
    w, b = params["convs"][1]
    x = conv2d(x, w, b, padding=2, act="none")
    w, b = params["convs"][2]
    x = conv2d(x, w, b, padding=2, act="tanh")
    return jnp.transpose(x, (0, 3, 1, 2))  # back to NCHW


# ----------------------------------------------------------------------------
# Deterministic parameter init (mirrors ConvDecoder.__init__ shapes).
# Returns (params_pytree_of_arrays, static_cfg) so stride/padding never get traced.
# ----------------------------------------------------------------------------
def init_params(key, input_dim=128, output_channels=3, dim=32, n_upsamplings=4):
    keys = jax.random.split(key, 2 * n_upsamplings + 8)
    ki = iter(keys)
    dconv, cfg = [], []
    d = min(dim * 2 ** (n_upsamplings - 1), dim * 16)
    w = 0.05 * jax.random.normal(next(ki), (input_dim, d, 4, 4), jnp.float32)
    dconv.append(dict(w=w, gamma=jnp.ones((d,), jnp.float32),
                      beta=jnp.zeros((d,), jnp.float32)))
    cfg.append((1, 0))
    for i in range(n_upsamplings - 1):
        d_last = d
        d = min(dim * 2 ** (n_upsamplings - 2 - i), dim * 16)
        w = 0.05 * jax.random.normal(next(ki), (d_last, d, 4, 4), jnp.float32)
        dconv.append(dict(w=w, gamma=jnp.ones((d,), jnp.float32),
                          beta=jnp.zeros((d,), jnp.float32)))
        cfg.append((2, 1))
    convs = []
    for cin, cout in [(d, d), (d, d), (d, output_channels)]:
        cw = 0.05 * jax.random.normal(next(ki), (cout, cin, 5, 5), jnp.float32)
        cb = 0.01 * jax.random.normal(next(ki), (cout,), jnp.float32)
        convs.append((cw, cb))
    return dict(dconv=dconv, convs=convs), tuple(cfg)


# ----------------------------------------------------------------------------
# Pure-JAX reference (XLA convs) for numerical validation
# ----------------------------------------------------------------------------
def reference_forward(z_nchw, params, cfg):
    x = jnp.transpose(z_nchw, (0, 2, 3, 1))
    for layer, (s, p) in zip(params["dconv"], cfg):
        w_t = layer["w"]
        K = w_t.shape[2]
        w_hwio = jnp.flip(w_t, (2, 3)).transpose(2, 3, 0, 1)
        x = jax.lax.conv_general_dilated(
            x, w_hwio, window_strides=(1, 1),
            padding=[(K - 1 - p, K - 1 - p)] * 2, lhs_dilation=(s, s),
            dimension_numbers=("NHWC", "HWIO", "NHWC"))
        mean = jnp.mean(x, axis=(0, 1, 2))
        var = jnp.mean((x - mean) ** 2, axis=(0, 1, 2))
        x = (x - mean) / jnp.sqrt(var + EPS) * layer["gamma"] + layer["beta"]
        x = jnp.maximum(x, 0.0)
    x = jnp.repeat(jnp.repeat(x, 2, axis=1), 2, axis=2)
    for w, b in params["convs"]:
        w_hwio = w.transpose(2, 3, 1, 0)
        x = jax.lax.conv_general_dilated(
            x, w_hwio, (1, 1), [(2, 2), (2, 2)],
            dimension_numbers=("NHWC", "HWIO", "NHWC")) + b
    x = jnp.tanh(x)
    return jnp.transpose(x, (0, 3, 1, 2))


if __name__ == "__main__":
    key = jax.random.PRNGKey(0)
    k_param, k_z = jax.random.split(key)
    # Small but fully representative config: 3 upsampling dconv layers, 2x upsample,
    # three 5x5 convs + tanh.  Output: (2, 3, 32, 32).
    params, cfg = init_params(k_param, input_dim=64, output_channels=3,
                              dim=16, n_upsamplings=3)
    z = jax.random.normal(k_z, (2, 64, 1, 1), jnp.float32)   # (N, input_dim, 1, 1)

    fwd = jax.jit(functools.partial(conv_decoder_forward, cfg=cfg))
    out = jax.block_until_ready(fwd(z, params))
    assert out.shape == (2, 3, 32, 32), out.shape
    assert bool(jnp.all(jnp.isfinite(out)))

    ref = jax.block_until_ready(reference_forward(z, params, cfg))
    max_err = float(jnp.max(jnp.abs(out - ref)))
    assert bool(jnp.allclose(out, ref, atol=1e-3, rtol=1e-3)), max_err

    print("KERNEL_OK")
</pallas_src>

<mosaic_0001>
module attributes {stable_mosaic.version = 11 : i64} {
  func.func @_matmul_kernel(%arg0: i32, %arg1: i32, %arg2: i32, %arg3: memref<32x512xf32, #tpu.memory_space<vmem>>, %arg4: memref<512x128xf32, #tpu.memory_space<vmem>>, %arg5: memref<1x128xf32, #tpu.memory_space<vmem>>, %arg6: memref<1x128xf32, #tpu.memory_space<vmem>>, %arg7: memref<32x128xf32, #tpu.memory_space<vmem>>, %arg8: memref<8x128xf32, #tpu.memory_space<vmem>>, %arg9: memref<32x128xf32, #tpu.memory_space<vmem>>) attributes {dimension_semantics = [#tpu.dimension_semantics<parallel>, #tpu.dimension_semantics<parallel>, #tpu.dimension_semantics<arbitrary>], iteration_bounds = array<i64: 1, 1, 2>, scalar_prefetch = 0 : i64, scratch_operands = 1 : i64, tpu.core_type = #tpu.core_type<tc>, window_params = [{transform_indices = @transform_0, window_bounds = array<i64: 32, 512>}, {transform_indices = @transform_1, window_bounds = array<i64: 512, 128>}, {transform_indices = @transform_2, window_bounds = array<i64: 1, 128>}, {transform_indices = @transform_3, window_bounds = array<i64: 1, 128>}, {transform_indices = @transform_4, window_bounds = array<i64: 32, 128>}, {transform_indices = @transform_5, window_bounds = array<i64: 8, 128>}]} {
    %c0_i32 = arith.constant 0 : i32
    %0 = arith.cmpi eq, %arg2, %c0_i32 : i32
    %1 = arith.extui %0 : i1 to i32
    %c0_i32_0 = arith.constant 0 : i32
    %2 = arith.cmpi ne, %1, %c0_i32_0 : i32
    scf.if %2 {
      %cst_9 = arith.constant 0.000000e+00 : f32
      %12 = vector.broadcast %cst_9 : f32 to vector<32x128xf32>
      %c0_10 = arith.constant 0 : index
      %c0_11 = arith.constant 0 : index
      %13 = vector.load %arg9[%c0_10, %c0_11] : memref<32x128xf32, #tpu.memory_space<vmem>>, vector<32x128xf32>
      tpu.vector_store %arg9[%c0_10, %c0_11], %12 {strides = array<i32>} : memref<32x128xf32, #tpu.memory_space<vmem>>, vector<32x128xf32>,
    } else {
    }
    %c0 = arith.constant 0 : index
    %c0_1 = arith.constant 0 : index
    %3 = vector.load %arg9[%c0, %c0_1] : memref<32x128xf32, #tpu.memory_space<vmem>>, vector<32x128xf32>
    %c0_2 = arith.constant 0 : index
    %c0_3 = arith.constant 0 : index
    %4 = vector.load %arg3[%c0_2, %c0_3] : memref<32x512xf32, #tpu.memory_space<vmem>>, vector<32x512xf32>
    %c0_4 = arith.constant 0 : index
    %c0_5 = arith.constant 0 : index
    %5 = vector.load %arg4[%c0_4, %c0_5] : memref<512x128xf32, #tpu.memory_space<vmem>>, vector<512x128xf32>
    %cst = arith.constant dense<0.000000e+00> : vector<32x128xf32>
    %6 = tpu.matmul %4, %5, %cst {dimension_numbers = #tpu.dot_dimension_numbers<[1], [0], [0], [1], [0, 0, 1, 1], [], []>} : vector<32x512xf32>, vector<512x128xf32>, vector<32x128xf32> -> vector<32x128xf32>
    %7 = arith.addf %3, %6 : vector<32x128xf32>
    %c0_6 = arith.constant 0 : index
    %c0_7 = arith.constant 0 : index
    %8 = vector.load %arg9[%c0_6, %c0_7] : memref<32x128xf32, #tpu.memory_space<vmem>>, vector<32x128xf32>
    tpu.vector_store %arg9[%c0_6, %c0_7], %7 {strides = array<i32>} : memref<32x128xf32, #tpu.memory_space<vmem>>, vector<32x128xf32>,
    %c1_i32 = arith.constant 1 : i32
    %9 = arith.cmpi eq, %arg2, %c1_i32 : i32
    %10 = arith.extui %9 : i1 to i32
    %c0_i32_8 = arith.constant 0 : i32
    %11 = arith.cmpi ne, %10, %c0_i32_8 : i32
    scf.if %11 {
      %c0_9 = arith.constant 0 : index
      %c0_10 = arith.constant 0 : index
      %12 = vector.load %arg9[%c0_9, %c0_10] : memref<32x128xf32, #tpu.memory_space<vmem>>, vector<32x128xf32>
      %cst_11 = arith.constant dense<0.000000e+00> : vector<128xf32>
      %13 = vector.multi_reduction <add>, %12, %cst_11 [0] : vector<32x128xf32> to vector<128xf32>
      %14 = vector.shape_cast %13 : vector<128xf32> to vector<1x128xf32>
      %15 = arith.mulf %12, %12 : vector<32x128xf32>
      %cst_12 = arith.constant dense<0.000000e+00> : vector<128xf32>
      %16 = vector.multi_reduction <add>, %15, %cst_12 [0] : vector<32x128xf32> to vector<128xf32>
      %17 = vector.shape_cast %16 : vector<128xf32> to vector<1x128xf32>
      %18 = tpu.iota {dimensions = array<i32: 0>} : vector<8x128xi32>
      %c0_i32_13 = arith.constant 0 : i32
      %19 = vector.broadcast %c0_i32_13 : i32 to vector<8x128xi32>
      %20 = arith.cmpi eq, %18, %19 : vector<8x128xi32>
      %c1_i32_14 = arith.constant 1 : i32
      %21 = vector.broadcast %c1_i32_14 : i32 to vector<8x128xi32>
      %22 = arith.cmpi eq, %18, %21 : vector<8x128xi32>
      %cst_15 = arith.constant 0.000000e+00 : f32
      %23 = vector.shape_cast %17 : vector<1x128xf32> to vector<1x128xf32>
      %24 = vector.broadcast %23 : vector<1x128xf32> to vector<8x128xf32>
      %25 = vector.broadcast %cst_15 : f32 to vector<8x128xf32>
      %26 = arith.select %22, %24, %25 : vector<8x128xi1>, vector<8x128xf32>
      %27 = vector.shape_cast %14 : vector<1x128xf32> to vector<1x128xf32>
      %28 = vector.broadcast %27 : vector<1x128xf32> to vector<8x128xf32>
      %29 = arith.select %20, %28, %26 : vector<8x128xi1>, vector<8x128xf32>
      %c0_16 = arith.constant 0 : index
      %c0_17 = arith.constant 0 : index
      %30 = vector.load %arg8[%c0_16, %c0_17] : memref<8x128xf32, #tpu.memory_space<vmem>>, vector<8x128xf32>
      tpu.vector_store %arg8[%c0_16, %c0_17], %29 {strides = array<i32>} : memref<8x128xf32, #tpu.memory_space<vmem>>, vector<8x128xf32>,
      %c0_18 = arith.constant 0 : index
      %c0_19 = arith.constant 0 : index
      %31 = vector.load %arg5[%c0_18, %c0_19] : memref<1x128xf32, #tpu.memory_space<vmem>>, vector<1x128xf32>
      %32 = vector.broadcast %31 : vector<1x128xf32> to vector<32x128xf32>
      %33 = arith.mulf %12, %32 : vector<32x128xf32>
      %c0_20 = arith.constant 0 : index
      %c0_21 = arith.constant 0 : index
      %34 = vector.load %arg6[%c0_20, %c0_21] : memref<1x128xf32, #tpu.memory_space<vmem>>, vector<1x128xf32>
      %35 = vector.broadcast %34 : vector<1x128xf32> to vector<32x128xf32>
      %36 = arith.addf %33, %35 : vector<32x128xf32>
      %c0_22 = arith.constant 0 : index
      %c0_23 = arith.constant 0 : index
      %37 = vector.load %arg7[%c0_22, %c0_23] : memref<32x128xf32, #tpu.memory_space<vmem>>, vector<32x128xf32>
      tpu.vector_store %arg7[%c0_22, %c0_23], %36 {strides = array<i32>} : memref<32x128xf32, #tpu.memory_space<vmem>>, vector<32x128xf32>,
    } else {
    }
    return
  }
  func.func @transform_0(%arg0: i32, %arg1: i32, %arg2: i32) -> (i32, i32) {
    %c0_i32 = arith.constant 0 : i32
    return %arg0, %arg2 : i32, i32
  }
  func.func @transform_1(%arg0: i32, %arg1: i32, %arg2: i32) -> (i32, i32) {
    %c0_i32 = arith.constant 0 : i32
    return %arg2, %arg1 : i32, i32
  }
  func.func @transform_2(%arg0: i32, %arg1: i32, %arg2: i32) -> (i32, i32) {
    %c0_i32 = arith.constant 0 : i32
    %c0_i32_0 = arith.constant 0 : i32
    return %c0_i32, %arg1 : i32, i32
  }
  func.func @transform_3(%arg0: i32, %arg1: i32, %arg2: i32) -> (i32, i32) {
    %c0_i32 = arith.constant 0 : i32
    %c0_i32_0 = arith.constant 0 : i32
    return %c0_i32, %arg1 : i32, i32
  }
  func.func @transform_4(%arg0: i32, %arg1: i32, %arg2: i32) -> (i32, i32) {
    %c0_i32 = arith.constant 0 : i32
    return %arg0, %arg1 : i32, i32
  }
  func.func @transform_5(%arg0: i32, %arg1: i32, %arg2: i32) -> (i32, i32) {
    %c0_i32 = arith.constant 0 : i32
    return %arg0, %arg1 : i32, i32
  }
}

module attributes {stable_mosaic.version = 11 : i64} {
  func.func @_scale_shift_act_kernel(%arg0: i32, %arg1: memref<32x128xf32, #tpu.memory_space<vmem>>, %arg2: memref<1x128xf32, #tpu.memory_space<vmem>>, %arg3: memref<1x128xf32, #tpu.memory_space<vmem>>, %arg4: memref<32x128xf32, #tpu.memory_space<vmem>>) attributes {dimension_semantics = [#tpu.dimension_semantics<parallel>], iteration_bounds = array<i64: 1>, scalar_prefetch = 0 : i64, scratch_operands = 0 : i64, tpu.core_type = #tpu.core_type<tc>, window_params = [{transform_indices = @transform_0, window_bounds = array<i64: 32, 128>}, {pipeline_mode = #tpu.pipeline_mode<synchronous>, transform_indices = @transform_1, window_bounds = array<i64: 1, 128>}, {pipeline_mode = #tpu.pipeline_mode<synchronous>, transform_indices = @transform_2, window_bounds = array<i64: 1, 128>}, {transform_indices = @transform_3, window_bounds = array<i64: 32, 128>}]} {
    %c0 = arith.constant 0 : index
    %c0_0 = arith.constant 0 : index
    %0 = vector.load %arg1[%c0, %c0_0] : memref<32x128xf32, #tpu.memory_space<vmem>>, vector<32x128xf32>
    %c0_1 = arith.constant 0 : index
    %c0_2 = arith.constant 0 : index
    %1 = vector.load %arg2[%c0_1, %c0_2] : memref<1x128xf32, #tpu.memory_space<vmem>>, vector<1x128xf32>
    %2 = vector.broadcast %1 : vector<1x128xf32> to vector<32x128xf32>
    %3 = arith.mulf %0, %2 : vector<32x128xf32>
    %c0_3 = arith.constant 0 : index
    %c0_4 = arith.constant 0 : index
    %4 = vector.load %arg3[%c0_3, %c0_4] : memref<1x128xf32, #tpu.memory_space<vmem>>, vector<1x128xf32>
    %5 = vector.broadcast %4 : vector<1x128xf32> to vector<32x128xf32>
    %6 = arith.addf %3, %5 : vector<32x128xf32>
    %cst = arith.constant 0.000000e+00 : f32
    %7 = vector.broadcast %cst : f32 to vector<32x128xf32>
    %8 = arith.maximumf %6, %7 : vector<32x128xf32>
    %c0_5 = arith.constant 0 : index
    %c0_6 = arith.constant 0 : index
    %9 = vector.load %arg4[%c0_5, %c0_6] : memref<32x128xf32, #tpu.memory_space<vmem>>, vector<32x128xf32>
    tpu.vector_store %arg4[%c0_5, %c0_6], %8 {strides = array<i32>} : memref<32x128xf32, #tpu.memory_space<vmem>>, vector<32x128xf32>,
    return
  }
  func.func @transform_0(%arg0: i32) -> (i32, i32) {
    %c0_i32 = arith.constant 0 : i32
    %c0_i32_0 = arith.constant 0 : i32
    return %arg0, %c0_i32 : i32, i32
  }
  func.func @transform_1(%arg0: i32) -> (i32, i32) {
    %c0_i32 = arith.constant 0 : i32
    %c0_i32_0 = arith.constant 0 : i32
    %c0_i32_1 = arith.constant 0 : i32
    return %c0_i32, %c0_i32_0 : i32, i32
  }
  func.func @transform_2(%arg0: i32) -> (i32, i32) {
    %c0_i32 = arith.constant 0 : i32
    %c0_i32_0 = arith.constant 0 : i32
    %c0_i32_1 = arith.constant 0 : i32
    return %c0_i32, %c0_i32_0 : i32, i32
  }
  func.func @transform_3(%arg0: i32) -> (i32, i32) {
    %c0_i32 = arith.constant 0 : i32
    %c0_i32_0 = arith.constant 0 : i32
    return %arg0, %c0_i32 : i32, i32
  }
}

module attributes {stable_mosaic.version = 11 : i64} {
  func.func @_matmul_kernel(%arg0: i32, %arg1: i32, %arg2: i32, %arg3: memref<32x256xf32, #tpu.memory_space<vmem>>, %arg4: memref<256x128xf32, #tpu.memory_space<vmem>>, %arg5: memref<1x128xf32, #tpu.memory_space<vmem>>, %arg6: memref<1x128xf32, #tpu.memory_space<vmem>>, %arg7: memref<32x128xf32, #tpu.memory_space<vmem>>, %arg8: memref<8x128xf32, #tpu.memory_space<vmem>>, %arg9: memref<32x128xf32, #tpu.memory_space<vmem>>) attributes {dimension_semantics = [#tpu.dimension_semantics<parallel>, #tpu.dimension_semantics<parallel>, #tpu.dimension_semantics<arbitrary>], iteration_bounds = array<i64: 1, 1, 1>, scalar_prefetch = 0 : i64, scratch_operands = 1 : i64, tpu.core_type = #tpu.core_type<tc>, window_params = [{transform_indices = @transform_0, window_bounds = array<i64: 32, 256>}, {transform_indices = @transform_1, window_bounds = array<i64: 256, 128>}, {transform_indices = @transform_2, window_bounds = array<i64: 1, 128>}, {transform_indices = @transform_3, window_bounds = array<i64: 1, 128>}, {transform_indices = @transform_4, window_bounds = array<i64: 32, 128>}, {transform_indices = @transform_5, window_bounds = array<i64: 8, 128>}]} {
    %c0_i32 = arith.constant 0 : i32
    %0 = arith.cmpi eq, %arg2, %c0_i32 : i32
    %1 = arith.extui %0 : i1 to i32
    %c0_i32_0 = arith.constant 0 : i32
    %2 = arith.cmpi ne, %1, %c0_i32_0 : i32
    scf.if %2 {
      %cst_10 = arith.constant 0.000000e+00 : f32
      %12 = vector.broadcast %cst_10 : f32 to vector<32x128xf32>
      %c0_11 = arith.constant 0 : index
      %c0_12 = arith.constant 0 : index
      %13 = vector.load %arg9[%c0_11, %c0_12] : memref<32x128xf32, #tpu.memory_space<vmem>>, vector<32x128xf32>
      tpu.vector_store %arg9[%c0_11, %c0_12], %12 {strides = array<i32>} : memref<32x128xf32, #tpu.memory_space<vmem>>, vector<32x128xf32>,
    } else {
    }
    %c0 = arith.constant 0 : index
    %c0_1 = arith.constant 0 : index
    %3 = vector.load %arg9[%c0, %c0_1] : memref<32x128xf32, #tpu.memory_space<vmem>>, vector<32x128xf32>
    %c0_2 = arith.constant 0 : index
    %c0_3 = arith.constant 0 : index
    %4 = vector.load %arg3[%c0_2, %c0_3] : memref<32x256xf32, #tpu.memory_space<vmem>>, vector<32x256xf32>
    %c0_4 = arith.constant 0 : index
    %c0_5 = arith.constant 0 : index
    %5 = vector.load %arg4[%c0_4, %c0_5] : memref<256x128xf32, #tpu.memory_space<vmem>>, vector<256x128xf32>
    %cst = arith.constant dense<0.000000e+00> : vector<32x128xf32>
    %6 = tpu.matmul %4, %5, %cst {dimension_numbers = #tpu.dot_dimension_numbers<[1], [0], [0], [1], [0, 0, 1, 1], [], []>} : vector<32x256xf32>, vector<256x128xf32>, vector<32x128xf32> -> vector<32x128xf32>
    %7 = arith.addf %3, %6 : vector<32x128xf32>
    %c0_6 = arith.constant 0 : index
    %c0_7 = arith.constant 0 : index
    %8 = vector.load %arg9[%c0_6, %c0_7] : memref<32x128xf32, #tpu.memory_space<vmem>>, vector<32x128xf32>
    tpu.vector_store %arg9[%c0_6, %c0_7], %7 {strides = array<i32>} : memref<32x128xf32, #tpu.memory_space<vmem>>, vector<32x128xf32>,
    %c0_i32_8 = arith.constant 0 : i32
    %9 = arith.cmpi eq, %arg2, %c0_i32_8 : i32
    %10 = arith.extui %9 : i1 to i32
    %c0_i32_9 = arith.constant 0 : i32
    %11 = arith.cmpi ne, %10, %c0_i32_9 : i32
    scf.if %11 {
      %c0_10 = arith.constant 0 : index
      %c0_11 = arith.constant 0 : index
      %12 = vector.load %arg9[%c0_10, %c0_11] : memref<32x128xf32, #tpu.memory_space<vmem>>, vector<32x128xf32>
      %cst_12 = arith.constant dense<0.000000e+00> : vector<128xf32>
      %13 = vector.multi_reduction <add>, %12, %cst_12 [0] : vector<32x128xf32> to vector<128xf32>
      %14 = vector.shape_cast %13 : vector<128xf32> to vector<1x128xf32>
      %15 = arith.mulf %12, %12 : vector<32x128xf32>
      %cst_13 = arith.constant dense<0.000000e+00> : vector<128xf32>
      %16 = vector.multi_reduction <add>, %15, %cst_13 [0] : vector<32x128xf32> to vector<128xf32>
      %17 = vector.shape_cast %16 : vector<128xf32> to vector<1x128xf32>
      %18 = tpu.iota {dimensions = array<i32: 0>} : vector<8x128xi32>
      %c0_i32_14 = arith.constant 0 : i32
      %19 = vector.broadcast %c0_i32_14 : i32 to vector<8x128xi32>
      %20 = arith.cmpi eq, %18, %19 : vector<8x128xi32>
      %c1_i32 = arith.constant 1 : i32
      %21 = vector.broadcast %c1_i32 : i32 to vector<8x128xi32>
      %22 = arith.cmpi eq, %18, %21 : vector<8x128xi32>
      %cst_15 = arith.constant 0.000000e+00 : f32
      %23 = vector.shape_cast %17 : vector<1x128xf32> to vector<1x128xf32>
      %24 = vector.broadcast %23 : vector<1x128xf32> to vector<8x128xf32>
      %25 = vector.broadcast %cst_15 : f32 to vector<8x128xf32>
      %26 = arith.select %22, %24, %25 : vector<8x128xi1>, vector<8x128xf32>
      %27 = vector.shape_cast %14 : vector<1x128xf32> to vector<1x128xf32>
      %28 = vector.broadcast %27 : vector<1x128xf32> to vector<8x128xf32>
      %29 = arith.select %20, %28, %26 : vector<8x128xi1>, vector<8x128xf32>
      %c0_16 = arith.constant 0 : index
      %c0_17 = arith.constant 0 : index
      %30 = vector.load %arg8[%c0_16, %c0_17] : memref<8x128xf32, #tpu.memory_space<vmem>>, vector<8x128xf32>
      tpu.vector_store %arg8[%c0_16, %c0_17], %29 {strides = array<i32>} : memref<8x128xf32, #tpu.memory_space<vmem>>, vector<8x128xf32>,
      %c0_18 = arith.constant 0 : index
      %c0_19 = arith.constant 0 : index
      %31 = vector.load %arg5[%c0_18, %c0_19] : memref<1x128xf32, #tpu.memory_space<vmem>>, vector<1x128xf32>
      %32 = vector.broadcast %31 : vector<1x128xf32> to vector<32x128xf32>
      %33 = arith.mulf %12, %32 : vector<32x128xf32>
      %c0_20 = arith.constant 0 : index
      %c0_21 = arith.constant 0 : index
      %34 = vector.load %arg6[%c0_20, %c0_21] : memref<1x128xf32, #tpu.memory_space<vmem>>, vector<1x128xf32>
      %35 = vector.broadcast %34 : vector<1x128xf32> to vector<32x128xf32>
      %36 = arith.addf %33, %35 : vector<32x128xf32>
      %c0_22 = arith.constant 0 : index
      %c0_23 = arith.constant 0 : index
      %37 = vector.load %arg7[%c0_22, %c0_23] : memref<32x128xf32, #tpu.memory_space<vmem>>, vector<32x128xf32>
      tpu.vector_store %arg7[%c0_22, %c0_23], %36 {strides = array<i32>} : memref<32x128xf32, #tpu.memory_space<vmem>>, vector<32x128xf32>,
    } else {
    }
    return
  }
  func.func @transform_0(%arg0: i32, %arg1: i32, %arg2: i32) -> (i32, i32) {
    %c0_i32 = arith.constant 0 : i32
    return %arg0, %arg2 : i32, i32
  }
  func.func @transform_1(%arg0: i32, %arg1: i32, %arg2: i32) -> (i32, i32) {
    %c0_i32 = arith.constant 0 : i32
    return %arg2, %arg1 : i32, i32
  }
  func.func @transform_2(%arg0: i32, %arg1: i32, %arg2: i32) -> (i32, i32) {
    %c0_i32 = arith.constant 0 : i32
    %c0_i32_0 = arith.constant 0 : i32
    return %c0_i32, %arg1 : i32, i32
  }
  func.func @transform_3(%arg0: i32, %arg1: i32, %arg2: i32) -> (i32, i32) {
    %c0_i32 = arith.constant 0 : i32
    %c0_i32_0 = arith.constant 0 : i32
    return %c0_i32, %arg1 : i32, i32
  }
  func.func @transform_4(%arg0: i32, %arg1: i32, %arg2: i32) -> (i32, i32) {
    %c0_i32 = arith.constant 0 : i32
    return %arg0, %arg1 : i32, i32
  }
  func.func @transform_5(%arg0: i32, %arg1: i32, %arg2: i32) -> (i32, i32) {
    %c0_i32 = arith.constant 0 : i32
    return %arg0, %arg1 : i32, i32
  }
}

module attributes {stable_mosaic.version = 11 : i64} {
  func.func @_scale_shift_act_kernel(%arg0: i32, %arg1: memref<128x128xf32, #tpu.memory_space<vmem>>, %arg2: memref<1x128xf32, #tpu.memory_space<vmem>>, %arg3: memref<1x128xf32, #tpu.memory_space<vmem>>, %arg4: memref<128x128xf32, #tpu.memory_space<vmem>>) attributes {dimension_semantics = [#tpu.dimension_semantics<parallel>], iteration_bounds = array<i64: 1>, scalar_prefetch = 0 : i64, scratch_operands = 0 : i64, tpu.core_type = #tpu.core_type<tc>, window_params = [{transform_indices = @transform_0, window_bounds = array<i64: 128, 128>}, {pipeline_mode = #tpu.pipeline_mode<synchronous>, transform_indices = @transform_1, window_bounds = array<i64: 1, 128>}, {pipeline_mode = #tpu.pipeline_mode<synchronous>, transform_indices = @transform_2, window_bounds = array<i64: 1, 128>}, {transform_indices = @transform_3, window_bounds = array<i64: 128, 128>}]} {
    %c0 = arith.constant 0 : index
    %c0_0 = arith.constant 0 : index
    %0 = vector.load %arg1[%c0, %c0_0] : memref<128x128xf32, #tpu.memory_space<vmem>>, vector<128x128xf32>
    %c0_1 = arith.constant 0 : index
    %c0_2 = arith.constant 0 : index
    %1 = vector.load %arg2[%c0_1, %c0_2] : memref<1x128xf32, #tpu.memory_space<vmem>>, vector<1x128xf32>
    %2 = vector.broadcast %1 : vector<1x128xf32> to vector<128x128xf32>
    %3 = arith.mulf %0, %2 : vector<128x128xf32>
    %c0_3 = arith.constant 0 : index
    %c0_4 = arith.constant 0 : index
    %4 = vector.load %arg3[%c0_3, %c0_4] : memref<1x128xf32, #tpu.memory_space<vmem>>, vector<1x128xf32>
    %5 = vector.broadcast %4 : vector<1x128xf32> to vector<128x128xf32>
    %6 = arith.addf %3, %5 : vector<128x128xf32>
    %cst = arith.constant 0.000000e+00 : f32
    %7 = vector.broadcast %cst : f32 to vector<128x128xf32>
    %8 = arith.maximumf %6, %7 : vector<128x128xf32>
    %c0_5 = arith.constant 0 : index
    %c0_6 = arith.constant 0 : index
    %9 = vector.load %arg4[%c0_5, %c0_6] : memref<128x128xf32, #tpu.memory_space<vmem>>, vector<128x128xf32>
    tpu.vector_store %arg4[%c0_5, %c0_6], %8 {strides = array<i32>} : memref<128x128xf32, #tpu.memory_space<vmem>>, vector<128x128xf32>,
    return
  }
  func.func @transform_0(%arg0: i32) -> (i32, i32) {
    %c0_i32 = arith.constant 0 : i32
    %c0_i32_0 = arith.constant 0 : i32
    return %arg0, %c0_i32 : i32, i32
  }
  func.func @transform_1(%arg0: i32) -> (i32, i32) {
    %c0_i32 = arith.constant 0 : i32
    %c0_i32_0 = arith.constant 0 : i32
    %c0_i32_1 = arith.constant 0 : i32
    return %c0_i32, %c0_i32_0 : i32, i32
  }
  func.func @transform_2(%arg0: i32) -> (i32, i32) {
    %c0_i32 = arith.constant 0 : i32
    %c0_i32_0 = arith.constant 0 : i32
    %c0_i32_1 = arith.constant 0 : i32
    return %c0_i32, %c0_i32_0 : i32, i32
  }
  func.func @transform_3(%arg0: i32) -> (i32, i32) {
    %c0_i32 = arith.constant 0 : i32
    %c0_i32_0 = arith.constant 0 : i32
    return %arg0, %c0_i32 : i32, i32
  }
}

module attributes {stable_mosaic.version = 11 : i64} {
  func.func @_matmul_kernel(%arg0: i32, %arg1: i32, %arg2: i32, %arg3: memref<128x128xf32, #tpu.memory_space<vmem>>, %arg4: memref<128x128xf32, #tpu.memory_space<vmem>>, %arg5: memref<1x128xf32, #tpu.memory_space<vmem>>, %arg6: memref<1x128xf32, #tpu.memory_space<vmem>>, %arg7: memref<128x128xf32, #tpu.memory_space<vmem>>, %arg8: memref<8x128xf32, #tpu.memory_space<vmem>>, %arg9: memref<128x128xf32, #tpu.memory_space<vmem>>) attributes {dimension_semantics = [#tpu.dimension_semantics<parallel>, #tpu.dimension_semantics<parallel>, #tpu.dimension_semantics<arbitrary>], iteration_bounds = array<i64: 1, 1, 1>, scalar_prefetch = 0 : i64, scratch_operands = 1 : i64, tpu.core_type = #tpu.core_type<tc>, window_params = [{transform_indices = @transform_0, window_bounds = array<i64: 128, 128>}, {transform_indices = @transform_1, window_bounds = array<i64: 128, 128>}, {transform_indices = @transform_2, window_bounds = array<i64: 1, 128>}, {transform_indices = @transform_3, window_bounds = array<i64: 1, 128>}, {transform_indices = @transform_4, window_bounds = array<i64: 128, 128>}, {transform_indices = @transform_5, window_bounds = array<i64: 8, 128>}]} {
    %c0_i32 = arith.constant 0 : i32
    %0 = arith.cmpi eq, %arg2, %c0_i32 : i32
    %1 = arith.extui %0 : i1 to i32
    %c0_i32_0 = arith.constant 0 : i32
    %2 = arith.cmpi ne, %1, %c0_i32_0 : i32
    scf.if %2 {
      %cst_10 = arith.constant 0.000000e+00 : f32
      %12 = vector.broadcast %cst_10 : f32 to vector<128x128xf32>
      %c0_11 = arith.constant 0 : index
      %c0_12 = arith.constant 0 : index
      %13 = vector.load %arg9[%c0_11, %c0_12] : memref<128x128xf32, #tpu.memory_space<vmem>>, vector<128x128xf32>
      tpu.vector_store %arg9[%c0_11, %c0_12], %12 {strides = array<i32>} : memref<128x128xf32, #tpu.memory_space<vmem>>, vector<128x128xf32>,
    } else {
    }
    %c0 = arith.constant 0 : index
    %c0_1 = arith.constant 0 : index
    %3 = vector.load %arg9[%c0, %c0_1] : memref<128x128xf32, #tpu.memory_space<vmem>>, vector<128x128xf32>
    %c0_2 = arith.constant 0 : index
    %c0_3 = arith.constant 0 : index
    %4 = vector.load %arg3[%c0_2, %c0_3] : memref<128x128xf32, #tpu.memory_space<vmem>>, vector<128x128xf32>
    %c0_4 = arith.constant 0 : index
    %c0_5 = arith.constant 0 : index
    %5 = vector.load %arg4[%c0_4, %c0_5] : memref<128x128xf32, #tpu.memory_space<vmem>>, vector<128x128xf32>
    %cst = arith.constant dense<0.000000e+00> : vector<128x128xf32>
    %6 = tpu.matmul %4, %5, %cst {dimension_numbers = #tpu.dot_dimension_numbers<[1], [0], [0], [1], [0, 0, 1, 1], [], []>} : vector<128x128xf32>, vector<128x128xf32>, vector<128x128xf32> -> vector<128x128xf32>
    %7 = arith.addf %3, %6 : vector<128x128xf32>
    %c0_6 = arith.constant 0 : index
    %c0_7 = arith.constant 0 : index
    %8 = vector.load %arg9[%c0_6, %c0_7] : memref<128x128xf32, #tpu.memory_space<vmem>>, vector<128x128xf32>
    tpu.vector_store %arg9[%c0_6, %c0_7], %7 {strides = array<i32>} : memref<128x128xf32, #tpu.memory_space<vmem>>, vector<128x128xf32>,
    %c0_i32_8 = arith.constant 0 : i32
    %9 = arith.cmpi eq, %arg2, %c0_i32_8 : i32
    %10 = arith.extui %9 : i1 to i32
    %c0_i32_9 = arith.constant 0 : i32
    %11 = arith.cmpi ne, %10, %c0_i32_9 : i32
    scf.if %11 {
      %c0_10 = arith.constant 0 : index
      %c0_11 = arith.constant 0 : index
      %12 = vector.load %arg9[%c0_10, %c0_11] : memref<128x128xf32, #tpu.memory_space<vmem>>, vector<128x128xf32>
      %cst_12 = arith.constant dense<0.000000e+00> : vector<128xf32>
      %13 = vector.multi_reduction <add>, %12, %cst_12 [0] : vector<128x128xf32> to vector<128xf32>
      %14 = vector.shape_cast %13 : vector<128xf32> to vector<1x128xf32>
      %15 = arith.mulf %12, %12 : vector<128x128xf32>
      %cst_13 = arith.constant dense<0.000000e+00> : vector<128xf32>
      %16 = vector.multi_reduction <add>, %15, %cst_13 [0] : vector<128x128xf32> to vector<128xf32>
      %17 = vector.shape_cast %16 : vector<128xf32> to vector<1x128xf32>
      %18 = tpu.iota {dimensions = array<i32: 0>} : vector<8x128xi32>
      %c0_i32_14 = arith.constant 0 : i32
      %19 = vector.broadcast %c0_i32_14 : i32 to vector<8x128xi32>
      %20 = arith.cmpi eq, %18, %19 : vector<8x128xi32>
      %c1_i32 = arith.constant 1 : i32
      %21 = vector.broadcast %c1_i32 : i32 to vector<8x128xi32>
      %22 = arith.cmpi eq, %18, %21 : vector<8x128xi32>
      %cst_15 = arith.constant 0.000000e+00 : f32
      %23 = vector.shape_cast %17 : vector<1x128xf32> to vector<1x128xf32>
      %24 = vector.broadcast %23 : vector<1x128xf32> to vector<8x128xf32>
      %25 = vector.broadcast %cst_15 : f32 to vector<8x128xf32>
      %26 = arith.select %22, %24, %25 : vector<8x128xi1>, vector<8x128xf32>
      %27 = vector.shape_cast %14 : vector<1x128xf32> to vector<1x128xf32>
      %28 = vector.broadcast %27 : vector<1x128xf32> to vector<8x128xf32>
      %29 = arith.select %20, %28, %26 : vector<8x128xi1>, vector<8x128xf32>
      %c0_16 = arith.constant 0 : index
      %c0_17 = arith.constant 0 : index
      %30 = vector.load %arg8[%c0_16, %c0_17] : memref<8x128xf32, #tpu.memory_space<vmem>>, vector<8x128xf32>
      tpu.vector_store %arg8[%c0_16, %c0_17], %29 {strides = array<i32>} : memref<8x128xf32, #tpu.memory_space<vmem>>, vector<8x128xf32>,
      %c0_18 = arith.constant 0 : index
      %c0_19 = arith.constant 0 : index
      %31 = vector.load %arg5[%c0_18, %c0_19] : memref<1x128xf32, #tpu.memory_space<vmem>>, vector<1x128xf32>
      %32 = vector.broadcast %31 : vector<1x128xf32> to vector<128x128xf32>
      %33 = arith.mulf %12, %32 : vector<128x128xf32>
      %c0_20 = arith.constant 0 : index
      %c0_21 = arith.constant 0 : index
      %34 = vector.load %arg6[%c0_20, %c0_21] : memref<1x128xf32, #tpu.memory_space<vmem>>, vector<1x128xf32>
      %35 = vector.broadcast %34 : vector<1x128xf32> to vector<128x128xf32>
      %36 = arith.addf %33, %35 : vector<128x128xf32>
      %c0_22 = arith.constant 0 : index
      %c0_23 = arith.constant 0 : index
      %37 = vector.load %arg7[%c0_22, %c0_23] : memref<128x128xf32, #tpu.memory_space<vmem>>, vector<128x128xf32>
      tpu.vector_store %arg7[%c0_22, %c0_23], %36 {strides = array<i32>} : memref<128x128xf32, #tpu.memory_space<vmem>>, vector<128x128xf32>,
    } else {
    }
    return
  }
  func.func @transform_0(%arg0: i32, %arg1: i32, %arg2: i32) -> (i32, i32) {
    %c0_i32 = arith.constant 0 : i32
    return %arg0, %arg2 : i32, i32
  }
  func.func @transform_1(%arg0: i32, %arg1: i32, %arg2: i32) -> (i32, i32) {
    %c0_i32 = arith.constant 0 : i32
    return %arg2, %arg1 : i32, i32
  }
  func.func @transform_2(%arg0: i32, %arg1: i32, %arg2: i32) -> (i32, i32) {
    %c0_i32 = arith.constant 0 : i32
    %c0_i32_0 = arith.constant 0 : i32
    return %c0_i32, %arg1 : i32, i32
  }
  func.func @transform_3(%arg0: i32, %arg1: i32, %arg2: i32) -> (i32, i32) {
    %c0_i32 = arith.constant 0 : i32
    %c0_i32_0 = arith.constant 0 : i32
    return %c0_i32, %arg1 : i32, i32
  }
  func.func @transform_4(%arg0: i32, %arg1: i32, %arg2: i32) -> (i32, i32) {
    %c0_i32 = arith.constant 0 : i32
    return %arg0, %arg1 : i32, i32
  }
  func.func @transform_5(%arg0: i32, %arg1: i32, %arg2: i32) -> (i32, i32) {
    %c0_i32 = arith.constant 0 : i32
    return %arg0, %arg1 : i32, i32
  }
}

module attributes {stable_mosaic.version = 11 : i64} {
  func.func @_matmul_kernel(%arg0: i32, %arg1: i32, %arg2: i32, %arg3: memref<256x512xf32, #tpu.memory_space<vmem>>, %arg4: memref<512x128xf32, #tpu.memory_space<vmem>>, %arg5: memref<1x128xf32, #tpu.memory_space<vmem>>, %arg6: memref<1x128xf32, #tpu.memory_space<vmem>>, %arg7: memref<256x128xf32, #tpu.memory_space<vmem>>, %arg8: memref<8x128xf32, #tpu.memory_space<vmem>>, %arg9: memref<256x128xf32, #tpu.memory_space<vmem>>) attributes {dimension_semantics = [#tpu.dimension_semantics<parallel>, #tpu.dimension_semantics<parallel>, #tpu.dimension_semantics<arbitrary>], iteration_bounds = array<i64: 8, 1, 1>, scalar_prefetch = 0 : i64, scratch_operands = 1 : i64, tpu.core_type = #tpu.core_type<tc>, window_params = [{transform_indices = @transform_0, window_bounds = array<i64: 256, 512>}, {transform_indices = @transform_1, window_bounds = array<i64: 512, 128>}, {transform_indices = @transform_2, window_bounds = array<i64: 1, 128>}, {transform_indices = @transform_3, window_bounds = array<i64: 1, 128>}, {transform_indices = @transform_4, window_bounds = array<i64: 256, 128>}, {transform_indices = @transform_5, window_bounds = array<i64: 8, 128>}]} {
    %c0_i32 = arith.constant 0 : i32
    %0 = arith.cmpi eq, %arg2, %c0_i32 : i32
    %1 = arith.extui %0 : i1 to i32
    %c0_i32_0 = arith.constant 0 : i32
    %2 = arith.cmpi ne, %1, %c0_i32_0 : i32
    scf.if %2 {
      %cst_10 = arith.constant 0.000000e+00 : f32
      %12 = vector.broadcast %cst_10 : f32 to vector<256x128xf32>
      %c0_11 = arith.constant 0 : index
      %c0_12 = arith.constant 0 : index
      %13 = vector.load %arg9[%c0_11, %c0_12] : memref<256x128xf32, #tpu.memory_space<vmem>>, vector<256x128xf32>
      tpu.vector_store %arg9[%c0_11, %c0_12], %12 {strides = array<i32>} : memref<256x128xf32, #tpu.memory_space<vmem>>, vector<256x128xf32>,
    } else {
    }
    %c0 = arith.constant 0 : index
    %c0_1 = arith.constant 0 : index
    %3 = vector.load %arg9[%c0, %c0_1] : memref<256x128xf32, #tpu.memory_space<vmem>>, vector<256x128xf32>
    %c0_2 = arith.constant 0 : index
    %c0_3 = arith.constant 0 : index
    %4 = vector.load %arg3[%c0_2, %c0_3] : memref<256x512xf32, #tpu.memory_space<vmem>>, vector<256x512xf32>
    %c0_4 = arith.constant 0 : index
    %c0_5 = arith.constant 0 : index
    %5 = vector.load %arg4[%c0_4, %c0_5] : memref<512x128xf32, #tpu.memory_space<vmem>>, vector<512x128xf32>
    %cst = arith.constant dense<0.000000e+00> : vector<256x128xf32>
    %6 = tpu.matmul %4, %5, %cst {dimension_numbers = #tpu.dot_dimension_numbers<[1], [0], [0], [1], [0, 0, 1, 1], [], []>} : vector<256x512xf32>, vector<512x128xf32>, vector<256x128xf32> -> vector<256x128xf32>
    %7 = arith.addf %3, %6 : vector<256x128xf32>
    %c0_6 = arith.constant 0 : index
    %c0_7 = arith.constant 0 : index
    %8 = vector.load %arg9[%c0_6, %c0_7] : memref<256x128xf32, #tpu.memory_space<vmem>>, vector<256x128xf32>
    tpu.vector_store %arg9[%c0_6, %c0_7], %7 {strides = array<i32>} : memref<256x128xf32, #tpu.memory_space<vmem>>, vector<256x128xf32>,
    %c0_i32_8 = arith.constant 0 : i32
    %9 = arith.cmpi eq, %arg2, %c0_i32_8 : i32
    %10 = arith.extui %9 : i1 to i32
    %c0_i32_9 = arith.constant 0 : i32
    %11 = arith.cmpi ne, %10, %c0_i32_9 : i32
    scf.if %11 {
      %c0_10 = arith.constant 0 : index
      %c0_11 = arith.constant 0 : index
      %12 = vector.load %arg9[%c0_10, %c0_11] : memref<256x128xf32, #tpu.memory_space<vmem>>, vector<256x128xf32>
      %cst_12 = arith.constant dense<0.000000e+00> : vector<128xf32>
      %13 = vector.multi_reduction <add>, %12, %cst_12 [0] : vector<256x128xf32> to vector<128xf32>
      %14 = vector.shape_cast %13 : vector<128xf32> to vector<1x128xf32>
      %15 = arith.mulf %12, %12 : vector<256x128xf32>
      %cst_13 = arith.constant dense<0.000000e+00> : vector<128xf32>
      %16 = vector.multi_reduction <add>, %15, %cst_13 [0] : vector<256x128xf32> to vector<128xf32>
      %17 = vector.shape_cast %16 : vector<128xf32> to vector<1x128xf32>
      %18 = tpu.iota {dimensions = array<i32: 0>} : vector<8x128xi32>
      %c0_i32_14 = arith.constant 0 : i32
      %19 = vector.broadcast %c0_i32_14 : i32 to vector<8x128xi32>
      %20 = arith.cmpi eq, %18, %19 : vector<8x128xi32>
      %c1_i32 = arith.constant 1 : i32
      %21 = vector.broadcast %c1_i32 : i32 to vector<8x128xi32>
      %22 = arith.cmpi eq, %18, %21 : vector<8x128xi32>
      %cst_15 = arith.constant 0.000000e+00 : f32
      %23 = vector.shape_cast %17 : vector<1x128xf32> to vector<1x128xf32>
      %24 = vector.broadcast %23 : vector<1x128xf32> to vector<8x128xf32>
      %25 = vector.broadcast %cst_15 : f32 to vector<8x128xf32>
      %26 = arith.select %22, %24, %25 : vector<8x128xi1>, vector<8x128xf32>
      %27 = vector.shape_cast %14 : vector<1x128xf32> to vector<1x128xf32>
      %28 = vector.broadcast %27 : vector<1x128xf32> to vector<8x128xf32>
      %29 = arith.select %20, %28, %26 : vector<8x128xi1>, vector<8x128xf32>
      %c0_16 = arith.constant 0 : index
      %c0_17 = arith.constant 0 : index
      %30 = vector.load %arg8[%c0_16, %c0_17] : memref<8x128xf32, #tpu.memory_space<vmem>>, vector<8x128xf32>
      tpu.vector_store %arg8[%c0_16, %c0_17], %29 {strides = array<i32>} : memref<8x128xf32, #tpu.memory_space<vmem>>, vector<8x128xf32>,
      %c0_18 = arith.constant 0 : index
      %c0_19 = arith.constant 0 : index
      %31 = vector.load %arg5[%c0_18, %c0_19] : memref<1x128xf32, #tpu.memory_space<vmem>>, vector<1x128xf32>
      %32 = vector.broadcast %31 : vector<1x128xf32> to vector<256x128xf32>
      %33 = arith.mulf %12, %32 : vector<256x128xf32>
      %c0_20 = arith.constant 0 : index
      %c0_21 = arith.constant 0 : index
      %34 = vector.load %arg6[%c0_20, %c0_21] : memref<1x128xf32, #tpu.memory_space<vmem>>, vector<1x128xf32>
      %35 = vector.broadcast %34 : vector<1x128xf32> to vector<256x128xf32>
      %36 = arith.addf %33, %35 : vector<256x128xf32>
      %c0_22 = arith.constant 0 : index
      %c0_23 = arith.constant 0 : index
      %37 = vector.load %arg7[%c0_22, %c0_23] : memref<256x128xf32, #tpu.memory_space<vmem>>, vector<256x128xf32>
      tpu.vector_store %arg7[%c0_22, %c0_23], %36 {strides = array<i32>} : memref<256x128xf32, #tpu.memory_space<vmem>>, vector<256x128xf32>,
    } else {
    }
    return
  }
  func.func @transform_0(%arg0: i32, %arg1: i32, %arg2: i32) -> (i32, i32) {
    %c0_i32 = arith.constant 0 : i32
    return %arg0, %arg2 : i32, i32
  }
  func.func @transform_1(%arg0: i32, %arg1: i32, %arg2: i32) -> (i32, i32) {
    %c0_i32 = arith.constant 0 : i32
    return %arg2, %arg1 : i32, i32
  }
  func.func @transform_2(%arg0: i32, %arg1: i32, %arg2: i32) -> (i32, i32) {
    %c0_i32 = arith.constant 0 : i32
    %c0_i32_0 = arith.constant 0 : i32
    return %c0_i32, %arg1 : i32, i32
  }
  func.func @transform_3(%arg0: i32, %arg1: i32, %arg2: i32) -> (i32, i32) {
    %c0_i32 = arith.constant 0 : i32
    %c0_i32_0 = arith.constant 0 : i32
    return %c0_i32, %arg1 : i32, i32
  }
  func.func @transform_4(%arg0: i32, %arg1: i32, %arg2: i32) -> (i32, i32) {
    %c0_i32 = arith.constant 0 : i32
    return %arg0, %arg1 : i32, i32
  }
  func.func @transform_5(%arg0: i32, %arg1: i32, %arg2: i32) -> (i32, i32) {
    %c0_i32 = arith.constant 0 : i32
    return %arg0, %arg1 : i32, i32
  }
}

module attributes {stable_mosaic.version = 11 : i64} {
  func.func @_matmul_kernel(%arg0: i32, %arg1: i32, %arg2: i32, %arg3: memref<256x512xf32, #tpu.memory_space<vmem>>, %arg4: memref<512x128xf32, #tpu.memory_space<vmem>>, %arg5: memref<1x128xf32, #tpu.memory_space<vmem>>, %arg6: memref<1x128xf32, #tpu.memory_space<vmem>>, %arg7: memref<256x128xf32, #tpu.memory_space<vmem>>, %arg8: memref<8x128xf32, #tpu.memory_space<vmem>>, %arg9: memref<256x128xf32, #tpu.memory_space<vmem>>) attributes {dimension_semantics = [#tpu.dimension_semantics<parallel>, #tpu.dimension_semantics<parallel>, #tpu.dimension_semantics<arbitrary>], iteration_bounds = array<i64: 8, 1, 1>, scalar_prefetch = 0 : i64, scratch_operands = 1 : i64, tpu.core_type = #tpu.core_type<tc>, window_params = [{transform_indices = @transform_0, window_bounds = array<i64: 256, 512>}, {transform_indices = @transform_1, window_bounds = array<i64: 512, 128>}, {transform_indices = @transform_2, window_bounds = array<i64: 1, 128>}, {transform_indices = @transform_3, window_bounds = array<i64: 1, 128>}, {transform_indices = @transform_4, window_bounds = array<i64: 256, 128>}, {transform_indices = @transform_5, window_bounds = array<i64: 8, 128>}]} {
    %c0_i32 = arith.constant 0 : i32
    %0 = arith.cmpi eq, %arg2, %c0_i32 : i32
    %1 = arith.extui %0 : i1 to i32
    %c0_i32_0 = arith.constant 0 : i32
    %2 = arith.cmpi ne, %1, %c0_i32_0 : i32
    scf.if %2 {
      %cst_10 = arith.constant 0.000000e+00 : f32
      %12 = vector.broadcast %cst_10 : f32 to vector<256x128xf32>
      %c0_11 = arith.constant 0 : index
      %c0_12 = arith.constant 0 : index
      %13 = vector.load %arg9[%c0_11, %c0_12] : memref<256x128xf32, #tpu.memory_space<vmem>>, vector<256x128xf32>
      tpu.vector_store %arg9[%c0_11, %c0_12], %12 {strides = array<i32>} : memref<256x128xf32, #tpu.memory_space<vmem>>, vector<256x128xf32>,
    } else {
    }
    %c0 = arith.constant 0 : index
    %c0_1 = arith.constant 0 : index
    %3 = vector.load %arg9[%c0, %c0_1] : memref<256x128xf32, #tpu.memory_space<vmem>>, vector<256x128xf32>
    %c0_2 = arith.constant 0 : index
    %c0_3 = arith.constant 0 : index
    %4 = vector.load %arg3[%c0_2, %c0_3] : memref<256x512xf32, #tpu.memory_space<vmem>>, vector<256x512xf32>
    %c0_4 = arith.constant 0 : index
    %c0_5 = arith.constant 0 : index
    %5 = vector.load %arg4[%c0_4, %c0_5] : memref<512x128xf32, #tpu.memory_space<vmem>>, vector<512x128xf32>
    %cst = arith.constant dense<0.000000e+00> : vector<256x128xf32>
    %6 = tpu.matmul %4, %5, %cst {dimension_numbers = #tpu.dot_dimension_numbers<[1], [0], [0], [1], [0, 0, 1, 1], [], []>} : vector<256x512xf32>, vector<512x128xf32>, vector<256x128xf32> -> vector<256x128xf32>
    %7 = arith.addf %3, %6 : vector<256x128xf32>
    %c0_6 = arith.constant 0 : index
    %c0_7 = arith.constant 0 : index
    %8 = vector.load %arg9[%c0_6, %c0_7] : memref<256x128xf32, #tpu.memory_space<vmem>>, vector<256x128xf32>
    tpu.vector_store %arg9[%c0_6, %c0_7], %7 {strides = array<i32>} : memref<256x128xf32, #tpu.memory_space<vmem>>, vector<256x128xf32>,
    %c0_i32_8 = arith.constant 0 : i32
    %9 = arith.cmpi eq, %arg2, %c0_i32_8 : i32
    %10 = arith.extui %9 : i1 to i32
    %c0_i32_9 = arith.constant 0 : i32
    %11 = arith.cmpi ne, %10, %c0_i32_9 : i32
    scf.if %11 {
      %c0_10 = arith.constant 0 : index
      %c0_11 = arith.constant 0 : index
      %12 = vector.load %arg9[%c0_10, %c0_11] : memref<256x128xf32, #tpu.memory_space<vmem>>, vector<256x128xf32>
      %cst_12 = arith.constant dense<0.000000e+00> : vector<128xf32>
      %13 = vector.multi_reduction <add>, %12, %cst_12 [0] : vector<256x128xf32> to vector<128xf32>
      %14 = vector.shape_cast %13 : vector<128xf32> to vector<1x128xf32>
      %15 = arith.mulf %12, %12 : vector<256x128xf32>
      %cst_13 = arith.constant dense<0.000000e+00> : vector<128xf32>
      %16 = vector.multi_reduction <add>, %15, %cst_13 [0] : vector<256x128xf32> to vector<128xf32>
      %17 = vector.shape_cast %16 : vector<128xf32> to vector<1x128xf32>
      %18 = tpu.iota {dimensions = array<i32: 0>} : vector<8x128xi32>
      %c0_i32_14 = arith.constant 0 : i32
      %19 = vector.broadcast %c0_i32_14 : i32 to vector<8x128xi32>
      %20 = arith.cmpi eq, %18, %19 : vector<8x128xi32>
      %c1_i32 = arith.constant 1 : i32
      %21 = vector.broadcast %c1_i32 : i32 to vector<8x128xi32>
      %22 = arith.cmpi eq, %18, %21 : vector<8x128xi32>
      %cst_15 = arith.constant 0.000000e+00 : f32
      %23 = vector.shape_cast %17 : vector<1x128xf32> to vector<1x128xf32>
      %24 = vector.broadcast %23 : vector<1x128xf32> to vector<8x128xf32>
      %25 = vector.broadcast %cst_15 : f32 to vector<8x128xf32>
      %26 = arith.select %22, %24, %25 : vector<8x128xi1>, vector<8x128xf32>
      %27 = vector.shape_cast %14 : vector<1x128xf32> to vector<1x128xf32>
      %28 = vector.broadcast %27 : vector<1x128xf32> to vector<8x128xf32>
      %29 = arith.select %20, %28, %26 : vector<8x128xi1>, vector<8x128xf32>
      %c0_16 = arith.constant 0 : index
      %c0_17 = arith.constant 0 : index
      %30 = vector.load %arg8[%c0_16, %c0_17] : memref<8x128xf32, #tpu.memory_space<vmem>>, vector<8x128xf32>
      tpu.vector_store %arg8[%c0_16, %c0_17], %29 {strides = array<i32>} : memref<8x128xf32, #tpu.memory_space<vmem>>, vector<8x128xf32>,
      %c0_18 = arith.constant 0 : index
      %c0_19 = arith.constant 0 : index
      %31 = vector.load %arg5[%c0_18, %c0_19] : memref<1x128xf32, #tpu.memory_space<vmem>>, vector<1x128xf32>
      %32 = vector.broadcast %31 : vector<1x128xf32> to vector<256x128xf32>
      %33 = arith.mulf %12, %32 : vector<256x128xf32>
      %c0_20 = arith.constant 0 : index
      %c0_21 = arith.constant 0 : index
      %34 = vector.load %arg6[%c0_20, %c0_21] : memref<1x128xf32, #tpu.memory_space<vmem>>, vector<1x128xf32>
      %35 = vector.broadcast %34 : vector<1x128xf32> to vector<256x128xf32>
      %36 = arith.addf %33, %35 : vector<256x128xf32>
      %37 = math.tanh %36 : vector<256x128xf32>
      %c0_22 = arith.constant 0 : index
      %c0_23 = arith.constant 0 : index
      %38 = vector.load %arg7[%c0_22, %c0_23] : memref<256x128xf32, #tpu.memory_space<vmem>>, vector<256x128xf32>
      tpu.vector_store %arg7[%c0_22, %c0_23], %37 {strides = array<i32>} : memref<256x128xf32, #tpu.memory_space<vmem>>, vector<256x128xf32>,
    } else {
    }
    return
  }
  func.func @transform_0(%arg0: i32, %arg1: i32, %arg2: i32) -> (i32, i32) {
    %c0_i32 = arith.constant 0 : i32
    return %arg0, %arg2 : i32, i32
  }
  func.func @transform_1(%arg0: i32, %arg1: i32, %arg2: i32) -> (i32, i32) {
    %c0_i32 = arith.constant 0 : i32
    return %arg2, %arg1 : i32, i32
  }
  func.func @transform_2(%arg0: i32, %arg1: i32, %arg2: i32) -> (i32, i32) {
    %c0_i32 = arith.constant 0 : i32
    %c0_i32_0 = arith.constant 0 : i32
    return %c0_i32, %arg1 : i32, i32
  }
  func.func @transform_3(%arg0: i32, %arg1: i32, %arg2: i32) -> (i32, i32) {
    %c0_i32 = arith.constant 0 : i32
    %c0_i32_0 = arith.constant 0 : i32
    return %c0_i32, %arg1 : i32, i32
  }
  func.func @transform_4(%arg0: i32, %arg1: i32, %arg2: i32) -> (i32, i32) {
    %c0_i32 = arith.constant 0 : i32
    return %arg0, %arg1 : i32, i32
  }
  func.func @transform_5(%arg0: i32, %arg1: i32, %arg2: i32) -> (i32, i32) {
    %c0_i32 = arith.constant 0 : i32
    return %arg0, %arg1 : i32, i32
  }
}

</mosaic_0001>

<bundles_post_ra>
// kernel: conv_decoder_forward.22
= control target key start
LH: loop header
LB: loop body
LE: loop exit
PB: predicated region body
PF: predicated region fallthrough
CT: control target
= control target key end

     0   :  { %s98_s0 = inlined_call_operand.vmem [shape: f32[32,128], index: 0, kind: input, shape index: {}]   ;;  %s99_s1 = inlined_call_operand.vmem [shape: f32[1,128], index: 1, kind: input, shape index: {}]   ;;  %s100_s2 = inlined_call_operand.vmem [shape: f32[1,128], index: 2, kind: input, shape index: {}]   ;;  %s101_s3 = inlined_call_operand.vmem [shape: f32[32,128], index: 3, kind: output, shape index: {}]  }
   0x1   :  { %v14_v0 = vld [vmem:[%s98_s0] sm:$0xff]  ;;  %v15_v3 = vld [vmem:[%s98_s0 + $0x8] sm:$0xff]  ;;  %v16_v6 = vld [vmem:[%s98_s0 + $0x10] sm:$0xff] }
   0x2   :  { %v46_v1 = vld [vmem:[%s99_s1] ss:$0 sm:$0xff]  ;;  %v17_v7 = vld [vmem:[%s98_s0 + $0x18] sm:$0xff] }
   0x3   :  { %v47_v2 = vld [vmem:[%s100_s2] ss:$0 sm:$0xff]  ;;  %v22_v4 = vmul.f32 %v46_v1, %v14_v0  ;;  %v23_v5 = vmul.f32 %v46_v1, %v15_v3  ;;  %v24_v8 = vmul.f32 %v46_v1, %v16_v6  ;;  %v25_v9 = vmul.f32 %v46_v1, %v17_v7 }
   0x5   :  { %v30_v10 = vadd.f32 %v47_v2, %v22_v4  ;;  %v31_v11 = vadd.f32 %v47_v2, %v23_v5  ;;  %v32_v12 = vadd.f32 %v47_v2, %v24_v8  ;;  %v33_v13 = vadd.f32 %v47_v2, %v25_v9 }
   0x7   :  { %v34_v14 = vmax.f32 %v30_v10, 0.0  ;;  %v35_v15 = vmax.f32 %v31_v11, 0.0  ;;  %v36_v16 = vmax.f32 %v32_v12, 0.0  ;;  %v37_v17 = vmax.f32 %v33_v13, 0.0 }
   0x9   :  { %38 = vst [vmem:[%s101_s3] sm:$0xff] %v34_v14 }
   0xa   :  { %39 = vst [vmem:[%s101_s3 + $0x8] sm:$0xff] %v35_v15 }
   0xb   :  { %40 = vst [vmem:[%s101_s3 + $0x10] sm:$0xff] %v36_v16 }
   0xc   :  { %41 = vst [vmem:[%s101_s3 + $0x18] sm:$0xff] %v37_v17 }

// kernel: conv_decoder_forward.21
= control target key start
LH: loop header
LB: loop body
LE: loop exit
PB: predicated region body
PF: predicated region fallthrough
CT: control target
= control target key end

     0   :  { %s958_s18 = smov 0   ;;  %s960_s19 = smov 0   ;;  %s1148_s0 = inlined_call_operand.vmem [shape: f32[32,1024], index: 0, kind: input, shape index: {}]   ;;  %s1149_s1 = inlined_call_operand.vmem [shape: f32[1024,128], index: 1, kind: input, shape index: {}]   ;;  %s1150_s2 = inlined_call_operand.vmem [shape: f32[1,128], index: 2, kind: input, shape index: {}]   ;;  %s1151_s3 = inlined_call_operand.vmem [shape: f32[1,128], index: 3, kind: input, shape index: {}]   ;;  %s1152_s4 = inlined_call_operand.vmem [shape: f32[32,128], index: 4, kind: output, shape index: {0}]   ;;  %s1153_s5 = inlined_call_operand.vmem [shape: f32[8,128], index: 5, kind: output, shape index: {1}]  }
   0x1   :  { %s962_s20 = smov 0   ;;  %s964_s21 = smov 0  }
   0x2   :  { %s966_s22 = smov 0  }
   0x3 LB: > { %s28_s23 = sadd.s32 1, %s921_s21  ;;  %p51_p1 = scmp.ne.s32.totalorder %s913_s19, %s909_s18  ;;  %s925_s22 = sphi %s966_s22, %s16_s22   ;;  %s921_s21 = sphi %s964_s21, %s1157_s21   ;;  %s917_s20 = sphi %s962_s20, %s1156_s20   ;;  %s913_s19 = sphi %s960_s19, %s1155_s19   ;;  %s909_s18 = sphi %s958_s18, %s1154_s18  }
   0x4   : > { %p29_p0 = scmp.ge.s32.totalorder %s28_s23, 2  ;;  %p52_p2 = scmp.eq.s32.totalorder %s925_s22, 0 }
   0x5   : > { %s44_s25 = sadd.s32 1, %s913_s19  ;;  %p828_p5 = scmp.ge.s32.totalorder %s925_s22, 2 }
   0x6   : > { %s1159_s23 = smov (%p29_p0, %s28_s23), 0  ;;  %p53_p3 = por %p52_p2, %p51_p1 }
   0x7   : > { %s40_s24 = ssub.s32 %s921_s21, %s1159_s23  ;;  %225 = sbr.rel (%p828_p5) target bundleno = 32 (0x20), region = 24 }
   0x8   : > { %p42_p4 = scmp.eq.s32.totalorder %s40_s24, 0 }
   0xa   : > { %s993_s26 = scalar_select %p42_p4, %s913_s19, %s44_s25  }
   0xc   : > { %228 = sbr.rel (!%p53_p3) target bundleno = 32 (0x20), region = 28  ;;  %s230_s27 = sand.u32 (%p53_p3), 1, %s913_s19  }
   0xd   : > { %s843_s28 = sshll.u32 (%p53_p3), %s921_s21, 5  ;;  %s829_s29 = sshll.u32 (%p53_p3), %s230_s27, 7 }
   0xe   : > { %s1001_s7 = scalar_lea.vmem (%p53_p3), %s1148_s0, %s843_s28  ;;  %s232_s8 = scalar_lea.vmem (%p53_p3), [#allocation3], %s829_s29 }
   0xf   : > { %v251_v0 = vld [vmem:[%s1001_s7] sm:$0xff] (%p53_p3)  ;;  %v253_v1 = vld [vmem:[%s1001_s7 + $0x8] sm:$0xff] (%p53_p3)  ;;  %v255_v2 = vld [vmem:[%s1001_s7 + $0x10] sm:$0xff] (%p53_p3) }
  0x10   : > { %252 = vst [vmem:[%s232_s8] sm:$0xff] (%p53_p3), %v251_v0  ;;  %v257_v3 = vld [vmem:[%s1001_s7 + $0x18] sm:$0xff] (%p53_p3)  ;;  %v259_v4 = vld [vmem:[%s1001_s7 + $0x40] sm:$0xff] (%p53_p3)  ;;  %v261_v5 = vld [vmem:[%s1001_s7 + $0x48] sm:$0xff] (%p53_p3) }
  0x11   : > { %254 = vst [vmem:[%s232_s8 + $0x8] sm:$0xff] %v253_v1  ;;  %v263_v6 = vld [vmem:[%s1001_s7 + $0x50] sm:$0xff]  ;;  %v265_v7 = vld [vmem:[%s1001_s7 + $0x58] sm:$0xff]  ;;  %v267_v8 = vld [vmem:[%s1001_s7 + $0x80] sm:$0xff] }
  0x12   : > { %256 = vst [vmem:[%s232_s8 + $0x10] sm:$0xff] %v255_v2  ;;  %v269_v9 = vld [vmem:[%s1001_s7 + $0x88] sm:$0xff]  ;;  %v271_v10 = vld [vmem:[%s1001_s7 + $0x90] sm:$0xff]  ;;  %v273_v11 = vld [vmem:[%s1001_s7 + $0x98] sm:$0xff] }
  0x13   : > { %258 = vst [vmem:[%s232_s8 + $0x18] sm:$0xff] %v257_v3  ;;  %v275_v12 = vld [vmem:[%s1001_s7 + $0xc0] sm:$0xff]  ;;  %v277_v13 = vld [vmem:[%s1001_s7 + $0xc8] sm:$0xff]  ;;  %v279_v14 = vld [vmem:[%s1001_s7 + $0xd0] sm:$0xff] }
  0x14   : > { %260 = vst [vmem:[%s232_s8 + $0x20] sm:$0xff] %v259_v4  ;;  %v281_v15 = vld [vmem:[%s1001_s7 + $0xd8] sm:$0xff] }
  0x15   : > { %262 = vst [vmem:[%s232_s8 + $0x28] sm:$0xff] %v261_v5 }
  0x16   : > { %264 = vst [vmem:[%s232_s8 + $0x30] sm:$0xff] %v263_v6 }
  0x17   : > { %266 = vst [vmem:[%s232_s8 + $0x38] sm:$0xff] %v265_v7 }
  0x18   : > { %268 = vst [vmem:[%s232_s8 + $0x40] sm:$0xff] %v267_v8 }
  0x19   : > { %270 = vst [vmem:[%s232_s8 + $0x48] sm:$0xff] %v269_v9 }
  0x1a   : > { %272 = vst [vmem:[%s232_s8 + $0x50] sm:$0xff] %v271_v10 }
  0x1b   : > { %274 = vst [vmem:[%s232_s8 + $0x58] sm:$0xff] %v273_v11 }
  0x1c   : > { %276 = vst [vmem:[%s232_s8 + $0x60] sm:$0xff] %v275_v12 }
  0x1d   : > { %278 = vst [vmem:[%s232_s8 + $0x68] sm:$0xff] %v277_v13 }
  0x1e   : > { %280 = vst [vmem:[%s232_s8 + $0x70] sm:$0xff] %v279_v14 }
  0x1f   : > { %282 = vst [vmem:[%s232_s8 + $0x78] sm:$0xff] %v281_v15 }
  0x20 PF: > { %p832_p6 = scmp.ge.s32.totalorder %s925_s22, 1  ;;  %p299_p7 = scmp.lt.s32.totalorder %s925_s22, 3 }
  0x22   : > { %p300_p8 = pnand %p832_p6, %p299_p7 }
  0x23   : > { %s306_s9 = sand.u32 (!%p300_p8), 1, %s909_s18   ;;  %s834_s10 = sshll.u32 (!%p300_p8), %s917_s20, 6 }
  0x24   : > { %303 = sbr.rel (%p300_p8) target bundleno = 273 (0x111), region = 55  ;;  %s833_s11 = sshll.u32 (!%p300_p8), %s306_s9, 7 }
  0x25   : > { %p360_p9 = scmp.lt.s32.totalorder (!%p300_p8), %s834_s10, 127  ;;  %s1028_s16 = scalar_lea.vmem (!%p300_p8), [#allocation3], %s833_s11 }
  0x26   : > { %p836_p10 = scmp.ne.s32.totalorder (!%p300_p8), %s917_s20, 0 }
  0x29   : > { %s1161_s10 = smov (!%p360_p9, %s834_s10), 127  ;;  %393 = sbr.rel (%p836_p10) target bundleno = 51 (0x33), region = 63 }
  0x2a   : > { %s835_s12 = sshll.u32 %s1161_s10, 3 }
  0x2b   : > { %s1026_s15 = scalar_lea.vmem %s1149_s1, %s835_s12 }
  0x2e   : > { %v927_v16 = vmov 0.0  }
  0x2f   : > { %394 = vst [vmem:[#allocation2 + $0x10] sm:$0xff] %v927_v16 }
  0x30   : > { %395 = vst [vmem:[#allocation2] sm:$0xff] %v927_v16 }
  0x31   : > { %396 = vst [vmem:[#allocation2 + $0x18] sm:$0xff] %v927_v16 }
  0x32   : > { %397 = vst [vmem:[#allocation2 + $0x8] sm:$0xff] %v927_v16 }
  0x33 PF: > { %v465_v17 = vld [vmem:[%s1026_s15 + $0x178] sm:$0xff]  ;;  %v464_v18 = vld [vmem:[%s1026_s15 + $0x170] sm:$0xff]  ;;  %v463_v22 = vld [vmem:[%s1026_s15 + $0x168] sm:$0xff]  ;;  %p837_p11 = scmp.ne.s32.totalorder %s917_s20, 1 }
  0x34   : > { %v481_v19 = vld [vmem:[%s1026_s15 + $0x1f8] sm:$0xff]  ;;  %540 = vmatpush.msra.mxu2 %v465_v17  ;;  %v480_v23 = vld [vmem:[%s1026_s15 + $0x1f0] sm:$0xff]  ;;  %v479_v26 = vld [vmem:[%s1026_s15 + $0x1e8] sm:$0xff] }
  0x35   : > { %569 = vmatpush.msra.mxu3 %v481_v19  ;;  %v433_v20 = vld [vmem:[%s1026_s15 + $0x78] sm:$0xff]  ;;  %v432_v24 = vld [vmem:[%s1026_s15 + $0x70] sm:$0xff]  ;;  %v431_v27 = vld [vmem:[%s1026_s15 + $0x68] sm:$0xff] }
  0x36   : > { %v449_v21 = vld [vmem:[%s1026_s15 + $0xf8] sm:$0xff]  ;;  %482 = vmatpush.msra.mxu0 %v433_v20  ;;  %v448_v25 = vld [vmem:[%s1026_s15 + $0xf0] sm:$0xff]  ;;  %541 = vmatpush.msra.mxu2 %v464_v18  ;;  %v462_v28 = vld [vmem:[%s1026_s15 + $0x160] sm:$0xff] }
  0x37   : > { %511 = vmatpush.msra.mxu1 %v449_v21  ;;  %570 = vmatpush.msra.mxu3 %v480_v23  ;;  %v447_v29 = vld [vmem:[%s1026_s15 + $0xe8] sm:$0xff]  ;;  %v478_v30 = vld [vmem:[%s1026_s15 + $0x1e0] sm:$0xff]  ;;  %v461_v33 = vld [vmem:[%s1026_s15 + $0x158] sm:$0xff] }
  0x38   : > { %483 = vmatpush.msra.mxu0 %v432_v24  ;;  %542 = vmatpush.msra.mxu2 %v463_v22  ;;  %v430_v31 = vld [vmem:[%s1026_s15 + $0x60] sm:$0xff]  ;;  %v477_v34 = vld [vmem:[%s1026_s15 + $0x1d8] sm:$0xff]  ;;  %v460_v37 = vld [vmem:[%s1026_s15 + $0x150] sm:$0xff] }
  0x39   : > { %512 = vmatpush.msra.mxu1 %v448_v25  ;;  %571 = vmatpush.msra.mxu3 %v479_v26  ;;  %v446_v32 = vld [vmem:[%s1026_s15 + $0xe0] sm:$0xff]  ;;  %v429_v35 = vld [vmem:[%s1026_s15 + $0x58] sm:$0xff]  ;;  %v476_v38 = vld [vmem:[%s1026_s15 + $0x1d0] sm:$0xff] }
  0x3a   : > { %484 = vmatpush.msra.mxu0 %v431_v27  ;;  %543 = vmatpush.msra.mxu2 %v462_v28  ;;  %v445_v36 = vld [vmem:[%s1026_s15 + $0xd8] sm:$0xff]  ;;  %v428_v39 = vld [vmem:[%s1026_s15 + $0x50] sm:$0xff]  ;;  %v459_v41 = vld [vmem:[%s1026_s15 + $0x148] sm:$0xff] }
  0x3b   : > { %513 = vmatpush.msra.mxu1 %v447_v29  ;;  %572 = vmatpush.msra.mxu3 %v478_v30  ;;  %v444_v40 = vld [vmem:[%s1026_s15 + $0xd0] sm:$0xff]  ;;  %v475_v42 = vld [vmem:[%s1026_s15 + $0x1c8] sm:$0xff]  ;;  %v458_v45 = vld [vmem:[%s1026_s15 + $0x140] sm:$0xff] }
  0x3c   : > { %485 = vmatpush.msra.mxu0 %v430_v31  ;;  %544 = vmatpush.msra.mxu2 %v461_v33  ;;  %v427_v43 = vld [vmem:[%s1026_s15 + $0x48] sm:$0xff]  ;;  %v474_v46 = vld [vmem:[%s1026_s15 + $0x1c0] sm:$0xff]  ;;  %v457_v49 = vld [vmem:[%s1026_s15 + $0x138] sm:$0xff] }
  0x3d   : > { %514 = vmatpush.msra.mxu1 %v446_v32  ;;  %573 = vmatpush.msra.mxu3 %v477_v34  ;;  %v443_v44 = vld [vmem:[%s1026_s15 + $0xc8] sm:$0xff]  ;;  %v426_v47 = vld [vmem:[%s1026_s15 + $0x40] sm:$0xff]  ;;  %v473_v50 = vld [vmem:[%s1026_s15 + $0x1b8] sm:$0xff] }
  0x3e   : > { %486 = vmatpush.msra.mxu0 %v429_v35  ;;  %545 = vmatpush.msra.mxu2 %v460_v37  ;;  %v442_v48 = vld [vmem:[%s1026_s15 + $0xc0] sm:$0xff]  ;;  %v425_v51 = vld [vmem:[%s1026_s15 + $0x38] sm:$0xff]  ;;  %v456_v53 = vld [vmem:[%s1026_s15 + $0x130] sm:$0xff] }
  0x3f   : > { %515 = vmatpush.msra.mxu1 %v445_v36  ;;  %574 = vmatpush.msra.mxu3 %v476_v38  ;;  %v441_v52 = vld [vmem:[%s1026_s15 + $0xb8] sm:$0xff]  ;;  %v472_v54 = vld [vmem:[%s1026_s15 + $0x1b0] sm:$0xff]  ;;  %v455_v57 = vld [vmem:[%s1026_s15 + $0x128] sm:$0xff] }
  0x40   : > { %487 = vmatpush.msra.mxu0 %v428_v39  ;;  %546 = vmatpush.msra.mxu2 %v459_v41  ;;  %v424_v55 = vld [vmem:[%s1026_s15 + $0x30] sm:$0xff]  ;;  %v471_v58 = vld [vmem:[%s1026_s15 + $0x1a8] sm:$0xff]  ;;  %v454_v61 = vld [vmem:[%s1026_s15 + $0x120] sm:$0xff] }
  0x41   : > { %516 = vmatpush.msra.mxu1 %v444_v40  ;;  %575 = vmatpush.msra.mxu3 %v475_v42  ;;  %v440_v56 = vld [vmem:[%s1026_s15 + $0xb0] sm:$0xff]  ;;  %v423_v59 = vld [vmem:[%s1026_s15 + $0x28] sm:$0xff]  ;;  %v470_v62 = vld [vmem:[%s1026_s15 + $0x1a0] sm:$0xff] }
  0x42   : > { %488 = vmatpush.msra.mxu0 %v427_v43  ;;  %547 = vmatpush.msra.mxu2 %v458_v45  ;;  %v439_v60 = vld [vmem:[%s1026_s15 + $0xa8] sm:$0xff]  ;;  %v422_v63 = vld [vmem:[%s1026_s15 + $0x20] sm:$0xff]  ;;  %v453_v1 = vld [vmem:[%s1026_s15 + $0x118] sm:$0xff] }
  0x43   : > { %517 = vmatpush.msra.mxu1 %v443_v44  ;;  %576 = vmatpush.msra.mxu3 %v474_v46  ;;  %v438_v0 = vld [vmem:[%s1026_s15 + $0xa0] sm:$0xff]  ;;  %v469_v2 = vld [vmem:[%s1026_s15 + $0x198] sm:$0xff]  ;;  %v452_v5 = vld [vmem:[%s1026_s15 + $0x110] sm:$0xff] }
  0x44   : > { %489 = vmatpush.msra.mxu0 %v426_v47  ;;  %548 = vmatpush.msra.mxu2 %v457_v49  ;;  %v421_v3 = vld [vmem:[%s1026_s15 + $0x18] sm:$0xff]  ;;  %v468_v6 = vld [vmem:[%s1026_s15 + $0x190] sm:$0xff]  ;;  %v451_v9 = vld [vmem:[%s1026_s15 + $0x108] sm:$0xff] }
  0x45   : > { %518 = vmatpush.msra.mxu1 %v442_v48  ;;  %577 = vmatpush.msra.mxu3 %v473_v50  ;;  %v437_v4 = vld [vmem:[%s1026_s15 + $0x98] sm:$0xff]  ;;  %v420_v7 = vld [vmem:[%s1026_s15 + $0x10] sm:$0xff]  ;;  %v467_v10 = vld [vmem:[%s1026_s15 + $0x188] sm:$0xff] }
  0x46   : > { %490 = vmatpush.msra.mxu0 %v425_v51  ;;  %549 = vmatpush.msra.mxu2 %v456_v53  ;;  %v436_v8 = vld [vmem:[%s1026_s15 + $0x90] sm:$0xff]  ;;  %v419_v11 = vld [vmem:[%s1026_s15 + $0x8] sm:$0xff]  ;;  %v450_v13 = vld [vmem:[%s1026_s15 + $0x100] sm:$0xff] }
  0x47   : > { %519 = vmatpush.msra.mxu1 %v441_v52  ;;  %578 = vmatpush.msra.mxu3 %v472_v54  ;;  %v435_v12 = vld [vmem:[%s1026_s15 + $0x88] sm:$0xff]  ;;  %v466_v14 = vld [vmem:[%s1026_s15 + $0x180] sm:$0xff]  ;;  %v404_v15 = vld [vmem:[%s1028_s16 + $0x10] sm:$0xff] }
  0x48   : > { %491 = vmatpush.msra.mxu0 %v424_v55  ;;  %550 = vmatpush.msra.mxu2 %v455_v57  ;;  %v405_v16 = vld [vmem:[%s1028_s16 + $0x18] sm:$0xff]  ;;  %v418_v17 = vld [vmem:[%s1026_s15] sm:$0xff]  ;;  %v403_v20 = vld [vmem:[%s1028_s16 + $0x8] sm:$0xff] }
  0x49   : > { %520 = vmatpush.msra.mxu1 %v440_v56  ;;  %579 = vmatpush.msra.mxu3 %v471_v58  ;;  %v434_v18 = vld [vmem:[%s1026_s15 + $0x80] sm:$0xff]  ;;  %v408_v21 = vld [vmem:[%s1028_s16 + $0x30] sm:$0xff]  ;;  %v409_v22 = vld [vmem:[%s1028_s16 + $0x38] sm:$0xff] }
  0x4a   : > { %492 = vmatpush.msra.mxu0 %v423_v59  ;;  %551 = vmatpush.msra.mxu2 %v454_v61  ;;  %v402_v19 = vld [vmem:[%s1028_s16] sm:$0xff]  ;;  %v407_v24 = vld [vmem:[%s1028_s16 + $0x28] sm:$0xff]  ;;  %v412_v25 = vld [vmem:[%s1028_s16 + $0x50] sm:$0xff] }
  0x4b   : > { %521 = vmatpush.msra.mxu1 %v439_v60  ;;  %580 = vmatpush.msra.mxu3 %v470_v62  ;;  %v406_v23 = vld [vmem:[%s1028_s16 + $0x20] sm:$0xff]  ;;  %v413_v26 = vld [vmem:[%s1028_s16 + $0x58] sm:$0xff]  ;;  %v411_v28 = vld [vmem:[%s1028_s16 + $0x48] sm:$0xff] }
  0x4c   : > { %493 = vmatpush.msra.mxu0 %v422_v63  ;;  %552 = vmatpush.msra.mxu2 %v453_v1  ;;  %v410_v27 = vld [vmem:[%s1028_s16 + $0x40] sm:$0xff]  ;;  %v416_v29 = vld [vmem:[%s1028_s16 + $0x70] sm:$0xff]  ;;  %v417_v30 = vld [vmem:[%s1028_s16 + $0x78] sm:$0xff] }
  0x4d   : > { %522 = vmatpush.msra.mxu1 %v438_v0  ;;  %581 = vmatpush.msra.mxu3 %v469_v2  ;;  %v414_v31 = vld [vmem:[%s1028_s16 + $0x60] sm:$0xff]  ;;  %v415_v32 = vld [vmem:[%s1028_s16 + $0x68] sm:$0xff]  ;;  %v398_v39 = vld [vmem:[#allocation2 + $0x10] sm:$0xff] }
  0x4e   : > { %494 = vmatpush.msra.mxu0 %v421_v3  ;;  %553 = vmatpush.msra.mxu2 %v452_v5  ;;  %v399_v48 = vld [vmem:[#allocation2] sm:$0xff]  ;;  %v400_v57 = vld [vmem:[#allocation2 + $0x18] sm:$0xff]  ;;  %v401_v2 = vld [vmem:[#allocation2 + $0x8] sm:$0xff] }
  0x4f   : > { %523 = vmatpush.msra.mxu1 %v437_v4  ;;  %582 = vmatpush.msra.mxu3 %v468_v6 }
  0x50   : > { %495 = vmatpush.msra.mxu0 %v420_v7  ;;  %554 = vmatpush.msra.mxu2 %v451_v9 }
  0x51   : > { %524 = vmatpush.msra.mxu1 %v436_v8  ;;  %583 = vmatpush.msra.mxu3 %v467_v10 }
  0x52   : > { %496 = vmatpush.msra.mxu0 %v419_v11  ;;  %555 = vmatpush.msra.mxu2 %v450_v13 }
  0x53   : > { %525 = vmatpush.msra.mxu1 %v435_v12  ;;  %584 = vmatpush.msra.mxu3 %v466_v14 }
  0x54   : > { %556 = vmatmul.f32.vlgmr.msra.gmra.mxu2 %v404_v15  ;;  %585 = vmatmul.f32.vlgmr.msra.gmra.mxu3 %v405_v16 }
  0x55   : > { %497 = vmatpush.msra.mxu0 %v418_v17  ;;  %526 = vmatpush.msra.mxu1 %v434_v18 }
  0x56   : > { %498 = vmatmul.f32.vlgmr.msra.gmra.mxu0 %v402_v19  ;;  %527 = vmatmul.f32.vlgmr.msra.gmra.mxu1 %v403_v20 }
  0x5c   : > { %559 = vmatmul.f32.gmra.mxu2 %v408_v21  ;;  %588 = vmatmul.f32.gmra.mxu3 %v409_v22 }
  0x5e   : > { %501 = vmatmul.f32.gmra.mxu0 %v406_v23  ;;  %530 = vmatmul.f32.gmra.mxu1 %v407_v24 }
  0x64   : > { %562 = vmatmul.f32.gmra.mxu2 %v412_v25  ;;  %591 = vmatmul.f32.gmra.mxu3 %v413_v26 }
  0x66   : > { %504 = vmatmul.f32.gmra.mxu0 %v410_v27  ;;  %533 = vmatmul.f32.gmra.mxu1 %v411_v28 }
  0x6c   : > { %565 = vmatmul.f32.gmra.mxu2 %v416_v29  ;;  %594 = vmatmul.f32.gmra.mxu3 %v417_v30 }
  0x6e   : > { %507 = vmatmul.f32.gmra.mxu0 %v414_v31  ;;  %536 = vmatmul.f32.gmra.mxu1 %v415_v32 }
  0xd3   : > { %v499_v33 = vpop.f32.mrf.mxu0  ;;  %v528_v34 = vpop.f32.mrf.mxu1 }
  0xd4   : > { %v529_v35 = vadd.f32 %v528_v34, %v499_v33 }
  0xd7   : > { %v557_v36 = vpop.f32.mrf.mxu2  ;;  %v586_v37 = vpop.f32.mrf.mxu3 }
  0xd8   : > { %v558_v38 = vadd.f32 %v557_v36, %v529_v35 }
  0xda   : > { %v587_v40 = vadd.f32 %v586_v37, %v558_v38 }
  0xdb   : > { %v502_v41 = vpop.f32.mrf.mxu0  ;;  %v531_v42 = vpop.f32.mrf.mxu1 }
  0xdc   : > { %v598_v43 = vadd.f32 %v587_v40, %v398_v39  ;;  %v532_v44 = vadd.f32 %v531_v42, %v502_v41 }
  0xde   : > { %602 = vst [vmem:[#allocation2 + $0x10] sm:$0xff] %v598_v43 }
  0xdf   : > { %v560_v45 = vpop.f32.mrf.mxu2  ;;  %v589_v46 = vpop.f32.mrf.mxu3 }
  0xe0   : > { %v561_v47 = vadd.f32 %v560_v45, %v532_v44 }
  0xe2   : > { %v590_v49 = vadd.f32 %v589_v46, %v561_v47 }
  0xe3   : > { %v505_v50 = vpop.f32.mrf.mxu0  ;;  %v534_v51 = vpop.f32.mrf.mxu1 }
  0xe4   : > { %v599_v52 = vadd.f32 %v590_v49, %v399_v48  ;;  %v535_v53 = vadd.f32 %v534_v51, %v505_v50 }
  0xe6   : > { %603 = vst [vmem:[#allocation2] sm:$0xff] %v599_v52 }
  0xe7   : > { %v563_v54 = vpop.f32.mrf.mxu2  ;;  %v592_v55 = vpop.f32.mrf.mxu3 }
  0xe8   : > { %v564_v56 = vadd.f32 %v563_v54, %v535_v53 }
  0xea   : > { %v593_v58 = vadd.f32 %v592_v55, %v564_v56 }
  0xeb   : > { %v508_v59 = vpop.f32.mrf.mxu0  ;;  %v537_v60 = vpop.f32.mrf.mxu1 }
  0xec   : > { %v600_v61 = vadd.f32 %v593_v58, %v400_v57  ;;  %v538_v62 = vadd.f32 %v537_v60, %v508_v59 }
  0xee   : > { %604 = vst [vmem:[#allocation2 + $0x18] sm:$0xff] %v600_v61 }
  0xef   : > { %v566_v63 = vpop.f32.mrf.mxu2  ;;  %v595_v0 = vpop.f32.mrf.mxu3 }
  0xf0   : > { %v567_v1 = vadd.f32 %v566_v63, %v538_v62 }
  0xf2   : > { %v596_v3 = vadd.f32 %v595_v0, %v567_v1  ;;  %609 = sbr.rel (%p837_p11) target bundleno = 273 (0x111), region = 67 }
  0xf4   : > { %v601_v4 = vadd.f32 %v596_v3, %v401_v2 }
  0xf6   : > { %605 = vst [vmem:[#allocation2 + $0x8] sm:$0xff] %v601_v4 }
  0xf7   : > { %v610_v5 = vld [vmem:[#allocation2 + $0x10] sm:$0xff]  ;;  %v611_v6 = vld [vmem:[#allocation2] sm:$0xff]  ;;  %v612_v7 = vld [vmem:[#allocation2 + $0x18] sm:$0xff]  ;;  %v636_v32 = vlaneseq }
  0xf8   : > { %v614_v9 = vadd.f32 %v611_v6, %v610_v5  ;;  %v623_v10 = vmul.f32 %v610_v5, %v610_v5  ;;  %v624_v11 = vmul.f32 %v611_v6, %v611_v6  ;;  %v625_v12 = vmul.f32 %v612_v7, %v612_v7  ;;  %v885_v13 = vld [vmem:[%s1150_s2] ss:$0 sm:$0xff] }
  0xf9   : > { %v886_v15 = vld [vmem:[%s1151_s3] ss:$0 sm:$0xff]  ;;  %v647_v18 = vmul.f32 %v885_v13, %v610_v5  ;;  %v648_v19 = vmul.f32 %v885_v13, %v611_v6  ;;  %v649_v20 = vmul.f32 %v885_v13, %v612_v7  ;;  %v637_v37 = vshrl.u32 %v636_v32, 7 }
  0xfa   : > { %v615_v16 = vadd.f32 %v614_v9, %v612_v7  ;;  %v627_v17 = vadd.f32 %v624_v11, %v623_v10 }
  0xfb   : > { %v655_v24 = vadd.f32 %v886_v15, %v647_v18  ;;  %v656_v25 = vadd.f32 %v886_v15, %v648_v19  ;;  %v657_v26 = vadd.f32 %v886_v15, %v649_v20  ;;  %vm639_vm0 = vcmp.eq.s32.totalorder %v637_v37, 1 }
  0xfc   : > { %v628_v23 = vadd.f32 %v627_v17, %v625_v12  ;;  %vm638_vm1 = vcmp.eq.s32.totalorder %v637_v37, 0 }
  0xfd   : > { %v613_v8 = vld [vmem:[#allocation2 + $0x8] sm:$0xff]  ;;  %659 = vst [vmem:[%s1152_s4] sm:$0xff] %v655_v24 }
  0xfe   : > { %v626_v14 = vmul.f32 %v613_v8, %v613_v8  ;;  %v650_v21 = vmul.f32 %v885_v13, %v613_v8  ;;  %v616_v22 = vadd.f32 %v615_v16, %v613_v8  ;;  %660 = vst [vmem:[%s1152_s4 + $0x8] sm:$0xff] %v656_v25 }
  0xff   : > { %661 = vst [vmem:[%s1152_s4 + $0x10] sm:$0xff] %v657_v26 }
 0x100   : > { %v658_v27 = vadd.f32 %v886_v15, %v650_v21  ;;  %v617_v28 = vrot.slane %v616_v22, 4  ;;  %v629_v29 = vadd.f32 %v628_v23, %v626_v14 }
 0x102   : > { %v618_v30 = vadd.f32 %v617_v28, %v616_v22  ;;  %v630_v31 = vrot.slane %v629_v29, 4  ;;  %662 = vst [vmem:[%s1152_s4 + $0x18] sm:$0xff] %v658_v27 }
 0x104   : > { %v619_v33 = vrot.slane %v618_v30, 2  ;;  %v631_v34 = vadd.f32 %v630_v31, %v629_v29 }
 0x106   : > { %v620_v35 = vadd.f32 %v619_v33, %v618_v30  ;;  %v632_v36 = vrot.slane %v631_v34, 2 }
 0x108   : > { %v621_v38 = vrot.slane %v620_v35, 1  ;;  %v633_v39 = vadd.f32 %v632_v36, %v631_v34 }
 0x10a   : > { %v634_v40 = vrot.slane %v633_v39, 1  ;;  %v622_v41 = vadd.f32 %v621_v38, %v620_v35 }
 0x10c   : > { %v635_v42 = vadd.f32 %v634_v40, %v633_v39 }
 0x10e   : > { %v640_v43 = vsel %vm639_vm0, %v635_v42, 0.0 }
 0x10f   : > { %v641_v44 = vsel %vm638_vm1, %v622_v41, %v640_v43 }
 0x110   : > { %642 = vst [vmem:[%s1153_s5] sm:$0xff] %v641_v44 }
 0x111 PF: > { %s16_s22 = sadd.s32 1, %s925_s22   ;;  %s1154_s18 = smov %s913_s19 }
 0x112   : > { %p13_p12 = scmp.ge.s32.totalorder %s16_s22, 4   ;;  %s1155_s19 = smov %s993_s26 }
 0x113   : > { %s1156_s20 = smov %s921_s21  ;;  %s1157_s21 = smov %s1159_s23 }
 0x114   :  { %15 = sbr.rel (!%p13_p12) target bundleno = 3 (0x3), region = 123 }

// kernel: conv_decoder_forward.25
= control target key start
LH: loop header
LB: loop body
LE: loop exit
PB: predicated region body
PF: predicated region fallthrough
CT: control target
= control target key end

     0   :  { %s406_s1 = inlined_call_operand.vmem [shape: f32[256,128], index: 1, kind: input, shape index: {}]   ;;  %s407_s0 = inlined_call_operand.vmem [shape: f32[32,256], index: 0, kind: input, shape index: {}]   ;;  %s408_s2 = inlined_call_operand.vmem [shape: f32[1,128], index: 2, kind: input, shape index: {}]   ;;  %s409_s3 = inlined_call_operand.vmem [shape: f32[1,128], index: 3, kind: input, shape index: {}]   ;;  %s410_s4 = inlined_call_operand.vmem [shape: f32[32,128], index: 4, kind: output, shape index: {0}]   ;;  %s411_s5 = inlined_call_operand.vmem [shape: f32[8,128], index: 5, kind: output, shape index: {1}]  }
   0x1   :  { %v54_v0 = vld [vmem:[%s406_s1 + $0x78] sm:$0xff]  ;;  %v53_v2 = vld [vmem:[%s406_s1 + $0x70] sm:$0xff]  ;;  %v52_v4 = vld [vmem:[%s406_s1 + $0x68] sm:$0xff] }
   0x2   :  { %v70_v1 = vld [vmem:[%s406_s1 + $0xf8] sm:$0xff]  ;;  %71 = vmatpush.msra.mxu0 %v54_v0  ;;  %201 = vmatpush.msra.mxu2 %v54_v0  ;;  %v69_v3 = vld [vmem:[%s406_s1 + $0xf0] sm:$0xff]  ;;  %v68_v5 = vld [vmem:[%s406_s1 + $0xe8] sm:$0xff] }
   0x3   :  { %100 = vmatpush.msra.mxu1 %v70_v1  ;;  %217 = vmatpush.msra.mxu3 %v70_v1  ;;  %v51_v6 = vld [vmem:[%s406_s1 + $0x60] sm:$0xff]  ;;  %v50_v8 = vld [vmem:[%s406_s1 + $0x58] sm:$0xff]  ;;  %v49_v10 = vld [vmem:[%s406_s1 + $0x50] sm:$0xff] }
   0x4   :  { %72 = vmatpush.msra.mxu0 %v53_v2  ;;  %202 = vmatpush.msra.mxu2 %v53_v2  ;;  %v67_v7 = vld [vmem:[%s406_s1 + $0xe0] sm:$0xff]  ;;  %v66_v9 = vld [vmem:[%s406_s1 + $0xd8] sm:$0xff]  ;;  %v65_v11 = vld [vmem:[%s406_s1 + $0xd0] sm:$0xff] }
   0x5   :  { %101 = vmatpush.msra.mxu1 %v69_v3  ;;  %218 = vmatpush.msra.mxu3 %v69_v3  ;;  %v48_v12 = vld [vmem:[%s406_s1 + $0x48] sm:$0xff]  ;;  %v47_v14 = vld [vmem:[%s406_s1 + $0x40] sm:$0xff]  ;;  %v46_v16 = vld [vmem:[%s406_s1 + $0x38] sm:$0xff] }
   0x6   :  { %73 = vmatpush.msra.mxu0 %v52_v4  ;;  %203 = vmatpush.msra.mxu2 %v52_v4  ;;  %v64_v13 = vld [vmem:[%s406_s1 + $0xc8] sm:$0xff]  ;;  %v63_v15 = vld [vmem:[%s406_s1 + $0xc0] sm:$0xff]  ;;  %v62_v17 = vld [vmem:[%s406_s1 + $0xb8] sm:$0xff] }
   0x7   :  { %102 = vmatpush.msra.mxu1 %v68_v5  ;;  %219 = vmatpush.msra.mxu3 %v68_v5  ;;  %v45_v18 = vld [vmem:[%s406_s1 + $0x30] sm:$0xff]  ;;  %v44_v20 = vld [vmem:[%s406_s1 + $0x28] sm:$0xff]  ;;  %v43_v22 = vld [vmem:[%s406_s1 + $0x20] sm:$0xff] }
   0x8   :  { %74 = vmatpush.msra.mxu0 %v51_v6  ;;  %204 = vmatpush.msra.mxu2 %v51_v6  ;;  %v61_v19 = vld [vmem:[%s406_s1 + $0xb0] sm:$0xff]  ;;  %v60_v21 = vld [vmem:[%s406_s1 + $0xa8] sm:$0xff]  ;;  %v59_v23 = vld [vmem:[%s406_s1 + $0xa0] sm:$0xff] }
   0x9   :  { %103 = vmatpush.msra.mxu1 %v67_v7  ;;  %220 = vmatpush.msra.mxu3 %v67_v7  ;;  %v42_v24 = vld [vmem:[%s406_s1 + $0x18] sm:$0xff]  ;;  %v41_v26 = vld [vmem:[%s406_s1 + $0x10] sm:$0xff]  ;;  %v40_v28 = vld [vmem:[%s406_s1 + $0x8] sm:$0xff] }
   0xa   :  { %75 = vmatpush.msra.mxu0 %v50_v8  ;;  %205 = vmatpush.msra.mxu2 %v50_v8  ;;  %v58_v25 = vld [vmem:[%s406_s1 + $0x98] sm:$0xff]  ;;  %v57_v27 = vld [vmem:[%s406_s1 + $0x90] sm:$0xff]  ;;  %v56_v29 = vld [vmem:[%s406_s1 + $0x88] sm:$0xff] }
   0xb   :  { %104 = vmatpush.msra.mxu1 %v66_v9  ;;  %221 = vmatpush.msra.mxu3 %v66_v9  ;;  %v39_v30 = vld [vmem:[%s406_s1] sm:$0xff]  ;;  %v32_v34 = vld [vmem:[%s407_s0 + $0x8] sm:$0xff]  ;;  %v33_v36 = vld [vmem:[%s407_s0 + $0x10] sm:$0xff] }
   0xc   :  { %76 = vmatpush.msra.mxu0 %v49_v10  ;;  %206 = vmatpush.msra.mxu2 %v49_v10  ;;  %v55_v31 = vld [vmem:[%s406_s1 + $0x80] sm:$0xff]  ;;  %v36_v35 = vld [vmem:[%s407_s0 + $0x28] sm:$0xff]  ;;  %v37_v37 = vld [vmem:[%s407_s0 + $0x30] sm:$0xff] }
   0xd   :  { %105 = vmatpush.msra.mxu1 %v65_v11  ;;  %222 = vmatpush.msra.mxu3 %v65_v11  ;;  %v31_v32 = vld [vmem:[%s407_s0] sm:$0xff]  ;;  %v34_v38 = vld [vmem:[%s407_s0 + $0x18] sm:$0xff]  ;;  %v166_v11 = vlaneseq }
   0xe   :  { %77 = vmatpush.msra.mxu0 %v48_v12  ;;  %207 = vmatpush.msra.mxu2 %v48_v12  ;;  %v35_v33 = vld [vmem:[%s407_s0 + $0x20] sm:$0xff]  ;;  %v38_v39 = vld [vmem:[%s407_s0 + $0x38] sm:$0xff] }
   0xf   :  { %106 = vmatpush.msra.mxu1 %v64_v13  ;;  %223 = vmatpush.msra.mxu3 %v64_v13  ;;  %v233_v41 = vld [vmem:[%s408_s2] ss:$0 sm:$0xff] }
  0x10   :  { %78 = vmatpush.msra.mxu0 %v47_v14  ;;  %208 = vmatpush.msra.mxu2 %v47_v14  ;;  %v234_v44 = vld [vmem:[%s409_s3] ss:$0 sm:$0xff] }
  0x11   :  { %107 = vmatpush.msra.mxu1 %v63_v15  ;;  %224 = vmatpush.msra.mxu3 %v63_v15 }
  0x12   :  { %79 = vmatpush.msra.mxu0 %v46_v16  ;;  %209 = vmatpush.msra.mxu2 %v46_v16  ;;  %v167_v16 = vshrl.u32 %v166_v11, 7 }
  0x13   :  { %108 = vmatpush.msra.mxu1 %v62_v17  ;;  %225 = vmatpush.msra.mxu3 %v62_v17 }
  0x14   :  { %80 = vmatpush.msra.mxu0 %v45_v18  ;;  %210 = vmatpush.msra.mxu2 %v45_v18  ;;  %vm169_vm0 = vcmp.eq.s32.totalorder %v167_v16, 1  ;;  %vm168_vm1 = vcmp.eq.s32.totalorder %v167_v16, 0 }
  0x15   :  { %109 = vmatpush.msra.mxu1 %v61_v19  ;;  %226 = vmatpush.msra.mxu3 %v61_v19 }
  0x16   :  { %81 = vmatpush.msra.mxu0 %v44_v20  ;;  %211 = vmatpush.msra.mxu2 %v44_v20 }
  0x17   :  { %110 = vmatpush.msra.mxu1 %v60_v21  ;;  %227 = vmatpush.msra.mxu3 %v60_v21 }
  0x18   :  { %82 = vmatpush.msra.mxu0 %v43_v22  ;;  %212 = vmatpush.msra.mxu2 %v43_v22 }
  0x19   :  { %111 = vmatpush.msra.mxu1 %v59_v23  ;;  %228 = vmatpush.msra.mxu3 %v59_v23 }
  0x1a   :  { %83 = vmatpush.msra.mxu0 %v42_v24  ;;  %213 = vmatpush.msra.mxu2 %v42_v24 }
  0x1b   :  { %112 = vmatpush.msra.mxu1 %v58_v25  ;;  %229 = vmatpush.msra.mxu3 %v58_v25 }
  0x1c   :  { %84 = vmatpush.msra.mxu0 %v41_v26  ;;  %214 = vmatpush.msra.mxu2 %v41_v26 }
  0x1d   :  { %113 = vmatpush.msra.mxu1 %v57_v27  ;;  %230 = vmatpush.msra.mxu3 %v57_v27 }
  0x1e   :  { %85 = vmatpush.msra.mxu0 %v40_v28  ;;  %215 = vmatpush.msra.mxu2 %v40_v28 }
  0x1f   :  { %114 = vmatpush.msra.mxu1 %v56_v29  ;;  %231 = vmatpush.msra.mxu3 %v56_v29 }
  0x20   :  { %86 = vmatpush.msra.mxu0 %v39_v30  ;;  %216 = vmatpush.msra.mxu2 %v39_v30 }
  0x21   :  { %115 = vmatpush.msra.mxu1 %v55_v31  ;;  %232 = vmatpush.msra.mxu3 %v55_v31 }
  0x22   :  { %87 = vmatmul.f32.vlgmr.msra.gmra.mxu0 %v31_v32  ;;  %93 = vmatmul.f32.vlgmr.msra.gmra.mxu2 %v35_v33 }
  0x23   :  { %116 = vmatmul.f32.vlgmr.msra.gmra.mxu1 %v32_v34  ;;  %122 = vmatmul.f32.vlgmr.msra.gmra.mxu3 %v36_v35 }
  0x2a   :  { %90 = vmatmul.f32.gmra.mxu0 %v33_v36  ;;  %96 = vmatmul.f32.gmra.mxu2 %v37_v37 }
  0x2b   :  { %119 = vmatmul.f32.gmra.mxu1 %v34_v38  ;;  %125 = vmatmul.f32.gmra.mxu3 %v38_v39 }
  0x9f   :  { %v88_v40 = vpop.f32.mrf.mxu0 }
  0xa0   :  { %v117_v42 = vpop.f32.mrf.mxu1 }
  0xa1   :  { %v118_v43 = vadd.f32 %v117_v42, %v88_v40 }
  0xa3   :  { %v177_v45 = vmul.f32 %v233_v41, %v118_v43  ;;  %v153_v54 = vmul.f32 %v118_v43, %v118_v43 }
  0xa5   :  { %v185_v46 = vadd.f32 %v234_v44, %v177_v45  ;;  %v94_v47 = vpop.f32.mrf.mxu2 }
  0xa6   :  { %v123_v48 = vpop.f32.mrf.mxu3 }
  0xa7   :  { %189 = vst [vmem:[%s410_s4] sm:$0xff] %v185_v46  ;;  %v124_v49 = vadd.f32 %v123_v48, %v94_v47  ;;  %v91_v50 = vpop.f32.mrf.mxu0 }
  0xa8   :  { %v120_v51 = vpop.f32.mrf.mxu1 }
  0xa9   :  { %v179_v52 = vmul.f32 %v233_v41, %v124_v49  ;;  %v121_v53 = vadd.f32 %v120_v51, %v91_v50  ;;  %v155_v63 = vmul.f32 %v124_v49, %v124_v49 }
  0xab   :  { %v187_v55 = vadd.f32 %v234_v44, %v179_v52  ;;  %v144_v56 = vadd.f32 %v121_v53, %v118_v43  ;;  %v154_v57 = vmul.f32 %v121_v53, %v121_v53  ;;  %v178_v58 = vmul.f32 %v233_v41, %v121_v53 }
  0xad   :  { %191 = vst [vmem:[%s410_s4 + $0x10] sm:$0xff] %v187_v55  ;;  %v157_v59 = vadd.f32 %v154_v57, %v153_v54  ;;  %v186_v60 = vadd.f32 %v234_v44, %v178_v58  ;;  %v97_v61 = vpop.f32.mrf.mxu2  ;;  %v145_v1 = vadd.f32 %v144_v56, %v124_v49 }
  0xae   :  { %v126_v62 = vpop.f32.mrf.mxu3 }
  0xaf   :  { %190 = vst [vmem:[%s410_s4 + $0x8] sm:$0xff] %v186_v60  ;;  %v127_v0 = vadd.f32 %v126_v62, %v97_v61  ;;  %v158_v4 = vadd.f32 %v157_v59, %v155_v63 }
  0xb1   :  { %v146_v2 = vadd.f32 %v145_v1, %v127_v0  ;;  %v156_v3 = vmul.f32 %v127_v0, %v127_v0  ;;  %v180_v5 = vmul.f32 %v233_v41, %v127_v0 }
  0xb3   :  { %v147_v6 = vrot.slane %v146_v2, 4  ;;  %v159_v7 = vadd.f32 %v158_v4, %v156_v3  ;;  %v188_v8 = vadd.f32 %v234_v44, %v180_v5 }
  0xb5   :  { %v148_v9 = vadd.f32 %v147_v6, %v146_v2  ;;  %v160_v10 = vrot.slane %v159_v7, 4  ;;  %192 = vst [vmem:[%s410_s4 + $0x18] sm:$0xff] %v188_v8 }
  0xb7   :  { %v149_v12 = vrot.slane %v148_v9, 2  ;;  %v161_v13 = vadd.f32 %v160_v10, %v159_v7 }
  0xb9   :  { %v150_v14 = vadd.f32 %v149_v12, %v148_v9  ;;  %v162_v15 = vrot.slane %v161_v13, 2 }
  0xbb   :  { %v163_v17 = vadd.f32 %v162_v15, %v161_v13  ;;  %v151_v18 = vrot.slane %v150_v14, 1 }
  0xbd   :  { %v164_v19 = vrot.slane %v163_v17, 1  ;;  %v152_v21 = vadd.f32 %v151_v18, %v150_v14 }
  0xbf   :  { %v165_v20 = vadd.f32 %v164_v19, %v163_v17 }
  0xc1   :  { %v170_v22 = vsel %vm169_vm0, %v165_v20, 0.0 }
  0xc2   :  { %v171_v23 = vsel %vm168_vm1, %v152_v21, %v170_v22 }
  0xc3   :  { %172 = vst [vmem:[%s411_s5] sm:$0xff] %v171_v23 }

// kernel: conv_decoder_forward.35
= control target key start
LH: loop header
LB: loop body
LE: loop exit
PB: predicated region body
PF: predicated region fallthrough
CT: control target
= control target key end

     0   :  { %s248_s0 = inlined_call_operand.vmem [shape: f32[128,128], index: 0, kind: input, shape index: {}]   ;;  %s249_s1 = inlined_call_operand.vmem [shape: f32[1,128], index: 1, kind: input, shape index: {}]   ;;  %s250_s2 = inlined_call_operand.vmem [shape: f32[1,128], index: 2, kind: input, shape index: {}]   ;;  %s251_s3 = inlined_call_operand.vmem [shape: f32[128,128], index: 3, kind: output, shape index: {}]  }
   0x1   :  { %v14_v0 = vld [vmem:[%s248_s0] sm:$0xff]  ;;  %v15_v3 = vld [vmem:[%s248_s0 + $0x8] sm:$0xff]  ;;  %v16_v6 = vld [vmem:[%s248_s0 + $0x10] sm:$0xff] }
   0x2   :  { %v106_v1 = vld [vmem:[%s249_s1] ss:$0 sm:$0xff]  ;;  %v17_v7 = vld [vmem:[%s248_s0 + $0x18] sm:$0xff]  ;;  %v19_v12 = vld [vmem:[%s248_s0 + $0x28] sm:$0xff] }
   0x3   :  { %v137_v2 = vld [vmem:[%s250_s2] ss:$0 sm:$0xff]  ;;  %v34_v4 = vmul.f32 %v106_v1, %v14_v0  ;;  %v35_v5 = vmul.f32 %v106_v1, %v15_v3  ;;  %v36_v9 = vmul.f32 %v106_v1, %v16_v6  ;;  %v37_v10 = vmul.f32 %v106_v1, %v17_v7  ;;  %v20_v13 = vld [vmem:[%s248_s0 + $0x30] sm:$0xff]  ;;  %v21_v14 = vld [vmem:[%s248_s0 + $0x38] sm:$0xff] }
   0x4   :  { %v18_v8 = vld [vmem:[%s248_s0 + $0x20] sm:$0xff]  ;;  %v39_v17 = vmul.f32 %v106_v1, %v19_v12  ;;  %v40_v18 = vmul.f32 %v106_v1, %v20_v13  ;;  %v41_v22 = vmul.f32 %v106_v1, %v21_v14  ;;  %v23_v24 = vld [vmem:[%s248_s0 + $0x48] sm:$0xff]  ;;  %v24_v29 = vld [vmem:[%s248_s0 + $0x50] sm:$0xff] }
   0x5   :  { %v38_v11 = vmul.f32 %v106_v1, %v18_v8  ;;  %v54_v15 = vadd.f32 %v137_v2, %v34_v4  ;;  %v55_v16 = vadd.f32 %v137_v2, %v35_v5  ;;  %v56_v19 = vadd.f32 %v137_v2, %v36_v9  ;;  %v22_v23 = vld [vmem:[%s248_s0 + $0x40] sm:$0xff]  ;;  %v25_v30 = vld [vmem:[%s248_s0 + $0x58] sm:$0xff]  ;;  %v27_v35 = vld [vmem:[%s248_s0 + $0x68] sm:$0xff] }
   0x6   :  { %v57_v20 = vadd.f32 %v137_v2, %v37_v10  ;;  %v59_v27 = vadd.f32 %v137_v2, %v39_v17  ;;  %v60_v28 = vadd.f32 %v137_v2, %v40_v18  ;;  %v26_v31 = vld [vmem:[%s248_s0 + $0x60] sm:$0xff]  ;;  %v61_v34 = vadd.f32 %v137_v2, %v41_v22  ;;  %v28_v36 = vld [vmem:[%s248_s0 + $0x70] sm:$0xff]  ;;  %v29_v41 = vld [vmem:[%s248_s0 + $0x78] sm:$0xff] }
   0x7   :  { %v58_v21 = vadd.f32 %v137_v2, %v38_v11  ;;  %v70_v25 = vmax.f32 %v54_v15, 0.0  ;;  %v71_v26 = vmax.f32 %v55_v16, 0.0  ;;  %v72_v32 = vmax.f32 %v56_v19, 0.0 }
   0x8   :  { %v73_v33 = vmax.f32 %v57_v20, 0.0  ;;  %v75_v38 = vmax.f32 %v59_v27, 0.0  ;;  %v42_v39 = vmul.f32 %v106_v1, %v22_v23  ;;  %v43_v40 = vmul.f32 %v106_v1, %v23_v24 }
   0x9   :  { %86 = vst [vmem:[%s251_s3] sm:$0xff] %v70_v25  ;;  %v74_v37 = vmax.f32 %v58_v21, 0.0  ;;  %v76_v42 = vmax.f32 %v60_v28, 0.0  ;;  %v44_v43 = vmul.f32 %v106_v1, %v24_v29  ;;  %v45_v44 = vmul.f32 %v106_v1, %v25_v30 }
   0xa   :  { %87 = vst [vmem:[%s251_s3 + $0x8] sm:$0xff] %v71_v26  ;;  %v46_v45 = vmul.f32 %v106_v1, %v26_v31  ;;  %v62_v46 = vadd.f32 %v137_v2, %v42_v39  ;;  %v63_v47 = vadd.f32 %v137_v2, %v43_v40  ;;  %v47_v48 = vmul.f32 %v106_v1, %v27_v35 }
   0xb   :  { %88 = vst [vmem:[%s251_s3 + $0x10] sm:$0xff] %v72_v32  ;;  %v48_v49 = vmul.f32 %v106_v1, %v28_v36  ;;  %v77_v50 = vmax.f32 %v61_v34, 0.0  ;;  %v64_v51 = vadd.f32 %v137_v2, %v44_v43  ;;  %v65_v52 = vadd.f32 %v137_v2, %v45_v44 }
   0xc   :  { %89 = vst [vmem:[%s251_s3 + $0x18] sm:$0xff] %v73_v33  ;;  %v49_v53 = vmul.f32 %v106_v1, %v29_v41  ;;  %v78_v54 = vmax.f32 %v62_v46, 0.0  ;;  %v66_v55 = vadd.f32 %v137_v2, %v46_v45  ;;  %v79_v56 = vmax.f32 %v63_v47, 0.0 }
   0xd   :  { %90 = vst [vmem:[%s251_s3 + $0x20] sm:$0xff] %v74_v37  ;;  %v67_v57 = vadd.f32 %v137_v2, %v47_v48  ;;  %v80_v58 = vmax.f32 %v64_v51, 0.0  ;;  %v68_v59 = vadd.f32 %v137_v2, %v48_v49  ;;  %v81_v60 = vmax.f32 %v65_v52, 0.0 }
   0xe   :  { %91 = vst [vmem:[%s251_s3 + $0x28] sm:$0xff] %v75_v38  ;;  %v69_v61 = vadd.f32 %v137_v2, %v49_v53  ;;  %v82_v62 = vmax.f32 %v66_v55, 0.0 }
   0xf   :  { %92 = vst [vmem:[%s251_s3 + $0x30] sm:$0xff] %v76_v42  ;;  %v83_v63 = vmax.f32 %v67_v57, 0.0  ;;  %v84_v0 = vmax.f32 %v68_v59, 0.0 }
  0x10   :  { %93 = vst [vmem:[%s251_s3 + $0x38] sm:$0xff] %v77_v50  ;;  %v85_v1 = vmax.f32 %v69_v61, 0.0 }
  0x11   :  { %94 = vst [vmem:[%s251_s3 + $0x40] sm:$0xff] %v78_v54 }
  0x12   :  { %95 = vst [vmem:[%s251_s3 + $0x48] sm:$0xff] %v79_v56 }
  0x13   :  { %96 = vst [vmem:[%s251_s3 + $0x50] sm:$0xff] %v80_v58 }
  0x14   :  { %97 = vst [vmem:[%s251_s3 + $0x58] sm:$0xff] %v81_v60 }
  0x15   :  { %98 = vst [vmem:[%s251_s3 + $0x60] sm:$0xff] %v82_v62 }
  0x16   :  { %99 = vst [vmem:[%s251_s3 + $0x68] sm:$0xff] %v83_v63 }
  0x17   :  { %100 = vst [vmem:[%s251_s3 + $0x70] sm:$0xff] %v84_v0 }
  0x18   :  { %101 = vst [vmem:[%s251_s3 + $0x78] sm:$0xff] %v85_v1 }

// kernel: conv_decoder_forward.33
= control target key start
LH: loop header
LB: loop body
LE: loop exit
PB: predicated region body
PF: predicated region fallthrough
CT: control target
= control target key end

     0   :  { %s619_s1 = inlined_call_operand.vmem [shape: f32[128,128], index: 1, kind: input, shape index: {}]   ;;  %s620_s2 = inlined_call_operand.vmem [shape: f32[1,128], index: 2, kind: input, shape index: {}]   ;;  %s621_s3 = inlined_call_operand.vmem [shape: f32[1,128], index: 3, kind: input, shape index: {}]   ;;  %s622_s0 = inlined_call_operand.vmem [shape: f32[128,128], index: 0, kind: input, shape index: {}]   ;;  %s623_s4 = inlined_call_operand.vmem [shape: f32[128,128], index: 4, kind: output, shape index: {0}]   ;;  %s624_s5 = inlined_call_operand.vmem [shape: f32[8,128], index: 5, kind: output, shape index: {1}]  }
   0x1   :  { %v86_v0 = vld [vmem:[%s619_s1 + $0x78] sm:$0xff]  ;;  %v85_v1 = vld [vmem:[%s619_s1 + $0x70] sm:$0xff]  ;;  %v84_v2 = vld [vmem:[%s619_s1 + $0x68] sm:$0xff] }
   0x2   :  { %87 = vmatpush.msra.mxu0 %v86_v0  ;;  %332 = vmatpush.msra.mxu1 %v86_v0  ;;  %v83_v3 = vld [vmem:[%s619_s1 + $0x60] sm:$0xff]  ;;  %v82_v4 = vld [vmem:[%s619_s1 + $0x58] sm:$0xff]  ;;  %v81_v5 = vld [vmem:[%s619_s1 + $0x50] sm:$0xff] }
   0x3   :  { %333 = vmatpush.msra.mxu2 %v86_v0  ;;  %334 = vmatpush.msra.mxu3 %v86_v0  ;;  %v80_v6 = vld [vmem:[%s619_s1 + $0x48] sm:$0xff]  ;;  %v79_v7 = vld [vmem:[%s619_s1 + $0x40] sm:$0xff]  ;;  %v78_v8 = vld [vmem:[%s619_s1 + $0x38] sm:$0xff] }
   0x4   :  { %88 = vmatpush.msra.mxu0 %v85_v1  ;;  %335 = vmatpush.msra.mxu1 %v85_v1  ;;  %v77_v9 = vld [vmem:[%s619_s1 + $0x30] sm:$0xff]  ;;  %v76_v10 = vld [vmem:[%s619_s1 + $0x28] sm:$0xff]  ;;  %v75_v11 = vld [vmem:[%s619_s1 + $0x20] sm:$0xff] }
   0x5   :  { %336 = vmatpush.msra.mxu2 %v85_v1  ;;  %337 = vmatpush.msra.mxu3 %v85_v1  ;;  %v74_v12 = vld [vmem:[%s619_s1 + $0x18] sm:$0xff]  ;;  %v73_v13 = vld [vmem:[%s619_s1 + $0x10] sm:$0xff]  ;;  %v72_v14 = vld [vmem:[%s619_s1 + $0x8] sm:$0xff] }
   0x6   :  { %89 = vmatpush.msra.mxu0 %v84_v2  ;;  %338 = vmatpush.msra.mxu1 %v84_v2  ;;  %v71_v15 = vld [vmem:[%s619_s1] sm:$0xff]  ;;  %v56_v20 = vld [vmem:[%s622_s0 + $0x8] sm:$0xff]  ;;  %v57_v24 = vld [vmem:[%s622_s0 + $0x10] sm:$0xff] }
   0x7   :  { %339 = vmatpush.msra.mxu2 %v84_v2  ;;  %340 = vmatpush.msra.mxu3 %v84_v2  ;;  %v55_v16 = vld [vmem:[%s622_s0] sm:$0xff]  ;;  %v60_v21 = vld [vmem:[%s622_s0 + $0x28] sm:$0xff]  ;;  %v61_v25 = vld [vmem:[%s622_s0 + $0x30] sm:$0xff] }
   0x8   :  { %90 = vmatpush.msra.mxu0 %v83_v3  ;;  %341 = vmatpush.msra.mxu1 %v83_v3  ;;  %v59_v17 = vld [vmem:[%s622_s0 + $0x20] sm:$0xff]  ;;  %v64_v22 = vld [vmem:[%s622_s0 + $0x48] sm:$0xff]  ;;  %v65_v26 = vld [vmem:[%s622_s0 + $0x50] sm:$0xff] }
   0x9   :  { %342 = vmatpush.msra.mxu2 %v83_v3  ;;  %343 = vmatpush.msra.mxu3 %v83_v3  ;;  %v63_v18 = vld [vmem:[%s622_s0 + $0x40] sm:$0xff]  ;;  %v68_v23 = vld [vmem:[%s622_s0 + $0x68] sm:$0xff]  ;;  %v69_v27 = vld [vmem:[%s622_s0 + $0x70] sm:$0xff] }
   0xa   :  { %91 = vmatpush.msra.mxu0 %v82_v4  ;;  %344 = vmatpush.msra.mxu1 %v82_v4  ;;  %v67_v19 = vld [vmem:[%s622_s0 + $0x60] sm:$0xff]  ;;  %v58_v28 = vld [vmem:[%s622_s0 + $0x18] sm:$0xff] }
   0xb   :  { %345 = vmatpush.msra.mxu2 %v82_v4  ;;  %346 = vmatpush.msra.mxu3 %v82_v4  ;;  %v62_v29 = vld [vmem:[%s622_s0 + $0x38] sm:$0xff]  ;;  %v511_v32 = vld [vmem:[%s620_s2] ss:$0 sm:$0xff] }
   0xc   :  { %92 = vmatpush.msra.mxu0 %v81_v5  ;;  %347 = vmatpush.msra.mxu1 %v81_v5  ;;  %v66_v30 = vld [vmem:[%s622_s0 + $0x58] sm:$0xff]  ;;  %v516_v33 = vld [vmem:[%s621_s3] ss:$0 sm:$0xff] }
   0xd   :  { %348 = vmatpush.msra.mxu2 %v81_v5  ;;  %349 = vmatpush.msra.mxu3 %v81_v5  ;;  %v70_v31 = vld [vmem:[%s622_s0 + $0x78] sm:$0xff] }
   0xe   :  { %93 = vmatpush.msra.mxu0 %v80_v6  ;;  %350 = vmatpush.msra.mxu1 %v80_v6 }
   0xf   :  { %351 = vmatpush.msra.mxu2 %v80_v6  ;;  %352 = vmatpush.msra.mxu3 %v80_v6 }
  0x10   :  { %94 = vmatpush.msra.mxu0 %v79_v7  ;;  %353 = vmatpush.msra.mxu1 %v79_v7 }
  0x11   :  { %354 = vmatpush.msra.mxu2 %v79_v7  ;;  %355 = vmatpush.msra.mxu3 %v79_v7 }
  0x12   :  { %95 = vmatpush.msra.mxu0 %v78_v8  ;;  %356 = vmatpush.msra.mxu1 %v78_v8 }
  0x13   :  { %357 = vmatpush.msra.mxu2 %v78_v8  ;;  %358 = vmatpush.msra.mxu3 %v78_v8 }
  0x14   :  { %96 = vmatpush.msra.mxu0 %v77_v9  ;;  %359 = vmatpush.msra.mxu1 %v77_v9 }
  0x15   :  { %360 = vmatpush.msra.mxu2 %v77_v9  ;;  %361 = vmatpush.msra.mxu3 %v77_v9 }
  0x16   :  { %97 = vmatpush.msra.mxu0 %v76_v10  ;;  %362 = vmatpush.msra.mxu1 %v76_v10 }
  0x17   :  { %363 = vmatpush.msra.mxu2 %v76_v10  ;;  %364 = vmatpush.msra.mxu3 %v76_v10 }
  0x18   :  { %98 = vmatpush.msra.mxu0 %v75_v11  ;;  %365 = vmatpush.msra.mxu1 %v75_v11 }
  0x19   :  { %366 = vmatpush.msra.mxu2 %v75_v11  ;;  %367 = vmatpush.msra.mxu3 %v75_v11 }
  0x1a   :  { %99 = vmatpush.msra.mxu0 %v74_v12  ;;  %368 = vmatpush.msra.mxu1 %v74_v12 }
  0x1b   :  { %369 = vmatpush.msra.mxu2 %v74_v12  ;;  %370 = vmatpush.msra.mxu3 %v74_v12 }
  0x1c   :  { %100 = vmatpush.msra.mxu0 %v73_v13  ;;  %371 = vmatpush.msra.mxu1 %v73_v13 }
  0x1d   :  { %372 = vmatpush.msra.mxu2 %v73_v13  ;;  %373 = vmatpush.msra.mxu3 %v73_v13 }
  0x1e   :  { %101 = vmatpush.msra.mxu0 %v72_v14  ;;  %374 = vmatpush.msra.mxu1 %v72_v14 }
  0x1f   :  { %375 = vmatpush.msra.mxu2 %v72_v14  ;;  %376 = vmatpush.msra.mxu3 %v72_v14 }
  0x20   :  { %102 = vmatpush.msra.mxu0 %v71_v15  ;;  %377 = vmatpush.msra.mxu1 %v71_v15 }
  0x21   :  { %103 = vmatmul.f32.vlgmr.msra.gmra.mxu0 %v55_v16  ;;  %115 = vmatmul.f32.vlgmr.msra.gmra.mxu1 %v59_v17 }
  0x22   :  { %378 = vmatpush.msra.mxu2 %v71_v15  ;;  %379 = vmatpush.msra.mxu3 %v71_v15 }
  0x23   :  { %127 = vmatmul.f32.vlgmr.msra.gmra.mxu2 %v63_v18  ;;  %139 = vmatmul.f32.vlgmr.msra.gmra.mxu3 %v67_v19 }
  0x29   :  { %106 = vmatmul.f32.gmra.mxu0 %v56_v20  ;;  %118 = vmatmul.f32.gmra.mxu1 %v60_v21 }
  0x2b   :  { %130 = vmatmul.f32.gmra.mxu2 %v64_v22  ;;  %142 = vmatmul.f32.gmra.mxu3 %v68_v23 }
  0x31   :  { %109 = vmatmul.f32.gmra.mxu0 %v57_v24  ;;  %121 = vmatmul.f32.gmra.mxu1 %v61_v25 }
  0x33   :  { %133 = vmatmul.f32.gmra.mxu2 %v65_v26  ;;  %145 = vmatmul.f32.gmra.mxu3 %v69_v27 }
  0x39   :  { %112 = vmatmul.f32.gmra.mxu0 %v58_v28  ;;  %124 = vmatmul.f32.gmra.mxu1 %v62_v29 }
  0x3b   :  { %136 = vmatmul.f32.gmra.mxu2 %v66_v30  ;;  %148 = vmatmul.f32.gmra.mxu3 %v70_v31 }
  0x9e   :  { %v104_v34 = vpop.f32.mrf.mxu0  ;;  %v116_v35 = vpop.f32.mrf.mxu1 }
  0x9f   :  { %v272_v36 = vmul.f32 %v511_v32, %v104_v34  ;;  %v276_v37 = vmul.f32 %v511_v32, %v116_v35  ;;  %v224_v0 = vmul.f32 %v104_v34, %v104_v34  ;;  %v228_v14 = vmul.f32 %v116_v35, %v116_v35 }
  0xa1   :  { %v292_v38 = vadd.f32 %v516_v33, %v272_v36  ;;  %v296_v39 = vadd.f32 %v516_v33, %v276_v37 }
  0xa3   :  { %308 = vst [vmem:[%s623_s4] sm:$0xff] %v292_v38 }
  0xa4   :  { %312 = vst [vmem:[%s623_s4 + $0x20] sm:$0xff] %v296_v39 }
  0xa6   :  { %v107_v40 = vpop.f32.mrf.mxu0  ;;  %v119_v41 = vpop.f32.mrf.mxu1 }
  0xa7   :  { %v273_v42 = vmul.f32 %v511_v32, %v107_v40  ;;  %v529_v43 = vpop.f32.mrf.mxu2  ;;  %v531_v44 = vpop.f32.mrf.mxu3  ;;  %v277_v45 = vmul.f32 %v511_v32, %v119_v41  ;;  %v225_v59 = vmul.f32 %v107_v40, %v107_v40  ;;  %v203_v1 = vadd.f32 %v107_v40, %v104_v34 }
  0xa8   :  { %v280_v46 = vmul.f32 %v511_v32, %v529_v43  ;;  %v284_v48 = vmul.f32 %v511_v32, %v531_v44  ;;  %v229_v23 = vmul.f32 %v119_v41, %v119_v41  ;;  %v232_v39 = vmul.f32 %v529_v43, %v529_v43 }
  0xa9   :  { %v293_v47 = vadd.f32 %v516_v33, %v273_v42  ;;  %v297_v49 = vadd.f32 %v516_v33, %v277_v45  ;;  %v240_v4 = vadd.f32 %v225_v59, %v224_v0 }
  0xaa   :  { %v300_v50 = vadd.f32 %v516_v33, %v280_v46  ;;  %v304_v51 = vadd.f32 %v516_v33, %v284_v48 }
  0xab   :  { %309 = vst [vmem:[%s623_s4 + $0x8] sm:$0xff] %v293_v47 }
  0xac   :  { %313 = vst [vmem:[%s623_s4 + $0x28] sm:$0xff] %v297_v49 }
  0xad   :  { %316 = vst [vmem:[%s623_s4 + $0x40] sm:$0xff] %v300_v50 }
  0xae   :  { %v110_v52 = vpop.f32.mrf.mxu0  ;;  %v122_v53 = vpop.f32.mrf.mxu1  ;;  %320 = vst [vmem:[%s623_s4 + $0x60] sm:$0xff] %v304_v51 }
  0xaf   :  { %v274_v54 = vmul.f32 %v511_v32, %v110_v52  ;;  %v131_v55 = vpop.f32.mrf.mxu2  ;;  %v555_v56 = vpop.f32.mrf.mxu3  ;;  %v278_v57 = vmul.f32 %v511_v32, %v122_v53  ;;  %v226_v2 = vmul.f32 %v110_v52, %v110_v52  ;;  %v204_v5 = vadd.f32 %v203_v1, %v110_v52 }
  0xb0   :  { %v281_v58 = vmul.f32 %v511_v32, %v131_v55  ;;  %v285_v61 = vmul.f32 %v511_v32, %v555_v56  ;;  %v230_v28 = vmul.f32 %v122_v53, %v122_v53  ;;  %v233_v46 = vmul.f32 %v131_v55, %v131_v55 }
  0xb1   :  { %v294_v60 = vadd.f32 %v516_v33, %v274_v54  ;;  %v298_v62 = vadd.f32 %v516_v33, %v278_v57  ;;  %v241_v8 = vadd.f32 %v240_v4, %v226_v2 }
  0xb2   :  { %v301_v63 = vadd.f32 %v516_v33, %v281_v58  ;;  %v305_v3 = vadd.f32 %v516_v33, %v285_v61 }
  0xb3   :  { %310 = vst [vmem:[%s623_s4 + $0x10] sm:$0xff] %v294_v60 }
  0xb4   :  { %314 = vst [vmem:[%s623_s4 + $0x30] sm:$0xff] %v298_v62 }
  0xb5   :  { %317 = vst [vmem:[%s623_s4 + $0x48] sm:$0xff] %v301_v63 }
  0xb6   :  { %v113_v6 = vpop.f32.mrf.mxu0  ;;  %v125_v7 = vpop.f32.mrf.mxu1  ;;  %321 = vst [vmem:[%s623_s4 + $0x68] sm:$0xff] %v305_v3 }
  0xb7   :  { %v205_v9 = vadd.f32 %v204_v5, %v113_v6  ;;  %v227_v10 = vmul.f32 %v113_v6, %v113_v6  ;;  %v275_v11 = vmul.f32 %v511_v32, %v113_v6  ;;  %v134_v12 = vpop.f32.mrf.mxu2  ;;  %v146_v13 = vpop.f32.mrf.mxu3  ;;  %v279_v15 = vmul.f32 %v511_v32, %v125_v7 }
  0xb8   :  { %v282_v16 = vmul.f32 %v511_v32, %v134_v12  ;;  %v286_v20 = vmul.f32 %v511_v32, %v146_v13  ;;  %v231_v30 = vmul.f32 %v125_v7, %v125_v7  ;;  %v234_v50 = vmul.f32 %v134_v12, %v134_v12 }
  0xb9   :  { %v206_v17 = vadd.f32 %v205_v9, %v116_v35  ;;  %v242_v18 = vadd.f32 %v241_v8, %v227_v10  ;;  %v295_v19 = vadd.f32 %v516_v33, %v275_v11  ;;  %v299_v21 = vadd.f32 %v516_v33, %v279_v15 }
  0xba   :  { %v302_v22 = vadd.f32 %v516_v33, %v282_v16  ;;  %v306_v26 = vadd.f32 %v516_v33, %v286_v20  ;;  %v238_v60 = vmul.f32 %v146_v13, %v146_v13  ;;  %v261_v5 = vlaneseq }
  0xbb   :  { %v243_v24 = vadd.f32 %v242_v18, %v228_v14  ;;  %311 = vst [vmem:[%s623_s4 + $0x18] sm:$0xff] %v295_v19  ;;  %v207_v25 = vadd.f32 %v206_v17, %v119_v41 }
  0xbc   :  { %315 = vst [vmem:[%s623_s4 + $0x38] sm:$0xff] %v299_v21  ;;  %v262_v9 = vshrl.u32 %v261_v5, 7 }
  0xbd   :  { %v208_v27 = vadd.f32 %v207_v25, %v122_v53  ;;  %v244_v29 = vadd.f32 %v243_v24, %v229_v23  ;;  %318 = vst [vmem:[%s623_s4 + $0x50] sm:$0xff] %v302_v22 }
  0xbe   :  { %322 = vst [vmem:[%s623_s4 + $0x70] sm:$0xff] %v306_v26  ;;  %vm264_vm0 = vcmp.eq.s32.totalorder %v262_v9, 1  ;;  %vm263_vm1 = vcmp.eq.s32.totalorder %v262_v9, 0 }
  0xbf   :  { %v245_v31 = vadd.f32 %v244_v29, %v230_v28  ;;  %v209_v34 = vadd.f32 %v208_v27, %v125_v7  ;;  %v137_v35 = vpop.f32.mrf.mxu2  ;;  %v149_v36 = vpop.f32.mrf.mxu3 }
  0xc0   :  { %v283_v37 = vmul.f32 %v511_v32, %v137_v35  ;;  %v287_v38 = vmul.f32 %v511_v32, %v149_v36  ;;  %v235_v51 = vmul.f32 %v137_v35, %v137_v35  ;;  %v239_v62 = vmul.f32 %v149_v36, %v149_v36 }
  0xc1   :  { %v210_v40 = vadd.f32 %v209_v34, %v529_v43  ;;  %v246_v41 = vadd.f32 %v245_v31, %v231_v30 }
  0xc2   :  { %v303_v42 = vadd.f32 %v516_v33, %v283_v37  ;;  %v307_v45 = vadd.f32 %v516_v33, %v287_v38  ;;  %v236_v33 = vmul.f32 %v531_v44, %v531_v44 }
  0xc3   :  { %v247_v47 = vadd.f32 %v246_v41, %v232_v39  ;;  %v211_v48 = vadd.f32 %v210_v40, %v131_v55  ;;  %v237_v55 = vmul.f32 %v555_v56, %v555_v56 }
  0xc4   :  { %319 = vst [vmem:[%s623_s4 + $0x58] sm:$0xff] %v303_v42 }
  0xc5   :  { %v212_v49 = vadd.f32 %v211_v48, %v134_v12  ;;  %v248_v32 = vadd.f32 %v247_v47, %v233_v46  ;;  %323 = vst [vmem:[%s623_s4 + $0x78] sm:$0xff] %v307_v45 }
  0xc7   :  { %v249_v43 = vadd.f32 %v248_v32, %v234_v50  ;;  %v213_v52 = vadd.f32 %v212_v49, %v137_v35 }
  0xc9   :  { %v214_v53 = vadd.f32 %v213_v52, %v531_v44  ;;  %v250_v54 = vadd.f32 %v249_v43, %v235_v51 }
  0xcb   :  { %v251_v57 = vadd.f32 %v250_v54, %v236_v33  ;;  %v215_v58 = vadd.f32 %v214_v53, %v555_v56 }
  0xcd   :  { %v216_v59 = vadd.f32 %v215_v58, %v146_v13  ;;  %v252_v61 = vadd.f32 %v251_v57, %v237_v55 }
  0xcf   :  { %v253_v63 = vadd.f32 %v252_v61, %v238_v60  ;;  %v217_v0 = vadd.f32 %v216_v59, %v149_v36 }
  0xd1   :  { %v218_v1 = vrot.slane %v217_v0, 4  ;;  %v254_v2 = vadd.f32 %v253_v63, %v239_v62 }
  0xd3   :  { %v219_v3 = vadd.f32 %v218_v1, %v217_v0  ;;  %v255_v4 = vrot.slane %v254_v2, 4 }
  0xd5   :  { %v220_v6 = vrot.slane %v219_v3, 2  ;;  %v256_v44 = vadd.f32 %v255_v4, %v254_v2 }
  0xd7   :  { %v221_v7 = vadd.f32 %v220_v6, %v219_v3  ;;  %v257_v8 = vrot.slane %v256_v44, 2 }
  0xd9   :  { %v258_v10 = vadd.f32 %v257_v8, %v256_v44  ;;  %v222_v11 = vrot.slane %v221_v7, 1 }
  0xdb   :  { %v259_v12 = vrot.slane %v258_v10, 1  ;;  %v223_v13 = vadd.f32 %v222_v11, %v221_v7 }
  0xdd   :  { %v260_v56 = vadd.f32 %v259_v12, %v258_v10 }
  0xdf   :  { %v265_v14 = vsel %vm264_vm0, %v260_v56, 0.0 }
  0xe0   :  { %v266_v15 = vsel %vm263_vm1, %v223_v13, %v265_v14 }
  0xe1   :  { %267 = vst [vmem:[%s624_s5] sm:$0xff] %v266_v15 }

// kernel: conv_decoder_forward.39
= control target key start
LH: loop header
LB: loop body
LE: loop exit
PB: predicated region body
PF: predicated region fallthrough
CT: control target
= control target key end

     0   :  { %11 = vsyncpa [#allocation4], 0  ;;  %s2321_s0 = inlined_call_operand.vmem [shape: f32[2048,512], index: 0, kind: input, shape index: {}]   ;;  %s2322_s1 = inlined_call_operand.vmem [shape: f32[512,128], index: 1, kind: input, shape index: {}]   ;;  %s2323_s2 = inlined_call_operand.vmem [shape: f32[1,128], index: 2, kind: input, shape index: {}]   ;;  %s2324_s3 = inlined_call_operand.vmem [shape: f32[1,128], index: 3, kind: input, shape index: {}]   ;;  %s2325_s4 = inlined_call_operand.vmem [shape: f32[2048,128], index: 4, kind: output, shape index: {0}]   ;;  %s2326_s5 = inlined_call_operand.hbm [shape: f32[64,128], index: 5, kind: output, shape index: {1}]  }
   0x1   :  { %13 = vsyncpa [#allocation4 + $0x1], 0  ;;  %s1744_s18 = smov 0   ;;  %s1746_s19 = smov 0  }
   0x2   :  { %s1748_s20 = smov 0   ;;  %s1750_s21 = smov 0  }
   0x3   :  { %s1752_s22 = smov 0   ;;  %s1754_s23 = smov 0  }
   0x4 LB: > { %s1556_s24 = sadd.s32 4294967295, %s1712_s23   ;;  %s1557_s25 = sadd.s32 4294967294, %s1712_s23   ;;  %s1712_s23 = sphi %s1754_s23, %s19_s23   ;;  %s1708_s22 = sphi %s1752_s22, %s2334_s22   ;;  %s1704_s21 = sphi %s1750_s21, %s2333_s21   ;;  %s1700_s20 = sphi %s1748_s20, %s2332_s20   ;;  %s1696_s19 = sphi %s1746_s19, %s2331_s19   ;;  %s1692_s18 = sphi %s1744_s18, %s2330_s18  }
   0x5   : > { %s38_s26 = sadd.s32 1, %s1708_s22  ;;  %s183_s27 = sadd.s32 1, %s1700_s20 }
   0x6   : > { %p40_p0 = scmp.ge.s32.totalorder %s38_s26, 8  ;;  %p193_p1 = scmp.ne.s32.totalorder %s1700_s20, %s1696_s19 }
   0x7   : > { %p194_p2 = scmp.eq.s32.totalorder %s1556_s24, 7  ;;  %p199_p3 = scmp.ne.s32.totalorder %s1696_s19, %s1692_s18 }
   0x8   : > { %s2336_s26 = smov (%p40_p0, %s38_s26), 0  ;;  %p200_p5 = scmp.eq.s32.totalorder %s1557_s25, 7 }
   0x9   : > { %p1784_p4 = por %p194_p2, %p193_p1  ;;  %s178_s29 = ssub.s32 %s1708_s22, %s2336_s26 }
   0xa   : > { %p1563_p6 = scmp.ge.s32.totalorder %s1712_s23, 1  ;;  %p181_p7 = scmp.eq.s32.totalorder %s178_s29, 0 }
   0xb   : > { %p1791_p8 = por %p200_p5, %p199_p3  ;;  %p257_p9 = scmp.lt.s32.totalorder %s1712_s23, 9 }
   0xc   : > { %s1797_s6 = scalar_select %p181_p7, %s1700_s20, %s183_s27  }
   0xd   : > { %p258_p10 = pnand %p1563_p6, %p257_p9 }
   0xe   : > { %s1565_s7 = sshll.u32 (!%p258_p10), %s1704_s21, 5  ;;  %s309_s9 = sand.u32 (!%p258_p10), 1, %s1696_s19  }
   0xf   : > { %261 = sbr.rel (%p258_p10) target bundleno = 458 (0x1ca), region = 36  ;;  %p1910_p11 = scmp.lt.s32.totalorder (!%p258_p10), %s1565_s7, 255 }
  0x10   : > { %s1564_s10 = sshll.u32 (!%p258_p10), %s309_s9, 3  ;;  %s1571_s11 = sshll.u32 (!%p258_p10), %s1704_s21, 3 }
  0x11   : > { %s311_s16 = scalar_lea.vmem (!%p258_p10), [#allocation3], %s1564_s10  ;;  %s1385_s21 = scalar_lea.sflag (!%p258_p10), [#allocation4], %s309_s9 }
  0x12   : > { %s1402_s17 = sshll.u32 (!%p258_p10), %s311_s16, 4  ;;  %s1654_s29 = scalar_lea.hbm (!%p258_p10), %s2326_s5, 64  ;;  %s1403_s17 = int_to_ptr.vmem [resolvable:$true] %s1402_s17 }
  0x14   : > { %v591_v0 = vld [vmem:[%s2322_s1 + $0x178] sm:$0xff]  ;;  %v590_v1 = vld [vmem:[%s2322_s1 + $0x170] sm:$0xff]  ;;  %v589_v5 = vld [vmem:[%s2322_s1 + $0x168] sm:$0xff]  ;;  %s2338_s7 = smov (!%p1910_p11, %s1565_s7), 255 }
  0x15   : > { %v607_v2 = vld [vmem:[%s2322_s1 + $0x1f8] sm:$0xff]  ;;  %834 = vmatpush.msra.mxu2 %v591_v0  ;;  %v606_v6 = vld [vmem:[%s2322_s1 + $0x1f0] sm:$0xff]  ;;  %v605_v9 = vld [vmem:[%s2322_s1 + $0x1e8] sm:$0xff]  ;;  %s1574_s12 = sshll.u32 %s2338_s7, 5  ;;  %s1569_s27 = sshll.u32 %s2338_s7, 3 }
  0x16   : > { %947 = vmatpush.msra.mxu3 %v607_v2  ;;  %v559_v3 = vld [vmem:[%s2322_s1 + $0x78] sm:$0xff]  ;;  %v558_v7 = vld [vmem:[%s2322_s1 + $0x70] sm:$0xff]  ;;  %v557_v10 = vld [vmem:[%s2322_s1 + $0x68] sm:$0xff]  ;;  %s1990_s14 = scalar_lea.vmem %s2321_s0, %s1574_s12  ;;  %s2097_s25 = scalar_lea.vmem %s2325_s4, %s1569_s27 }
  0x17   : > { %v575_v4 = vld [vmem:[%s2322_s1 + $0xf8] sm:$0xff]  ;;  %608 = vmatpush.msra.mxu0 %v559_v3  ;;  %v574_v8 = vld [vmem:[%s2322_s1 + $0xf0] sm:$0xff]  ;;  %835 = vmatpush.msra.mxu2 %v590_v1  ;;  %v588_v11 = vld [vmem:[%s2322_s1 + $0x160] sm:$0xff]  ;;  %s1400_s27 = scalar_lea.hbm %s2326_s5, %s1571_s11 }
  0x18   : > { %721 = vmatpush.msra.mxu1 %v575_v4  ;;  %948 = vmatpush.msra.mxu3 %v606_v6  ;;  %v573_v12 = vld [vmem:[%s2322_s1 + $0xe8] sm:$0xff]  ;;  %v604_v13 = vld [vmem:[%s2322_s1 + $0x1e0] sm:$0xff]  ;;  %v587_v16 = vld [vmem:[%s2322_s1 + $0x158] sm:$0xff]  ;;  %s1404_s24 = sshll.u32 %s1400_s27, 4  ;;  %s1405_s24 = int_to_ptr.hbm [resolvable:$true] %s1404_s24 }
  0x19   : > { %609 = vmatpush.msra.mxu0 %v558_v7  ;;  %836 = vmatpush.msra.mxu2 %v589_v5  ;;  %v556_v14 = vld [vmem:[%s2322_s1 + $0x60] sm:$0xff]  ;;  %v603_v17 = vld [vmem:[%s2322_s1 + $0x1d8] sm:$0xff]  ;;  %v586_v20 = vld [vmem:[%s2322_s1 + $0x150] sm:$0xff]  ;;  %s1648_s7 = sshra.s32 %s1405_s24, 4  ;;  %s1649_s7 = int_to_ptr.hbm [resolvable:$true] %s1648_s7 }
  0x1a   : > { %722 = vmatpush.msra.mxu1 %v574_v8  ;;  %949 = vmatpush.msra.mxu3 %v605_v9  ;;  %v572_v15 = vld [vmem:[%s2322_s1 + $0xe0] sm:$0xff]  ;;  %v555_v18 = vld [vmem:[%s2322_s1 + $0x58] sm:$0xff]  ;;  %v602_v21 = vld [vmem:[%s2322_s1 + $0x1d0] sm:$0xff]  ;;  %p1655_p1 = scmp.lt.s32.totalorder %s1649_s7, %s2326_s5 }
  0x1b   : > { %610 = vmatpush.msra.mxu0 %v557_v10  ;;  %837 = vmatpush.msra.mxu2 %v588_v11  ;;  %v571_v19 = vld [vmem:[%s2322_s1 + $0xd8] sm:$0xff]  ;;  %v554_v22 = vld [vmem:[%s2322_s1 + $0x50] sm:$0xff]  ;;  %v585_v24 = vld [vmem:[%s2322_s1 + $0x148] sm:$0xff] }
  0x1c   : > { %723 = vmatpush.msra.mxu1 %v573_v12  ;;  %950 = vmatpush.msra.mxu3 %v604_v13  ;;  %v570_v23 = vld [vmem:[%s2322_s1 + $0xd0] sm:$0xff]  ;;  %v601_v25 = vld [vmem:[%s2322_s1 + $0x1c8] sm:$0xff]  ;;  %v584_v28 = vld [vmem:[%s2322_s1 + $0x140] sm:$0xff] }
  0x1d   : > { %611 = vmatpush.msra.mxu0 %v556_v14  ;;  %838 = vmatpush.msra.mxu2 %v587_v16  ;;  %v553_v26 = vld [vmem:[%s2322_s1 + $0x48] sm:$0xff]  ;;  %v600_v29 = vld [vmem:[%s2322_s1 + $0x1c0] sm:$0xff]  ;;  %v583_v32 = vld [vmem:[%s2322_s1 + $0x138] sm:$0xff] }
  0x1e   : > { %724 = vmatpush.msra.mxu1 %v572_v15  ;;  %951 = vmatpush.msra.mxu3 %v603_v17  ;;  %v569_v27 = vld [vmem:[%s2322_s1 + $0xc8] sm:$0xff]  ;;  %v552_v30 = vld [vmem:[%s2322_s1 + $0x40] sm:$0xff]  ;;  %v599_v33 = vld [vmem:[%s2322_s1 + $0x1b8] sm:$0xff] }
  0x1f   : > { %612 = vmatpush.msra.mxu0 %v555_v18  ;;  %839 = vmatpush.msra.mxu2 %v586_v20  ;;  %v568_v31 = vld [vmem:[%s2322_s1 + $0xc0] sm:$0xff]  ;;  %v551_v34 = vld [vmem:[%s2322_s1 + $0x38] sm:$0xff]  ;;  %v582_v36 = vld [vmem:[%s2322_s1 + $0x130] sm:$0xff] }
  0x20   : > { %725 = vmatpush.msra.mxu1 %v571_v19  ;;  %952 = vmatpush.msra.mxu3 %v602_v21  ;;  %v567_v35 = vld [vmem:[%s2322_s1 + $0xb8] sm:$0xff]  ;;  %v598_v37 = vld [vmem:[%s2322_s1 + $0x1b0] sm:$0xff]  ;;  %v581_v40 = vld [vmem:[%s2322_s1 + $0x128] sm:$0xff] }
  0x21   : > { %613 = vmatpush.msra.mxu0 %v554_v22  ;;  %840 = vmatpush.msra.mxu2 %v585_v24  ;;  %v550_v38 = vld [vmem:[%s2322_s1 + $0x30] sm:$0xff]  ;;  %v597_v41 = vld [vmem:[%s2322_s1 + $0x1a8] sm:$0xff]  ;;  %v580_v44 = vld [vmem:[%s2322_s1 + $0x120] sm:$0xff] }
  0x22   : > { %726 = vmatpush.msra.mxu1 %v570_v23  ;;  %953 = vmatpush.msra.mxu3 %v601_v25  ;;  %v566_v39 = vld [vmem:[%s2322_s1 + $0xb0] sm:$0xff]  ;;  %v549_v42 = vld [vmem:[%s2322_s1 + $0x28] sm:$0xff]  ;;  %v596_v45 = vld [vmem:[%s2322_s1 + $0x1a0] sm:$0xff] }
  0x23   : > { %614 = vmatpush.msra.mxu0 %v553_v26  ;;  %841 = vmatpush.msra.mxu2 %v584_v28  ;;  %v565_v43 = vld [vmem:[%s2322_s1 + $0xa8] sm:$0xff]  ;;  %v548_v46 = vld [vmem:[%s2322_s1 + $0x20] sm:$0xff]  ;;  %v579_v48 = vld [vmem:[%s2322_s1 + $0x118] sm:$0xff] }
  0x24   : > { %727 = vmatpush.msra.mxu1 %v569_v27  ;;  %954 = vmatpush.msra.mxu3 %v600_v29  ;;  %v564_v47 = vld [vmem:[%s2322_s1 + $0xa0] sm:$0xff]  ;;  %v595_v49 = vld [vmem:[%s2322_s1 + $0x198] sm:$0xff]  ;;  %v578_v52 = vld [vmem:[%s2322_s1 + $0x110] sm:$0xff] }
  0x25   : > { %615 = vmatpush.msra.mxu0 %v552_v30  ;;  %842 = vmatpush.msra.mxu2 %v583_v32  ;;  %v547_v50 = vld [vmem:[%s2322_s1 + $0x18] sm:$0xff]  ;;  %v594_v53 = vld [vmem:[%s2322_s1 + $0x190] sm:$0xff]  ;;  %v577_v56 = vld [vmem:[%s2322_s1 + $0x108] sm:$0xff] }
  0x26   : > { %728 = vmatpush.msra.mxu1 %v568_v31  ;;  %955 = vmatpush.msra.mxu3 %v599_v33  ;;  %v563_v51 = vld [vmem:[%s2322_s1 + $0x98] sm:$0xff]  ;;  %v546_v54 = vld [vmem:[%s2322_s1 + $0x10] sm:$0xff]  ;;  %v593_v57 = vld [vmem:[%s2322_s1 + $0x188] sm:$0xff] }
  0x27   : > { %616 = vmatpush.msra.mxu0 %v551_v34  ;;  %843 = vmatpush.msra.mxu2 %v582_v36  ;;  %v562_v55 = vld [vmem:[%s2322_s1 + $0x90] sm:$0xff]  ;;  %v545_v58 = vld [vmem:[%s2322_s1 + $0x8] sm:$0xff]  ;;  %v576_v60 = vld [vmem:[%s2322_s1 + $0x100] sm:$0xff] }
  0x28   : > { %729 = vmatpush.msra.mxu1 %v567_v35  ;;  %956 = vmatpush.msra.mxu3 %v598_v37  ;;  %v561_v59 = vld [vmem:[%s2322_s1 + $0x88] sm:$0xff]  ;;  %v592_v61 = vld [vmem:[%s2322_s1 + $0x180] sm:$0xff]  ;;  %v418_v62 = vld [vmem:[%s1990_s14 + $0x10] sm:$0xff] }
  0x29   : > { %617 = vmatpush.msra.mxu0 %v550_v38  ;;  %844 = vmatpush.msra.mxu2 %v581_v40  ;;  %v419_v63 = vld [vmem:[%s1990_s14 + $0x18] sm:$0xff]  ;;  %v544_v0 = vld [vmem:[%s2322_s1] sm:$0xff]  ;;  %v417_v3 = vld [vmem:[%s1990_s14 + $0x8] sm:$0xff] }
  0x2a   : > { %730 = vmatpush.msra.mxu1 %v566_v39  ;;  %957 = vmatpush.msra.mxu3 %v597_v41  ;;  %v560_v1 = vld [vmem:[%s2322_s1 + $0x80] sm:$0xff]  ;;  %v422_v4 = vld [vmem:[%s1990_s14 + $0x30] sm:$0xff]  ;;  %v423_v5 = vld [vmem:[%s1990_s14 + $0x38] sm:$0xff] }
  0x2b   : > { %618 = vmatpush.msra.mxu0 %v549_v42  ;;  %845 = vmatpush.msra.mxu2 %v580_v44  ;;  %v416_v2 = vld [vmem:[%s1990_s14] sm:$0xff]  ;;  %v421_v7 = vld [vmem:[%s1990_s14 + $0x28] sm:$0xff]  ;;  %v426_v8 = vld [vmem:[%s1990_s14 + $0x50] sm:$0xff] }
  0x2c   : > { %731 = vmatpush.msra.mxu1 %v565_v43  ;;  %958 = vmatpush.msra.mxu3 %v596_v45  ;;  %v420_v6 = vld [vmem:[%s1990_s14 + $0x20] sm:$0xff]  ;;  %v427_v9 = vld [vmem:[%s1990_s14 + $0x58] sm:$0xff]  ;;  %v425_v11 = vld [vmem:[%s1990_s14 + $0x48] sm:$0xff] }
  0x2d   : > { %619 = vmatpush.msra.mxu0 %v548_v46  ;;  %846 = vmatpush.msra.mxu2 %v579_v48  ;;  %v424_v10 = vld [vmem:[%s1990_s14 + $0x40] sm:$0xff]  ;;  %v430_v12 = vld [vmem:[%s1990_s14 + $0x70] sm:$0xff]  ;;  %v431_v13 = vld [vmem:[%s1990_s14 + $0x78] sm:$0xff] }
  0x2e   : > { %732 = vmatpush.msra.mxu1 %v564_v47  ;;  %959 = vmatpush.msra.mxu3 %v595_v49  ;;  %v428_v14 = vld [vmem:[%s1990_s14 + $0x60] sm:$0xff]  ;;  %v429_v15 = vld [vmem:[%s1990_s14 + $0x68] sm:$0xff]  ;;  %v434_v16 = vld [vmem:[%s1990_s14 + $0x90] sm:$0xff] }
  0x2f   : > { %620 = vmatpush.msra.mxu0 %v547_v50  ;;  %847 = vmatpush.msra.mxu2 %v578_v52  ;;  %v435_v17 = vld [vmem:[%s1990_s14 + $0x98] sm:$0xff]  ;;  %v432_v18 = vld [vmem:[%s1990_s14 + $0x80] sm:$0xff]  ;;  %v433_v19 = vld [vmem:[%s1990_s14 + $0x88] sm:$0xff] }
  0x30   : > { %733 = vmatpush.msra.mxu1 %v563_v51  ;;  %960 = vmatpush.msra.mxu3 %v594_v53  ;;  %v438_v20 = vld [vmem:[%s1990_s14 + $0xb0] sm:$0xff]  ;;  %v439_v21 = vld [vmem:[%s1990_s14 + $0xb8] sm:$0xff]  ;;  %v436_v22 = vld [vmem:[%s1990_s14 + $0xa0] sm:$0xff] }
  0x31   : > { %621 = vmatpush.msra.mxu0 %v546_v54  ;;  %848 = vmatpush.msra.mxu2 %v577_v56  ;;  %v437_v23 = vld [vmem:[%s1990_s14 + $0xa8] sm:$0xff]  ;;  %v442_v24 = vld [vmem:[%s1990_s14 + $0xd0] sm:$0xff]  ;;  %v443_v25 = vld [vmem:[%s1990_s14 + $0xd8] sm:$0xff] }
  0x32   : > { %734 = vmatpush.msra.mxu1 %v562_v55  ;;  %961 = vmatpush.msra.mxu3 %v593_v57  ;;  %v440_v26 = vld [vmem:[%s1990_s14 + $0xc0] sm:$0xff]  ;;  %v441_v27 = vld [vmem:[%s1990_s14 + $0xc8] sm:$0xff]  ;;  %v446_v28 = vld [vmem:[%s1990_s14 + $0xf0] sm:$0xff] }
  0x33   : > { %622 = vmatpush.msra.mxu0 %v545_v58  ;;  %849 = vmatpush.msra.mxu2 %v576_v60  ;;  %v447_v29 = vld [vmem:[%s1990_s14 + $0xf8] sm:$0xff]  ;;  %v444_v30 = vld [vmem:[%s1990_s14 + $0xe0] sm:$0xff]  ;;  %v445_v31 = vld [vmem:[%s1990_s14 + $0xe8] sm:$0xff] }
  0x34   : > { %735 = vmatpush.msra.mxu1 %v561_v59  ;;  %962 = vmatpush.msra.mxu3 %v592_v61  ;;  %v450_v32 = vld [vmem:[%s1990_s14 + $0x110] sm:$0xff]  ;;  %v451_v33 = vld [vmem:[%s1990_s14 + $0x118] sm:$0xff]  ;;  %v448_v34 = vld [vmem:[%s1990_s14 + $0x100] sm:$0xff] }
  0x35   : > { %850 = vmatmul.f32.vlgmr.msra.gmra.mxu2 %v418_v62  ;;  %963 = vmatmul.f32.vlgmr.msra.gmra.mxu3 %v419_v63  ;;  %v449_v35 = vld [vmem:[%s1990_s14 + $0x108] sm:$0xff]  ;;  %v454_v36 = vld [vmem:[%s1990_s14 + $0x130] sm:$0xff]  ;;  %v455_v37 = vld [vmem:[%s1990_s14 + $0x138] sm:$0xff] }
  0x36   : > { %623 = vmatpush.msra.mxu0 %v544_v0  ;;  %736 = vmatpush.msra.mxu1 %v560_v1  ;;  %v452_v38 = vld [vmem:[%s1990_s14 + $0x120] sm:$0xff]  ;;  %v453_v39 = vld [vmem:[%s1990_s14 + $0x128] sm:$0xff]  ;;  %v458_v40 = vld [vmem:[%s1990_s14 + $0x150] sm:$0xff] }
  0x37   : > { %624 = vmatmul.f32.vlgmr.msra.gmra.mxu0 %v416_v2  ;;  %737 = vmatmul.f32.vlgmr.msra.gmra.mxu1 %v417_v3  ;;  %v459_v41 = vld [vmem:[%s1990_s14 + $0x158] sm:$0xff]  ;;  %v456_v42 = vld [vmem:[%s1990_s14 + $0x140] sm:$0xff]  ;;  %v457_v43 = vld [vmem:[%s1990_s14 + $0x148] sm:$0xff] }
  0x38   : > { %v462_v44 = vld [vmem:[%s1990_s14 + $0x170] sm:$0xff]  ;;  %v463_v45 = vld [vmem:[%s1990_s14 + $0x178] sm:$0xff]  ;;  %v460_v46 = vld [vmem:[%s1990_s14 + $0x160] sm:$0xff] }
  0x39   : > { %v461_v47 = vld [vmem:[%s1990_s14 + $0x168] sm:$0xff]  ;;  %v466_v48 = vld [vmem:[%s1990_s14 + $0x190] sm:$0xff]  ;;  %v467_v49 = vld [vmem:[%s1990_s14 + $0x198] sm:$0xff] }
  0x3a   : > { %v464_v50 = vld [vmem:[%s1990_s14 + $0x180] sm:$0xff]  ;;  %v465_v51 = vld [vmem:[%s1990_s14 + $0x188] sm:$0xff]  ;;  %v470_v52 = vld [vmem:[%s1990_s14 + $0x1b0] sm:$0xff] }
  0x3b   : > { %v471_v53 = vld [vmem:[%s1990_s14 + $0x1b8] sm:$0xff]  ;;  %v468_v54 = vld [vmem:[%s1990_s14 + $0x1a0] sm:$0xff]  ;;  %v469_v55 = vld [vmem:[%s1990_s14 + $0x1a8] sm:$0xff] }
  0x3c   : > { %v474_v56 = vld [vmem:[%s1990_s14 + $0x1d0] sm:$0xff]  ;;  %v475_v57 = vld [vmem:[%s1990_s14 + $0x1d8] sm:$0xff]  ;;  %v472_v58 = vld [vmem:[%s1990_s14 + $0x1c0] sm:$0xff] }
  0x3d   : > { %853 = vmatmul.f32.gmra.mxu2 %v422_v4  ;;  %966 = vmatmul.f32.gmra.mxu3 %v423_v5  ;;  %v473_v59 = vld [vmem:[%s1990_s14 + $0x1c8] sm:$0xff]  ;;  %v478_v60 = vld [vmem:[%s1990_s14 + $0x1f0] sm:$0xff]  ;;  %v479_v61 = vld [vmem:[%s1990_s14 + $0x1f8] sm:$0xff] }
  0x3e   : > { %v476_v62 = vld [vmem:[%s1990_s14 + $0x1e0] sm:$0xff]  ;;  %v477_v63 = vld [vmem:[%s1990_s14 + $0x1e8] sm:$0xff]  ;;  %v482_v0 = vld [vmem:[%s1990_s14 + $0x210] sm:$0xff] }
  0x3f   : > { %627 = vmatmul.f32.gmra.mxu0 %v420_v6  ;;  %740 = vmatmul.f32.gmra.mxu1 %v421_v7  ;;  %v483_v1 = vld [vmem:[%s1990_s14 + $0x218] sm:$0xff]  ;;  %v480_v4 = vld [vmem:[%s1990_s14 + $0x200] sm:$0xff]  ;;  %v481_v5 = vld [vmem:[%s1990_s14 + $0x208] sm:$0xff] }
  0x45   : > { %856 = vmatmul.f32.gmra.mxu2 %v426_v8  ;;  %969 = vmatmul.f32.gmra.mxu3 %v427_v9 }
  0x47   : > { %630 = vmatmul.f32.gmra.mxu0 %v424_v10  ;;  %743 = vmatmul.f32.gmra.mxu1 %v425_v11  ;;  %v2081_v10 = vld [vmem:[%s2323_s2] ss:$0 sm:$0xff]  ;;  %v486_v11 = vld [vmem:[%s1990_s14 + $0x230] sm:$0xff] }
  0x4d   : > { %859 = vmatmul.f32.gmra.mxu2 %v430_v12  ;;  %972 = vmatmul.f32.gmra.mxu3 %v431_v13  ;;  %v487_v12 = vld [vmem:[%s1990_s14 + $0x238] sm:$0xff] }
  0x4f   : > { %633 = vmatmul.f32.gmra.mxu0 %v428_v14  ;;  %746 = vmatmul.f32.gmra.mxu1 %v429_v15  ;;  %v2089_v14 = vld [vmem:[%s2324_s3] ss:$0 sm:$0xff] }
  0x55   : > { %862 = vmatmul.f32.gmra.mxu2 %v434_v16  ;;  %975 = vmatmul.f32.gmra.mxu3 %v435_v17  ;;  %v484_v17 = vld [vmem:[%s1990_s14 + $0x220] sm:$0xff] }
  0x57   : > { %636 = vmatmul.f32.gmra.mxu0 %v432_v18  ;;  %749 = vmatmul.f32.gmra.mxu1 %v433_v19  ;;  %v485_v18 = vld [vmem:[%s1990_s14 + $0x228] sm:$0xff] }
  0x5d   : > { %865 = vmatmul.f32.gmra.mxu2 %v438_v20  ;;  %978 = vmatmul.f32.gmra.mxu3 %v439_v21 }
  0x5f   : > { %639 = vmatmul.f32.gmra.mxu0 %v436_v22  ;;  %752 = vmatmul.f32.gmra.mxu1 %v437_v23 }
  0x65   : > { %868 = vmatmul.f32.gmra.mxu2 %v442_v24  ;;  %981 = vmatmul.f32.gmra.mxu3 %v443_v25  ;;  %v490_v25 = vld [vmem:[%s1990_s14 + $0x250] sm:$0xff] }
  0x67   : > { %642 = vmatmul.f32.gmra.mxu0 %v440_v26  ;;  %755 = vmatmul.f32.gmra.mxu1 %v441_v27  ;;  %v491_v27 = vld [vmem:[%s1990_s14 + $0x258] sm:$0xff] }
  0x6d   : > { %871 = vmatmul.f32.gmra.mxu2 %v446_v28  ;;  %984 = vmatmul.f32.gmra.mxu3 %v447_v29 }
  0x6f   : > { %645 = vmatmul.f32.gmra.mxu0 %v444_v30  ;;  %758 = vmatmul.f32.gmra.mxu1 %v445_v31  ;;  %v488_v31 = vld [vmem:[%s1990_s14 + $0x240] sm:$0xff] }
  0x75   : > { %874 = vmatmul.f32.gmra.mxu2 %v450_v32  ;;  %987 = vmatmul.f32.gmra.mxu3 %v451_v33  ;;  %v489_v32 = vld [vmem:[%s1990_s14 + $0x248] sm:$0xff] }
  0x77   : > { %648 = vmatmul.f32.gmra.mxu0 %v448_v34  ;;  %761 = vmatmul.f32.gmra.mxu1 %v449_v35 }
  0x7d   : > { %877 = vmatmul.f32.gmra.mxu2 %v454_v36  ;;  %990 = vmatmul.f32.gmra.mxu3 %v455_v37 }
  0x7f   : > { %651 = vmatmul.f32.gmra.mxu0 %v452_v38  ;;  %764 = vmatmul.f32.gmra.mxu1 %v453_v39 }
  0x85   : > { %880 = vmatmul.f32.gmra.mxu2 %v458_v40  ;;  %993 = vmatmul.f32.gmra.mxu3 %v459_v41 }
  0x87   : > { %654 = vmatmul.f32.gmra.mxu0 %v456_v42  ;;  %767 = vmatmul.f32.gmra.mxu1 %v457_v43  ;;  %v494_v42 = vld [vmem:[%s1990_s14 + $0x270] sm:$0xff] }
  0x8d   : > { %883 = vmatmul.f32.gmra.mxu2 %v462_v44  ;;  %996 = vmatmul.f32.gmra.mxu3 %v463_v45  ;;  %v495_v44 = vld [vmem:[%s1990_s14 + $0x278] sm:$0xff] }
  0x8f   : > { %657 = vmatmul.f32.gmra.mxu0 %v460_v46  ;;  %770 = vmatmul.f32.gmra.mxu1 %v461_v47  ;;  %v492_v47 = vld [vmem:[%s1990_s14 + $0x260] sm:$0xff] }
  0x95   : > { %886 = vmatmul.f32.gmra.mxu2 %v466_v48  ;;  %999 = vmatmul.f32.gmra.mxu3 %v467_v49  ;;  %v493_v48 = vld [vmem:[%s1990_s14 + $0x268] sm:$0xff] }
  0x97   : > { %660 = vmatmul.f32.gmra.mxu0 %v464_v50  ;;  %773 = vmatmul.f32.gmra.mxu1 %v465_v51 }
  0x9d   : > { %889 = vmatmul.f32.gmra.mxu2 %v470_v52  ;;  %1002 = vmatmul.f32.gmra.mxu3 %v471_v53 }
  0x9f   : > { %663 = vmatmul.f32.gmra.mxu0 %v468_v54  ;;  %776 = vmatmul.f32.gmra.mxu1 %v469_v55 }
  0xa5   : > { %892 = vmatmul.f32.gmra.mxu2 %v474_v56  ;;  %1005 = vmatmul.f32.gmra.mxu3 %v475_v57 }
  0xa7   : > { %666 = vmatmul.f32.gmra.mxu0 %v472_v58  ;;  %779 = vmatmul.f32.gmra.mxu1 %v473_v59  ;;  %v498_v58 = vld [vmem:[%s1990_s14 + $0x290] sm:$0xff] }
  0xad   : > { %895 = vmatmul.f32.gmra.mxu2 %v478_v60  ;;  %1008 = vmatmul.f32.gmra.mxu3 %v479_v61  ;;  %v499_v60 = vld [vmem:[%s1990_s14 + $0x298] sm:$0xff] }
  0xaf   : > { %669 = vmatmul.f32.gmra.mxu0 %v476_v62  ;;  %782 = vmatmul.f32.gmra.mxu1 %v477_v63  ;;  %v496_v63 = vld [vmem:[%s1990_s14 + $0x280] sm:$0xff] }
  0xb4   : > { %v625_v2 = vpop.f32.mrf.mxu0  ;;  %v738_v3 = vpop.f32.mrf.mxu1 }
  0xb5   : > { %898 = vmatmul.f32.gmra.mxu2 %v482_v0  ;;  %v739_v6 = vadd.f32 %v738_v3, %v625_v2  ;;  %1011 = vmatmul.f32.gmra.mxu3 %v483_v1  ;;  %v497_v0 = vld [vmem:[%s1990_s14 + $0x288] sm:$0xff] }
  0xb7   : > { %672 = vmatmul.f32.gmra.mxu0 %v480_v4  ;;  %785 = vmatmul.f32.gmra.mxu1 %v481_v5 }
  0xb8   : > { %v851_v7 = vpop.f32.mrf.mxu2  ;;  %v964_v8 = vpop.f32.mrf.mxu3 }
  0xb9   : > { %v852_v9 = vadd.f32 %v851_v7, %v739_v6 }
  0xbb   : > { %v965_v13 = vadd.f32 %v964_v8, %v852_v9 }
  0xbc   : > { %v628_v15 = vpop.f32.mrf.mxu0  ;;  %v741_v16 = vpop.f32.mrf.mxu1 }
  0xbd   : > { %v1276_v19 = vmul.f32 %v2081_v10, %v965_v13  ;;  %901 = vmatmul.f32.gmra.mxu2 %v486_v11  ;;  %v742_v20 = vadd.f32 %v741_v16, %v628_v15  ;;  %1014 = vmatmul.f32.gmra.mxu3 %v487_v12  ;;  %v1196_v28 = vmul.f32 %v965_v13, %v965_v13  ;;  %v502_v11 = vld [vmem:[%s1990_s14 + $0x2b0] sm:$0xff] }
  0xbf   : > { %v1312_v21 = vadd.f32 %v2089_v14, %v1276_v19  ;;  %675 = vmatmul.f32.gmra.mxu0 %v484_v17  ;;  %788 = vmatmul.f32.gmra.mxu1 %v485_v18  ;;  %v500_v17 = vld [vmem:[%s1990_s14 + $0x2a0] sm:$0xff]  ;;  %v501_v18 = vld [vmem:[%s1990_s14 + $0x2a8] sm:$0xff] }
  0xc0   : > { %v854_v22 = vpop.f32.mrf.mxu2  ;;  %v967_v23 = vpop.f32.mrf.mxu3 }
  0xc1   : > { %1344 = vst [vmem:[%s2097_s25] sm:$0xff] %v1312_v21  ;;  %v855_v24 = vadd.f32 %v854_v22, %v742_v20 }
  0xc3   : > { %v968_v26 = vadd.f32 %v967_v23, %v855_v24 }
  0xc4   : > { %v631_v29 = vpop.f32.mrf.mxu0  ;;  %v744_v30 = vpop.f32.mrf.mxu1 }
  0xc5   : > { %v1159_v33 = vadd.f32 %v968_v26, %v965_v13  ;;  %v1197_v34 = vmul.f32 %v968_v26, %v968_v26  ;;  %v1277_v35 = vmul.f32 %v2081_v10, %v968_v26  ;;  %904 = vmatmul.f32.gmra.mxu2 %v490_v25  ;;  %v745_v36 = vadd.f32 %v744_v30, %v631_v29  ;;  %v503_v13 = vld [vmem:[%s1990_s14 + $0x2b8] sm:$0xff] }
  0xc6   : > { %1017 = vmatmul.f32.gmra.mxu3 %v491_v27  ;;  %v507_v30 = vld [vmem:[%s1990_s14 + $0x2d8] sm:$0xff] }
  0xc7   : > { %v1228_v37 = vadd.f32 %v1197_v34, %v1196_v28  ;;  %v1313_v38 = vadd.f32 %v2089_v14, %v1277_v35  ;;  %678 = vmatmul.f32.gmra.mxu0 %v488_v31  ;;  %791 = vmatmul.f32.gmra.mxu1 %v489_v32  ;;  %v506_v28 = vld [vmem:[%s1990_s14 + $0x2d0] sm:$0xff]  ;;  %v505_v34 = vld [vmem:[%s1990_s14 + $0x2c8] sm:$0xff] }
  0xc8   : > { %v857_v39 = vpop.f32.mrf.mxu2  ;;  %v970_v40 = vpop.f32.mrf.mxu3 }
  0xc9   : > { %1345 = vst [vmem:[%s2097_s25 + $0x8] sm:$0xff] %v1313_v38  ;;  %v858_v41 = vadd.f32 %v857_v39, %v745_v36 }
  0xcb   : > { %v971_v43 = vadd.f32 %v970_v40, %v858_v41 }
  0xcc   : > { %v634_v45 = vpop.f32.mrf.mxu0  ;;  %v747_v46 = vpop.f32.mrf.mxu1 }
  0xcd   : > { %v1160_v49 = vadd.f32 %v1159_v33, %v971_v43  ;;  %v1198_v50 = vmul.f32 %v971_v43, %v971_v43  ;;  %v1278_v51 = vmul.f32 %v2081_v10, %v971_v43  ;;  %907 = vmatmul.f32.gmra.mxu2 %v494_v42  ;;  %v748_v52 = vadd.f32 %v747_v46, %v634_v45  ;;  %v504_v33 = vld [vmem:[%s1990_s14 + $0x2c0] sm:$0xff]  ;;  %v511_v46 = vld [vmem:[%s1990_s14 + $0x2f8] sm:$0xff] }
  0xce   : > { %1020 = vmatmul.f32.gmra.mxu3 %v495_v44  ;;  %v510_v44 = vld [vmem:[%s1990_s14 + $0x2f0] sm:$0xff] }
  0xcf   : > { %v1229_v53 = vadd.f32 %v1228_v37, %v1198_v50  ;;  %v1314_v54 = vadd.f32 %v2089_v14, %v1278_v51  ;;  %681 = vmatmul.f32.gmra.mxu0 %v492_v47  ;;  %794 = vmatmul.f32.gmra.mxu1 %v493_v48  ;;  %v509_v50 = vld [vmem:[%s1990_s14 + $0x2e8] sm:$0xff] }
  0xd0   : > { %v860_v55 = vpop.f32.mrf.mxu2  ;;  %v973_v56 = vpop.f32.mrf.mxu3 }
  0xd1   : > { %1346 = vst [vmem:[%s2097_s25 + $0x10] sm:$0xff] %v1314_v54  ;;  %v861_v57 = vadd.f32 %v860_v55, %v748_v52 }
  0xd3   : > { %v974_v59 = vadd.f32 %v973_v56, %v861_v57 }
  0xd4   : > { %v637_v61 = vpop.f32.mrf.mxu0  ;;  %v750_v62 = vpop.f32.mrf.mxu1 }
  0xd5   : > { %v1161_v1 = vadd.f32 %v1160_v49, %v974_v59  ;;  %v1199_v2 = vmul.f32 %v974_v59, %v974_v59  ;;  %v1279_v3 = vmul.f32 %v2081_v10, %v974_v59  ;;  %910 = vmatmul.f32.gmra.mxu2 %v498_v58  ;;  %v751_v4 = vadd.f32 %v750_v62, %v637_v61  ;;  %v508_v49 = vld [vmem:[%s1990_s14 + $0x2e0] sm:$0xff]  ;;  %v515_v62 = vld [vmem:[%s1990_s14 + $0x318] sm:$0xff] }
  0xd6   : > { %1023 = vmatmul.f32.gmra.mxu3 %v499_v60  ;;  %v514_v60 = vld [vmem:[%s1990_s14 + $0x310] sm:$0xff] }
  0xd7   : > { %v1230_v5 = vadd.f32 %v1229_v53, %v1199_v2  ;;  %v1315_v6 = vadd.f32 %v2089_v14, %v1279_v3  ;;  %684 = vmatmul.f32.gmra.mxu0 %v496_v63  ;;  %797 = vmatmul.f32.gmra.mxu1 %v497_v0  ;;  %v513_v2 = vld [vmem:[%s1990_s14 + $0x308] sm:$0xff] }
  0xd8   : > { %v863_v7 = vpop.f32.mrf.mxu2  ;;  %v976_v8 = vpop.f32.mrf.mxu3 }
  0xd9   : > { %1347 = vst [vmem:[%s2097_s25 + $0x18] sm:$0xff] %v1315_v6  ;;  %v864_v9 = vadd.f32 %v863_v7, %v751_v4 }
  0xdb   : > { %v977_v12 = vadd.f32 %v976_v8, %v864_v9 }
  0xdc   : > { %v640_v15 = vpop.f32.mrf.mxu0  ;;  %v753_v16 = vpop.f32.mrf.mxu1 }
  0xdd   : > { %v1162_v19 = vadd.f32 %v1161_v1, %v977_v12  ;;  %v1200_v20 = vmul.f32 %v977_v12, %v977_v12  ;;  %v1280_v21 = vmul.f32 %v2081_v10, %v977_v12  ;;  %913 = vmatmul.f32.gmra.mxu2 %v502_v11  ;;  %v754_v22 = vadd.f32 %v753_v16, %v640_v15  ;;  %v512_v1 = vld [vmem:[%s1990_s14 + $0x300] sm:$0xff]  ;;  %v519_v16 = vld [vmem:[%s1990_s14 + $0x338] sm:$0xff] }
  0xde   : > { %1026 = vmatmul.f32.gmra.mxu3 %v503_v13  ;;  %v518_v13 = vld [vmem:[%s1990_s14 + $0x330] sm:$0xff] }
  0xdf   : > { %v1231_v23 = vadd.f32 %v1230_v5, %v1200_v20  ;;  %v1316_v24 = vadd.f32 %v2089_v14, %v1280_v21  ;;  %687 = vmatmul.f32.gmra.mxu0 %v500_v17  ;;  %800 = vmatmul.f32.gmra.mxu1 %v501_v18  ;;  %v517_v20 = vld [vmem:[%s1990_s14 + $0x328] sm:$0xff] }
  0xe0   : > { %v866_v25 = vpop.f32.mrf.mxu2  ;;  %v979_v26 = vpop.f32.mrf.mxu3 }
  0xe1   : > { %1348 = vst [vmem:[%s2097_s25 + $0x20] sm:$0xff] %v1316_v24  ;;  %v867_v27 = vadd.f32 %v866_v25, %v754_v22 }
  0xe3   : > { %v980_v29 = vadd.f32 %v979_v26, %v867_v27 }
  0xe4   : > { %v643_v31 = vpop.f32.mrf.mxu0  ;;  %v756_v32 = vpop.f32.mrf.mxu1 }
  0xe5   : > { %v1163_v35 = vadd.f32 %v1162_v19, %v980_v29  ;;  %v1201_v36 = vmul.f32 %v980_v29, %v980_v29  ;;  %v1281_v37 = vmul.f32 %v2081_v10, %v980_v29  ;;  %916 = vmatmul.f32.gmra.mxu2 %v506_v28  ;;  %v757_v38 = vadd.f32 %v756_v32, %v643_v31  ;;  %v516_v19 = vld [vmem:[%s1990_s14 + $0x320] sm:$0xff]  ;;  %v523_v32 = vld [vmem:[%s1990_s14 + $0x358] sm:$0xff] }
  0xe6   : > { %1029 = vmatmul.f32.gmra.mxu3 %v507_v30  ;;  %v522_v30 = vld [vmem:[%s1990_s14 + $0x350] sm:$0xff] }
  0xe7   : > { %v1232_v39 = vadd.f32 %v1231_v23, %v1201_v36  ;;  %v1317_v40 = vadd.f32 %v2089_v14, %v1281_v37  ;;  %690 = vmatmul.f32.gmra.mxu0 %v504_v33  ;;  %803 = vmatmul.f32.gmra.mxu1 %v505_v34  ;;  %v521_v36 = vld [vmem:[%s1990_s14 + $0x348] sm:$0xff] }
  0xe8   : > { %v869_v41 = vpop.f32.mrf.mxu2  ;;  %v982_v42 = vpop.f32.mrf.mxu3 }
  0xe9   : > { %1349 = vst [vmem:[%s2097_s25 + $0x28] sm:$0xff] %v1317_v40  ;;  %v870_v43 = vadd.f32 %v869_v41, %v757_v38 }
  0xeb   : > { %v983_v45 = vadd.f32 %v982_v42, %v870_v43 }
  0xec   : > { %v646_v47 = vpop.f32.mrf.mxu0  ;;  %v759_v48 = vpop.f32.mrf.mxu1 }
  0xed   : > { %v1164_v51 = vadd.f32 %v1163_v35, %v983_v45  ;;  %v1202_v52 = vmul.f32 %v983_v45, %v983_v45  ;;  %v1282_v53 = vmul.f32 %v2081_v10, %v983_v45  ;;  %919 = vmatmul.f32.gmra.mxu2 %v510_v44  ;;  %v760_v54 = vadd.f32 %v759_v48, %v646_v47  ;;  %v520_v35 = vld [vmem:[%s1990_s14 + $0x340] sm:$0xff]  ;;  %v527_v48 = vld [vmem:[%s1990_s14 + $0x378] sm:$0xff] }
  0xee   : > { %1032 = vmatmul.f32.gmra.mxu3 %v511_v46  ;;  %v526_v46 = vld [vmem:[%s1990_s14 + $0x370] sm:$0xff] }
  0xef   : > { %v1233_v55 = vadd.f32 %v1232_v39, %v1202_v52  ;;  %v1318_v56 = vadd.f32 %v2089_v14, %v1282_v53  ;;  %693 = vmatmul.f32.gmra.mxu0 %v508_v49  ;;  %806 = vmatmul.f32.gmra.mxu1 %v509_v50  ;;  %v525_v52 = vld [vmem:[%s1990_s14 + $0x368] sm:$0xff] }
  0xf0   : > { %v872_v57 = vpop.f32.mrf.mxu2  ;;  %v985_v58 = vpop.f32.mrf.mxu3 }
  0xf1   : > { %1350 = vst [vmem:[%s2097_s25 + $0x30] sm:$0xff] %v1318_v56  ;;  %v873_v59 = vadd.f32 %v872_v57, %v760_v54 }
  0xf3   : > { %v986_v61 = vadd.f32 %v985_v58, %v873_v59 }
  0xf4   : > { %v649_v63 = vpop.f32.mrf.mxu0  ;;  %v762_v0 = vpop.f32.mrf.mxu1 }
  0xf5   : > { %v1165_v3 = vadd.f32 %v1164_v51, %v986_v61  ;;  %v1203_v4 = vmul.f32 %v986_v61, %v986_v61  ;;  %v1283_v5 = vmul.f32 %v2081_v10, %v986_v61  ;;  %922 = vmatmul.f32.gmra.mxu2 %v514_v60  ;;  %v763_v6 = vadd.f32 %v762_v0, %v649_v63  ;;  %v524_v51 = vld [vmem:[%s1990_s14 + $0x360] sm:$0xff]  ;;  %v531_v0 = vld [vmem:[%s1990_s14 + $0x398] sm:$0xff] }
  0xf6   : > { %1035 = vmatmul.f32.gmra.mxu3 %v515_v62  ;;  %v530_v62 = vld [vmem:[%s1990_s14 + $0x390] sm:$0xff] }
  0xf7   : > { %v1234_v7 = vadd.f32 %v1233_v55, %v1203_v4  ;;  %v1319_v8 = vadd.f32 %v2089_v14, %v1283_v5  ;;  %696 = vmatmul.f32.gmra.mxu0 %v512_v1  ;;  %809 = vmatmul.f32.gmra.mxu1 %v513_v2  ;;  %v529_v4 = vld [vmem:[%s1990_s14 + $0x388] sm:$0xff] }
  0xf8   : > { %v875_v9 = vpop.f32.mrf.mxu2  ;;  %v988_v11 = vpop.f32.mrf.mxu3 }
  0xf9   : > { %1351 = vst [vmem:[%s2097_s25 + $0x38] sm:$0xff] %v1319_v8  ;;  %v876_v12 = vadd.f32 %v875_v9, %v763_v6 }
  0xfb   : > { %v989_v15 = vadd.f32 %v988_v11, %v876_v12 }
  0xfc   : > { %v652_v17 = vpop.f32.mrf.mxu0  ;;  %v765_v18 = vpop.f32.mrf.mxu1 }
  0xfd   : > { %v1166_v21 = vadd.f32 %v1165_v3, %v989_v15  ;;  %v1204_v22 = vmul.f32 %v989_v15, %v989_v15  ;;  %v1284_v23 = vmul.f32 %v2081_v10, %v989_v15  ;;  %925 = vmatmul.f32.gmra.mxu2 %v518_v13  ;;  %v766_v24 = vadd.f32 %v765_v18, %v652_v17  ;;  %v528_v3 = vld [vmem:[%s1990_s14 + $0x380] sm:$0xff]  ;;  %v535_v18 = vld [vmem:[%s1990_s14 + $0x3b8] sm:$0xff] }
  0xfe   : > { %1038 = vmatmul.f32.gmra.mxu3 %v519_v16  ;;  %v534_v16 = vld [vmem:[%s1990_s14 + $0x3b0] sm:$0xff] }
  0xff   : > { %v1235_v25 = vadd.f32 %v1234_v7, %v1204_v22  ;;  %v1320_v26 = vadd.f32 %v2089_v14, %v1284_v23  ;;  %699 = vmatmul.f32.gmra.mxu0 %v516_v19  ;;  %812 = vmatmul.f32.gmra.mxu1 %v517_v20  ;;  %v533_v22 = vld [vmem:[%s1990_s14 + $0x3a8] sm:$0xff] }
 0x100   : > { %v878_v27 = vpop.f32.mrf.mxu2  ;;  %v991_v28 = vpop.f32.mrf.mxu3 }
 0x101   : > { %1352 = vst [vmem:[%s2097_s25 + $0x40] sm:$0xff] %v1320_v26  ;;  %v879_v29 = vadd.f32 %v878_v27, %v766_v24 }
 0x103   : > { %v992_v31 = vadd.f32 %v991_v28, %v879_v29 }
 0x104   : > { %v655_v33 = vpop.f32.mrf.mxu0  ;;  %v768_v34 = vpop.f32.mrf.mxu1 }
 0x105   : > { %v1167_v37 = vadd.f32 %v1166_v21, %v992_v31  ;;  %v1205_v38 = vmul.f32 %v992_v31, %v992_v31  ;;  %v1285_v39 = vmul.f32 %v2081_v10, %v992_v31  ;;  %928 = vmatmul.f32.gmra.mxu2 %v522_v30  ;;  %v769_v40 = vadd.f32 %v768_v34, %v655_v33  ;;  %v532_v21 = vld [vmem:[%s1990_s14 + $0x3a0] sm:$0xff]  ;;  %v539_v34 = vld [vmem:[%s1990_s14 + $0x3d8] sm:$0xff] }
 0x106   : > { %1041 = vmatmul.f32.gmra.mxu3 %v523_v32  ;;  %v538_v32 = vld [vmem:[%s1990_s14 + $0x3d0] sm:$0xff] }
 0x107   : > { %v1236_v41 = vadd.f32 %v1235_v25, %v1205_v38  ;;  %v1321_v42 = vadd.f32 %v2089_v14, %v1285_v39  ;;  %702 = vmatmul.f32.gmra.mxu0 %v520_v35  ;;  %815 = vmatmul.f32.gmra.mxu1 %v521_v36  ;;  %v537_v38 = vld [vmem:[%s1990_s14 + $0x3c8] sm:$0xff] }
 0x108   : > { %v881_v43 = vpop.f32.mrf.mxu2  ;;  %v994_v44 = vpop.f32.mrf.mxu3 }
 0x109   : > { %1353 = vst [vmem:[%s2097_s25 + $0x48] sm:$0xff] %v1321_v42  ;;  %v882_v45 = vadd.f32 %v881_v43, %v769_v40 }
 0x10b   : > { %v995_v47 = vadd.f32 %v994_v44, %v882_v45 }
 0x10c   : > { %v658_v49 = vpop.f32.mrf.mxu0  ;;  %v771_v50 = vpop.f32.mrf.mxu1 }
 0x10d   : > { %v1168_v53 = vadd.f32 %v1167_v37, %v995_v47  ;;  %v1206_v54 = vmul.f32 %v995_v47, %v995_v47  ;;  %v1286_v55 = vmul.f32 %v2081_v10, %v995_v47  ;;  %931 = vmatmul.f32.gmra.mxu2 %v526_v46  ;;  %v772_v56 = vadd.f32 %v771_v50, %v658_v49  ;;  %v536_v37 = vld [vmem:[%s1990_s14 + $0x3c0] sm:$0xff]  ;;  %v543_v50 = vld [vmem:[%s1990_s14 + $0x3f8] sm:$0xff] }
 0x10e   : > { %1044 = vmatmul.f32.gmra.mxu3 %v527_v48  ;;  %v542_v48 = vld [vmem:[%s1990_s14 + $0x3f0] sm:$0xff] }
 0x10f   : > { %v1237_v57 = vadd.f32 %v1236_v41, %v1206_v54  ;;  %v1322_v58 = vadd.f32 %v2089_v14, %v1286_v55  ;;  %705 = vmatmul.f32.gmra.mxu0 %v524_v51  ;;  %818 = vmatmul.f32.gmra.mxu1 %v525_v52  ;;  %v541_v54 = vld [vmem:[%s1990_s14 + $0x3e8] sm:$0xff] }
 0x110   : > { %v884_v59 = vpop.f32.mrf.mxu2  ;;  %v997_v60 = vpop.f32.mrf.mxu3 }
 0x111   : > { %1354 = vst [vmem:[%s2097_s25 + $0x50] sm:$0xff] %v1322_v58  ;;  %v885_v61 = vadd.f32 %v884_v59, %v772_v56 }
 0x113   : > { %v998_v63 = vadd.f32 %v997_v60, %v885_v61 }
 0x114   : > { %v661_v1 = vpop.f32.mrf.mxu0  ;;  %v774_v2 = vpop.f32.mrf.mxu1 }
 0x115   : > { %v1169_v5 = vadd.f32 %v1168_v53, %v998_v63  ;;  %v1207_v6 = vmul.f32 %v998_v63, %v998_v63  ;;  %v1287_v7 = vmul.f32 %v2081_v10, %v998_v63  ;;  %934 = vmatmul.f32.gmra.mxu2 %v530_v62  ;;  %v775_v8 = vadd.f32 %v774_v2, %v661_v1  ;;  %v540_v53 = vld [vmem:[%s1990_s14 + $0x3e0] sm:$0xff] }
 0x116   : > { %1047 = vmatmul.f32.gmra.mxu3 %v531_v0 }
 0x117   : > { %v1238_v9 = vadd.f32 %v1237_v57, %v1207_v6  ;;  %v1323_v11 = vadd.f32 %v2089_v14, %v1287_v7  ;;  %708 = vmatmul.f32.gmra.mxu0 %v528_v3  ;;  %821 = vmatmul.f32.gmra.mxu1 %v529_v4 }
 0x118   : > { %v887_v12 = vpop.f32.mrf.mxu2  ;;  %v1000_v13 = vpop.f32.mrf.mxu3 }
 0x119   : > { %1355 = vst [vmem:[%s2097_s25 + $0x58] sm:$0xff] %v1323_v11  ;;  %v888_v15 = vadd.f32 %v887_v12, %v775_v8 }
 0x11b   : > { %v1001_v17 = vadd.f32 %v1000_v13, %v888_v15 }
 0x11c   : > { %v664_v19 = vpop.f32.mrf.mxu0  ;;  %v777_v20 = vpop.f32.mrf.mxu1 }
 0x11d   : > { %v1170_v23 = vadd.f32 %v1169_v5, %v1001_v17  ;;  %v1208_v24 = vmul.f32 %v1001_v17, %v1001_v17  ;;  %v1288_v25 = vmul.f32 %v2081_v10, %v1001_v17  ;;  %937 = vmatmul.f32.gmra.mxu2 %v534_v16  ;;  %v778_v26 = vadd.f32 %v777_v20, %v664_v19 }
 0x11e   : > { %1050 = vmatmul.f32.gmra.mxu3 %v535_v18 }
 0x11f   : > { %v1239_v27 = vadd.f32 %v1238_v9, %v1208_v24  ;;  %v1324_v28 = vadd.f32 %v2089_v14, %v1288_v25  ;;  %711 = vmatmul.f32.gmra.mxu0 %v532_v21  ;;  %824 = vmatmul.f32.gmra.mxu1 %v533_v22 }
 0x120   : > { %v890_v29 = vpop.f32.mrf.mxu2  ;;  %v1003_v30 = vpop.f32.mrf.mxu3 }
 0x121   : > { %1356 = vst [vmem:[%s2097_s25 + $0x60] sm:$0xff] %v1324_v28  ;;  %v891_v31 = vadd.f32 %v890_v29, %v778_v26 }
 0x123   : > { %v1004_v33 = vadd.f32 %v1003_v30, %v891_v31 }
 0x124   : > { %v667_v35 = vpop.f32.mrf.mxu0  ;;  %v780_v36 = vpop.f32.mrf.mxu1 }
 0x125   : > { %v1171_v39 = vadd.f32 %v1170_v23, %v1004_v33  ;;  %v1209_v40 = vmul.f32 %v1004_v33, %v1004_v33  ;;  %v1289_v41 = vmul.f32 %v2081_v10, %v1004_v33  ;;  %940 = vmatmul.f32.gmra.mxu2 %v538_v32  ;;  %v781_v42 = vadd.f32 %v780_v36, %v667_v35 }
 0x126   : > { %1053 = vmatmul.f32.gmra.mxu3 %v539_v34 }
 0x127   : > { %v1240_v43 = vadd.f32 %v1239_v27, %v1209_v40  ;;  %v1325_v44 = vadd.f32 %v2089_v14, %v1289_v41  ;;  %714 = vmatmul.f32.gmra.mxu0 %v536_v37  ;;  %827 = vmatmul.f32.gmra.mxu1 %v537_v38 }
 0x128   : > { %v893_v45 = vpop.f32.mrf.mxu2  ;;  %v1006_v46 = vpop.f32.mrf.mxu3 }
 0x129   : > { %1357 = vst [vmem:[%s2097_s25 + $0x68] sm:$0xff] %v1325_v44  ;;  %v894_v47 = vadd.f32 %v893_v45, %v781_v42 }
 0x12b   : > { %v1007_v49 = vadd.f32 %v1006_v46, %v894_v47 }
 0x12c   : > { %v670_v51 = vpop.f32.mrf.mxu0  ;;  %v783_v52 = vpop.f32.mrf.mxu1 }
 0x12d   : > { %v1172_v55 = vadd.f32 %v1171_v39, %v1007_v49  ;;  %v1210_v56 = vmul.f32 %v1007_v49, %v1007_v49  ;;  %v1290_v57 = vmul.f32 %v2081_v10, %v1007_v49  ;;  %943 = vmatmul.f32.gmra.mxu2 %v542_v48  ;;  %v784_v58 = vadd.f32 %v783_v52, %v670_v51 }
 0x12e   : > { %1056 = vmatmul.f32.gmra.mxu3 %v543_v50 }
 0x12f   : > { %v1241_v59 = vadd.f32 %v1240_v43, %v1210_v56  ;;  %v1326_v60 = vadd.f32 %v2089_v14, %v1290_v57  ;;  %717 = vmatmul.f32.gmra.mxu0 %v540_v53  ;;  %830 = vmatmul.f32.gmra.mxu1 %v541_v54 }
 0x130   : > { %v896_v61 = vpop.f32.mrf.mxu2  ;;  %v1009_v62 = vpop.f32.mrf.mxu3 }
 0x131   : > { %1358 = vst [vmem:[%s2097_s25 + $0x70] sm:$0xff] %v1326_v60  ;;  %v897_v63 = vadd.f32 %v896_v61, %v784_v58 }
 0x133   : > { %v1010_v0 = vadd.f32 %v1009_v62, %v897_v63 }
 0x134   : > { %v673_v1 = vpop.f32.mrf.mxu0  ;;  %v786_v2 = vpop.f32.mrf.mxu1 }
 0x135   : > { %v1173_v3 = vadd.f32 %v1172_v55, %v1010_v0  ;;  %v1211_v4 = vmul.f32 %v1010_v0, %v1010_v0  ;;  %v1291_v5 = vmul.f32 %v2081_v10, %v1010_v0  ;;  %v787_v6 = vadd.f32 %v786_v2, %v673_v1 }
 0x137   : > { %v1242_v7 = vadd.f32 %v1241_v59, %v1211_v4  ;;  %v1327_v8 = vadd.f32 %v2089_v14, %v1291_v5 }
 0x138   : > { %v899_v9 = vpop.f32.mrf.mxu2  ;;  %v1012_v11 = vpop.f32.mrf.mxu3 }
 0x139   : > { %1359 = vst [vmem:[%s2097_s25 + $0x78] sm:$0xff] %v1327_v8  ;;  %v900_v12 = vadd.f32 %v899_v9, %v787_v6 }
 0x13b   : > { %v1013_v13 = vadd.f32 %v1012_v11, %v900_v12 }
 0x13c   : > { %v676_v15 = vpop.f32.mrf.mxu0  ;;  %v789_v16 = vpop.f32.mrf.mxu1 }
 0x13d   : > { %v1174_v17 = vadd.f32 %v1173_v3, %v1013_v13  ;;  %v1212_v18 = vmul.f32 %v1013_v13, %v1013_v13  ;;  %v1292_v19 = vmul.f32 %v2081_v10, %v1013_v13  ;;  %v790_v20 = vadd.f32 %v789_v16, %v676_v15 }
 0x13f   : > { %v1243_v21 = vadd.f32 %v1242_v7, %v1212_v18  ;;  %v1328_v22 = vadd.f32 %v2089_v14, %v1292_v19 }
 0x140   : > { %v902_v23 = vpop.f32.mrf.mxu2  ;;  %v1015_v24 = vpop.f32.mrf.mxu3 }
 0x141   : > { %1360 = vst [vmem:[%s2097_s25 + $0x80] sm:$0xff] %v1328_v22  ;;  %v903_v25 = vadd.f32 %v902_v23, %v790_v20 }
 0x143   : > { %v1016_v26 = vadd.f32 %v1015_v24, %v903_v25 }
 0x144   : > { %v679_v27 = vpop.f32.mrf.mxu0  ;;  %v792_v28 = vpop.f32.mrf.mxu1 }
 0x145   : > { %v1175_v29 = vadd.f32 %v1174_v17, %v1016_v26  ;;  %v1213_v30 = vmul.f32 %v1016_v26, %v1016_v26  ;;  %v1293_v31 = vmul.f32 %v2081_v10, %v1016_v26  ;;  %v793_v32 = vadd.f32 %v792_v28, %v679_v27 }
 0x147   : > { %v1244_v33 = vadd.f32 %v1243_v21, %v1213_v30  ;;  %v1329_v34 = vadd.f32 %v2089_v14, %v1293_v31 }
 0x148   : > { %v905_v35 = vpop.f32.mrf.mxu2 }
 0x149   : > { %1361 = vst [vmem:[%s2097_s25 + $0x88] sm:$0xff] %v1329_v34  ;;  %v906_v36 = vadd.f32 %v905_v35, %v793_v32  ;;  %v1018_v37 = vpop.f32.mrf.mxu3 }
 0x14b   : > { %v1019_v38 = vadd.f32 %v1018_v37, %v906_v36 }
 0x14c   : > { %v682_v39 = vpop.f32.mrf.mxu0  ;;  %v795_v40 = vpop.f32.mrf.mxu1 }
 0x14d   : > { %v1176_v41 = vadd.f32 %v1175_v29, %v1019_v38  ;;  %v1214_v42 = vmul.f32 %v1019_v38, %v1019_v38  ;;  %v1294_v43 = vmul.f32 %v2081_v10, %v1019_v38  ;;  %v796_v44 = vadd.f32 %v795_v40, %v682_v39 }
 0x14f   : > { %v1245_v45 = vadd.f32 %v1244_v33, %v1214_v42  ;;  %v1330_v46 = vadd.f32 %v2089_v14, %v1294_v43 }
 0x150   : > { %v908_v47 = vpop.f32.mrf.mxu2 }
 0x151   : > { %1362 = vst [vmem:[%s2097_s25 + $0x90] sm:$0xff] %v1330_v46  ;;  %v909_v48 = vadd.f32 %v908_v47, %v796_v44  ;;  %v1021_v49 = vpop.f32.mrf.mxu3 }
 0x153   : > { %v1022_v50 = vadd.f32 %v1021_v49, %v909_v48 }
 0x154   : > { %v685_v51 = vpop.f32.mrf.mxu0  ;;  %v798_v52 = vpop.f32.mrf.mxu1 }
 0x155   : > { %v1177_v53 = vadd.f32 %v1176_v41, %v1022_v50  ;;  %v1215_v54 = vmul.f32 %v1022_v50, %v1022_v50  ;;  %v1295_v55 = vmul.f32 %v2081_v10, %v1022_v50  ;;  %v799_v56 = vadd.f32 %v798_v52, %v685_v51 }
 0x157   : > { %v1246_v57 = vadd.f32 %v1245_v45, %v1215_v54  ;;  %v1331_v58 = vadd.f32 %v2089_v14, %v1295_v55 }
 0x158   : > { %v911_v59 = vpop.f32.mrf.mxu2 }
 0x159   : > { %1363 = vst [vmem:[%s2097_s25 + $0x98] sm:$0xff] %v1331_v58  ;;  %v912_v60 = vadd.f32 %v911_v59, %v799_v56  ;;  %v1024_v61 = vpop.f32.mrf.mxu3 }
 0x15b   : > { %v1025_v62 = vadd.f32 %v1024_v61, %v912_v60 }
 0x15c   : > { %v688_v63 = vpop.f32.mrf.mxu0  ;;  %v801_v0 = vpop.f32.mrf.mxu1 }
 0x15d   : > { %v1178_v1 = vadd.f32 %v1177_v53, %v1025_v62  ;;  %v1216_v2 = vmul.f32 %v1025_v62, %v1025_v62  ;;  %v1296_v3 = vmul.f32 %v2081_v10, %v1025_v62  ;;  %v802_v4 = vadd.f32 %v801_v0, %v688_v63 }
 0x15f   : > { %v2215_v5 = vadd.f32 %v1246_v57, %v1216_v2  ;;  %v1332_v6 = vadd.f32 %v2089_v14, %v1296_v3 }
 0x160   : > { %v914_v7 = vpop.f32.mrf.mxu2 }
 0x161   : > { %1364 = vst [vmem:[%s2097_s25 + $0xa0] sm:$0xff] %v1332_v6  ;;  %v915_v8 = vadd.f32 %v914_v7, %v802_v4  ;;  %v1027_v9 = vpop.f32.mrf.mxu3 }
 0x163   : > { %v2219_v11 = vadd.f32 %v1027_v9, %v915_v8 }
 0x164   : > { %v691_v12 = vpop.f32.mrf.mxu0  ;;  %v804_v13 = vpop.f32.mrf.mxu1 }
 0x165   : > { %v2222_v15 = vadd.f32 %v1178_v1, %v2219_v11  ;;  %v1297_v16 = vmul.f32 %v2081_v10, %v2219_v11  ;;  %v805_v17 = vadd.f32 %v804_v13, %v691_v12 }
 0x167   : > { %v1333_v18 = vadd.f32 %v2089_v14, %v1297_v16 }
 0x168   : > { %v917_v19 = vpop.f32.mrf.mxu2 }
 0x169   : > { %1365 = vst [vmem:[%s2097_s25 + $0xa8] sm:$0xff] %v1333_v18  ;;  %v918_v20 = vadd.f32 %v917_v19, %v805_v17  ;;  %v1030_v21 = vpop.f32.mrf.mxu3 }
 0x16b   : > { %v2228_v22 = vadd.f32 %v1030_v21, %v918_v20 }
 0x16c   : > { %v694_v23 = vpop.f32.mrf.mxu0  ;;  %v807_v24 = vpop.f32.mrf.mxu1 }
 0x16d   : > { %v1298_v25 = vmul.f32 %v2081_v10, %v2228_v22  ;;  %v808_v26 = vadd.f32 %v807_v24, %v694_v23  ;;  %v1217_v23 = vmul.f32 %v2219_v11, %v2219_v11 }
 0x16f   : > { %v1334_v27 = vadd.f32 %v2089_v14, %v1298_v25  ;;  %v1218_v25 = vmul.f32 %v2228_v22, %v2228_v22 }
 0x170   : > { %v920_v28 = vpop.f32.mrf.mxu2 }
 0x171   : > { %1366 = vst [vmem:[%s2097_s25 + $0xb0] sm:$0xff] %v1334_v27  ;;  %v921_v29 = vadd.f32 %v920_v28, %v808_v26  ;;  %v1033_v30 = vpop.f32.mrf.mxu3 }
 0x173   : > { %v2234_v31 = vadd.f32 %v1033_v30, %v921_v29  ;;  %v1248_v29 = vadd.f32 %v2215_v5, %v1217_v23 }
 0x174   : > { %v697_v32 = vpop.f32.mrf.mxu0  ;;  %v810_v33 = vpop.f32.mrf.mxu1 }
 0x175   : > { %v1299_v34 = vmul.f32 %v2081_v10, %v2234_v31  ;;  %v811_v35 = vadd.f32 %v810_v33, %v697_v32  ;;  %v1219_v30 = vmul.f32 %v2234_v31, %v2234_v31  ;;  %v1180_v32 = vadd.f32 %v2222_v15, %v2228_v22 }
 0x176   : > { %v1249_v11 = vadd.f32 %v1248_v29, %v1218_v25 }
 0x177   : > { %v1335_v36 = vadd.f32 %v2089_v14, %v1299_v34 }
 0x178   : > { %v923_v37 = vpop.f32.mrf.mxu2  ;;  %v1250_v5 = vadd.f32 %v1249_v11, %v1219_v30 }
 0x179   : > { %1367 = vst [vmem:[%s2097_s25 + $0xb8] sm:$0xff] %v1335_v36  ;;  %v924_v38 = vadd.f32 %v923_v37, %v811_v35  ;;  %v1036_v39 = vpop.f32.mrf.mxu3  ;;  %v1181_v37 = vadd.f32 %v1180_v32, %v2234_v31 }
 0x17b   : > { %v2240_v40 = vadd.f32 %v1036_v39, %v924_v38 }
 0x17c   : > { %v700_v41 = vpop.f32.mrf.mxu0  ;;  %v813_v42 = vpop.f32.mrf.mxu1 }
 0x17d   : > { %v1300_v43 = vmul.f32 %v2081_v10, %v2240_v40  ;;  %v814_v44 = vadd.f32 %v813_v42, %v700_v41  ;;  %v1220_v34 = vmul.f32 %v2240_v40, %v2240_v40  ;;  %v1182_v42 = vadd.f32 %v1181_v37, %v2240_v40 }
 0x17f   : > { %v1336_v45 = vadd.f32 %v2089_v14, %v1300_v43  ;;  %v1251_v15 = vadd.f32 %v1250_v5, %v1220_v34 }
 0x180   : > { %v926_v46 = vpop.f32.mrf.mxu2 }
 0x181   : > { %1368 = vst [vmem:[%s2097_s25 + $0xc0] sm:$0xff] %v1336_v45  ;;  %v927_v47 = vadd.f32 %v926_v46, %v814_v44  ;;  %v1039_v48 = vpop.f32.mrf.mxu3 }
 0x183   : > { %v1040_v49 = vadd.f32 %v1039_v48, %v927_v47 }
 0x184   : > { %v703_v50 = vpop.f32.mrf.mxu0  ;;  %v816_v51 = vpop.f32.mrf.mxu1 }
 0x185   : > { %v1301_v52 = vmul.f32 %v2081_v10, %v1040_v49  ;;  %v817_v53 = vadd.f32 %v816_v51, %v703_v50  ;;  %v1221_v41 = vmul.f32 %v1040_v49, %v1040_v49  ;;  %v1183_v45 = vadd.f32 %v1182_v42, %v1040_v49 }
 0x187   : > { %v1337_v54 = vadd.f32 %v2089_v14, %v1301_v52  ;;  %v1252_v48 = vadd.f32 %v1251_v15, %v1221_v41 }
 0x188   : > { %v929_v55 = vpop.f32.mrf.mxu2 }
 0x189   : > { %1369 = vst [vmem:[%s2097_s25 + $0xc8] sm:$0xff] %v1337_v54  ;;  %v930_v56 = vadd.f32 %v929_v55, %v817_v53  ;;  %v1042_v57 = vpop.f32.mrf.mxu3 }
 0x18b   : > { %v1043_v58 = vadd.f32 %v1042_v57, %v930_v56 }
 0x18c   : > { %v706_v59 = vpop.f32.mrf.mxu0  ;;  %v819_v60 = vpop.f32.mrf.mxu1 }
 0x18d   : > { %v1302_v61 = vmul.f32 %v2081_v10, %v1043_v58  ;;  %v820_v62 = vadd.f32 %v819_v60, %v706_v59  ;;  %v1222_v22 = vmul.f32 %v1043_v58, %v1043_v58  ;;  %v1184_v50 = vadd.f32 %v1183_v45, %v1043_v58 }
 0x18f   : > { %v1338_v63 = vadd.f32 %v2089_v14, %v1302_v61  ;;  %v1253_v52 = vadd.f32 %v1252_v48, %v1222_v22 }
 0x190   : > { %v932_v0 = vpop.f32.mrf.mxu2 }
 0x191   : > { %1370 = vst [vmem:[%s2097_s25 + $0xd0] sm:$0xff] %v1338_v63  ;;  %v933_v1 = vadd.f32 %v932_v0, %v820_v62  ;;  %v1045_v2 = vpop.f32.mrf.mxu3 }
 0x193   : > { %v1046_v3 = vadd.f32 %v1045_v2, %v933_v1 }
 0x194   : > { %v709_v4 = vpop.f32.mrf.mxu0  ;;  %v822_v6 = vpop.f32.mrf.mxu1 }
 0x195   : > { %v1303_v7 = vmul.f32 %v2081_v10, %v1046_v3  ;;  %v823_v8 = vadd.f32 %v822_v6, %v709_v4  ;;  %v1223_v51 = vmul.f32 %v1046_v3, %v1046_v3  ;;  %v1185_v55 = vadd.f32 %v1184_v50, %v1046_v3 }
 0x197   : > { %v1339_v9 = vadd.f32 %v2089_v14, %v1303_v7  ;;  %v1254_v59 = vadd.f32 %v1253_v52, %v1223_v51 }
 0x198   : > { %v935_v12 = vpop.f32.mrf.mxu2 }
 0x199   : > { %1371 = vst [vmem:[%s2097_s25 + $0xd8] sm:$0xff] %v1339_v9  ;;  %v936_v13 = vadd.f32 %v935_v12, %v823_v8  ;;  %v1048_v16 = vpop.f32.mrf.mxu3 }
 0x19b   : > { %v1049_v17 = vadd.f32 %v1048_v16, %v936_v13  ;;  %v1633_v16 = vld [vmem:[%s2324_s3] ss:$0 sm:$0xff] }
 0x19c   : > { %v712_v18 = vpop.f32.mrf.mxu0  ;;  %v825_v19 = vpop.f32.mrf.mxu1 }
 0x19d   : > { %v1304_v20 = vmul.f32 %v2081_v10, %v1049_v17  ;;  %v826_v21 = vadd.f32 %v825_v19, %v712_v18  ;;  %v1224_v56 = vmul.f32 %v1049_v17, %v1049_v17  ;;  %v1186_v60 = vadd.f32 %v1185_v55, %v1049_v17 }
 0x19f   : > { %v1340_v24 = vadd.f32 %v2089_v14, %v1304_v20  ;;  %v1255_v63 = vadd.f32 %v1254_v59, %v1224_v56  ;;  %v1265_v20 = vlaneseq }
 0x1a0   : > { %v938_v26 = vpop.f32.mrf.mxu2 }
 0x1a1   : > { %1372 = vst [vmem:[%s2097_s25 + $0xe0] sm:$0xff] %v1340_v24  ;;  %v939_v27 = vadd.f32 %v938_v26, %v826_v21  ;;  %v1051_v28 = vpop.f32.mrf.mxu3  ;;  %v1266_v26 = vshrl.u32 %v1265_v20, 7 }
 0x1a3   : > { %v1052_v33 = vadd.f32 %v1051_v28, %v939_v27  ;;  %vm1268_vm0 = vcmp.eq.s32.totalorder %v1266_v26, 1  ;;  %vm1267_vm1 = vcmp.eq.s32.totalorder %v1266_v26, 0 }
 0x1a4   : > { %v715_v35 = vpop.f32.mrf.mxu0  ;;  %v828_v36 = vpop.f32.mrf.mxu1 }
 0x1a5   : > { %v1305_v38 = vmul.f32 %v2081_v10, %v1052_v33  ;;  %v829_v39 = vadd.f32 %v828_v36, %v715_v35  ;;  %v1225_v61 = vmul.f32 %v1052_v33, %v1052_v33  ;;  %v1187_v0 = vadd.f32 %v1186_v60, %v1052_v33 }
 0x1a7   : > { %v1341_v43 = vadd.f32 %v2089_v14, %v1305_v38  ;;  %v1256_v4 = vadd.f32 %v1255_v63, %v1225_v61 }
 0x1a8   : > { %v941_v44 = vpop.f32.mrf.mxu2 }
 0x1a9   : > { %1373 = vst [vmem:[%s2097_s25 + $0xe8] sm:$0xff] %v1341_v43  ;;  %v942_v46 = vadd.f32 %v941_v44, %v829_v39  ;;  %v1054_v47 = vpop.f32.mrf.mxu3 }
 0x1ab   : > { %v1055_v31 = vadd.f32 %v1054_v47, %v942_v46 }
 0x1ac   : > { %v718_v53 = vpop.f32.mrf.mxu0  ;;  %v831_v54 = vpop.f32.mrf.mxu1 }
 0x1ad   : > { %v1306_v40 = vmul.f32 %v2081_v10, %v1055_v31  ;;  %v832_v57 = vadd.f32 %v831_v54, %v718_v53  ;;  %v1226_v58 = vmul.f32 %v1055_v31, %v1055_v31  ;;  %v1188_v3 = vadd.f32 %v1187_v0, %v1055_v31 }
 0x1af   : > { %v1342_v49 = vadd.f32 %v2089_v14, %v1306_v40  ;;  %v1257_v7 = vadd.f32 %v1256_v4, %v1226_v58  ;;  %v1632_v14 = vld [vmem:[%s2323_s2] ss:$0 sm:$0xff] }
 0x1b0   : > { %v944_v62 = vpop.f32.mrf.mxu2 }
 0x1b1   : > { %1374 = vst [vmem:[%s2097_s25 + $0xf0] sm:$0xff] %v1342_v49  ;;  %v945_v1 = vadd.f32 %v944_v62, %v832_v57  ;;  %v1057_v2 = vpop.f32.mrf.mxu3 }
 0x1b3   : > { %v1058_v6 = vadd.f32 %v1057_v2, %v945_v1 }
 0x1b5   : > { %v1189_v10 = vadd.f32 %v1188_v3, %v1058_v6  ;;  %v1227_v8 = vmul.f32 %v1058_v6, %v1058_v6  ;;  %v1307_v9 = vmul.f32 %v1632_v14, %v1058_v6 }
 0x1b7   : > { %v1190_v12 = vrot.slane %v1189_v10, 4  ;;  %v1258_v13 = vadd.f32 %v1257_v7, %v1227_v8  ;;  %v1343_v17 = vadd.f32 %v1633_v16, %v1307_v9 }
 0x1b9   : > { %v1191_v18 = vadd.f32 %v1190_v12, %v1189_v10  ;;  %v1259_v19 = vrot.slane %v1258_v13, 4  ;;  %1375 = vst [vmem:[%s2097_s25 + $0xf8] sm:$0xff] %v1343_v17  ;;  %s1650_s25 = scalar_lea.hbm %s1649_s7, 8 }
 0x1ba   : > { %p1651_p12 = scmp.ne.s32.totalorder %s1649_s7, %s1650_s25  ;;  %p1656_p2 = scmp.lt.s32.totalorder %s1654_s29, %s1650_s25 }
 0x1bb   : > { %v1192_v21 = vrot.slane %v1191_v18, 2  ;;  %v1260_v23 = vadd.f32 %v1259_v19, %v1258_v13 }
 0x1bc   : > { %p1652_p13 = pnand %p1651_p12, %p1784_p4  ;;  %p1657_p3 = por %p1656_p2, %p1655_p1 }
 0x1bd   : > { %v1193_v24 = vadd.f32 %v1192_v21, %v1191_v18  ;;  %v1261_v25 = vrot.slane %v1260_v23, 2 }
 0x1be   : > { %p1653_p0 = pneg %p1652_p13 }
 0x1bf   : > { %v1262_v27 = vadd.f32 %v1261_v25, %v1260_v23  ;;  %v1194_v28 = vrot.slane %v1193_v24, 1 }
 0x1c0   : > { %p1658_p5 = pnand %p1657_p3, %p1653_p0 }
 0x1c1   : > { %v1263_v29 = vrot.slane %v1262_v27, 1  ;;  %v1195_v32 = vadd.f32 %v1194_v28, %v1193_v24 }
 0x1c3   : > { %v1264_v30 = vadd.f32 %v1263_v29, %v1262_v27 }
 0x1c5   : > { %v1269_v33 = vsel %vm1268_vm0, %v1264_v30, 0.0 }
 0x1c6   : > { %v1270_v11 = vsel %vm1267_vm1, %v1195_v32, %v1269_v33 }
 0x1c7   : > { %1271 = vst [vmem:[%s311_s16] sm:$0xff] %v1270_v11 }
 0x1c8   : > { %1661 = shalt.err (!%p1658_p5)
}
 0x1c9   : > { %1575 = dma.vmem_to_hbm [thread:$0]  (%p1784_p4), %s1403_s17, 128, %s1405_s24, %s1385_s21  }
 0x1ca PF: > { %p1581_p6 = scmp.ge.s32.totalorder %s1712_s23, 2  ;;  %s1427_s9 = sand.u32 1, %s1692_s18  }
 0x1cb   : > { %s1428_s11 = scalar_lea.sflag [#allocation4], %s1427_s9 }
 0x1cc   : > { %p1578_p7 = pnand %p1581_p6, %p1791_p8 }
 0x1ce   : > { %p1579_p9 = pneg %p1578_p7 }
 0x1d0   : > { %1687 = dma.done.wait (%p1579_p9), %s1428_s11, 128  }
 0x1d1   : > { %1689 = vsyncadd (%p1579_p9), %s1428_s11, 4294967168  ;;  %s19_s23 = sadd.s32 1, %s1712_s23   ;;  %s2330_s18 = smov %s1696_s19 }
 0x1d2   : > { %p16_p10 = scmp.ge.s32.totalorder %s19_s23, 10   ;;  %s2331_s19 = smov %s1700_s20 }
 0x1d3   : > { %s2332_s20 = smov %s1797_s6  ;;  %s2333_s21 = smov %s1708_s22 }
 0x1d4   : > { %s2334_s22 = smov %s2336_s26  ;;  %18 = sbr.rel (!%p16_p10) target bundleno = 4 (0x4), region = 100 }
 0x1d9   :  { %1434 = vsyncpa [#allocation4], 1 }
 0x1da   :  { %1436 = vsyncpa [#allocation4 + $0x1], 1 }

// kernel: conv_decoder_forward.41
= control target key start
LH: loop header
LB: loop body
LE: loop exit
PB: predicated region body
PF: predicated region fallthrough
CT: control target
= control target key end

     0   :  { %11 = vsyncpa [#allocation4], 0  ;;  %s2435_s0 = inlined_call_operand.vmem [shape: f32[2048,512], index: 0, kind: input, shape index: {}]   ;;  %s2436_s1 = inlined_call_operand.vmem [shape: f32[512,128], index: 1, kind: input, shape index: {}]   ;;  %s2437_s2 = inlined_call_operand.vmem [shape: f32[1,128], index: 2, kind: input, shape index: {}]   ;;  %s2438_s3 = inlined_call_operand.vmem [shape: f32[1,128], index: 3, kind: input, shape index: {}]   ;;  %s2439_s4 = inlined_call_operand.vmem [shape: f32[2048,128], index: 4, kind: output, shape index: {0}]   ;;  %s2440_s5 = inlined_call_operand.hbm [shape: f32[64,128], index: 5, kind: output, shape index: {1}]  }
   0x1   :  { %13 = vsyncpa [#allocation4 + $0x1], 0  ;;  %s1840_s18 = smov 0   ;;  %s1842_s19 = smov 0  }
   0x2   :  { %s1844_s20 = smov 0   ;;  %s1846_s21 = smov 0  }
   0x3   :  { %s1848_s22 = smov 0   ;;  %s1850_s23 = smov 0  }
   0x4 LB: > { %s1588_s24 = sadd.s32 4294967295, %s1808_s23   ;;  %s1589_s25 = sadd.s32 4294967294, %s1808_s23   ;;  %s1808_s23 = sphi %s1850_s23, %s19_s23   ;;  %s1804_s22 = sphi %s1848_s22, %s2448_s22   ;;  %s1800_s21 = sphi %s1846_s21, %s2447_s21   ;;  %s1796_s20 = sphi %s1844_s20, %s2446_s20   ;;  %s1792_s19 = sphi %s1842_s19, %s2445_s19   ;;  %s1788_s18 = sphi %s1840_s18, %s2444_s18  }
   0x5   : > { %s38_s26 = sadd.s32 1, %s1804_s22  ;;  %s183_s27 = sadd.s32 1, %s1796_s20 }
   0x6   : > { %p40_p0 = scmp.ge.s32.totalorder %s38_s26, 8  ;;  %p193_p1 = scmp.ne.s32.totalorder %s1796_s20, %s1792_s19 }
   0x7   : > { %p194_p2 = scmp.eq.s32.totalorder %s1588_s24, 7  ;;  %p199_p3 = scmp.ne.s32.totalorder %s1792_s19, %s1788_s18 }
   0x8   : > { %s2450_s26 = smov (%p40_p0, %s38_s26), 0  ;;  %p200_p5 = scmp.eq.s32.totalorder %s1589_s25, 7 }
   0x9   : > { %p1880_p4 = por %p194_p2, %p193_p1  ;;  %s178_s29 = ssub.s32 %s1804_s22, %s2450_s26 }
   0xa   : > { %p1595_p6 = scmp.ge.s32.totalorder %s1808_s23, 1  ;;  %p181_p7 = scmp.eq.s32.totalorder %s178_s29, 0 }
   0xb   : > { %p1887_p8 = por %p200_p5, %p199_p3  ;;  %p257_p9 = scmp.lt.s32.totalorder %s1808_s23, 9 }
   0xc   : > { %s1893_s6 = scalar_select %p181_p7, %s1796_s20, %s183_s27  }
   0xd   : > { %p258_p10 = pnand %p1595_p6, %p257_p9 }
   0xe   : > { %s1597_s7 = sshll.u32 (!%p258_p10), %s1800_s21, 5  ;;  %s309_s9 = sand.u32 (!%p258_p10), 1, %s1792_s19  }
   0xf   : > { %261 = sbr.rel (%p258_p10) target bundleno = 458 (0x1ca), region = 36  ;;  %p2006_p11 = scmp.lt.s32.totalorder (!%p258_p10), %s1597_s7, 255 }
  0x10   : > { %s1596_s10 = sshll.u32 (!%p258_p10), %s309_s9, 3  ;;  %s1603_s11 = sshll.u32 (!%p258_p10), %s1800_s21, 3 }
  0x11   : > { %s1432_s27 = scalar_lea.hbm (!%p258_p10), %s2440_s5, %s1603_s11  ;;  %s311_s16 = scalar_lea.vmem (!%p258_p10), [#allocation3], %s1596_s10 }
  0x12   : > { %s1436_s24 = sshll.u32 (!%p258_p10), %s1432_s27, 4  ;;  %s1417_s21 = scalar_lea.sflag (!%p258_p10), [#allocation4], %s309_s9  ;;  %s1437_s24 = int_to_ptr.hbm [resolvable:$true] %s1436_s24 }
  0x13   : > { %s1744_s25 = sshra.s32 (!%p258_p10), %s1437_s24, 4  ;;  %s1750_s29 = scalar_lea.hbm (!%p258_p10), %s2440_s5, 64  ;;  %s1745_s25 = int_to_ptr.hbm [resolvable:$true] %s1744_s25 }
  0x14   : > { %v591_v0 = vld [vmem:[%s2436_s1 + $0x178] sm:$0xff]  ;;  %v590_v1 = vld [vmem:[%s2436_s1 + $0x170] sm:$0xff]  ;;  %v589_v5 = vld [vmem:[%s2436_s1 + $0x168] sm:$0xff]  ;;  %s2452_s7 = smov (!%p2006_p11, %s1597_s7), 255  ;;  %p1751_p1 = scmp.lt.s32.totalorder %s1745_s25, %s2440_s5 }
  0x15   : > { %v607_v2 = vld [vmem:[%s2436_s1 + $0x1f8] sm:$0xff]  ;;  %834 = vmatpush.msra.mxu2 %v591_v0  ;;  %v606_v6 = vld [vmem:[%s2436_s1 + $0x1f0] sm:$0xff]  ;;  %v605_v9 = vld [vmem:[%s2436_s1 + $0x1e8] sm:$0xff]  ;;  %s1606_s12 = sshll.u32 %s2452_s7, 5  ;;  %s1601_s17 = sshll.u32 %s2452_s7, 3 }
  0x16   : > { %947 = vmatpush.msra.mxu3 %v607_v2  ;;  %v559_v3 = vld [vmem:[%s2436_s1 + $0x78] sm:$0xff]  ;;  %v558_v7 = vld [vmem:[%s2436_s1 + $0x70] sm:$0xff]  ;;  %v557_v10 = vld [vmem:[%s2436_s1 + $0x68] sm:$0xff]  ;;  %s2086_s14 = scalar_lea.vmem %s2435_s0, %s1606_s12  ;;  %s2198_s12 = scalar_lea.vmem %s2439_s4, %s1601_s17 }
  0x17   : > { %v575_v4 = vld [vmem:[%s2436_s1 + $0xf8] sm:$0xff]  ;;  %608 = vmatpush.msra.mxu0 %v559_v3  ;;  %v574_v8 = vld [vmem:[%s2436_s1 + $0xf0] sm:$0xff]  ;;  %835 = vmatpush.msra.mxu2 %v590_v1  ;;  %v588_v11 = vld [vmem:[%s2436_s1 + $0x160] sm:$0xff]  ;;  %s1434_s17 = sshll.u32 %s311_s16, 4  ;;  %s1746_s7 = scalar_lea.hbm %s1745_s25, 8  ;;  %s1435_s17 = int_to_ptr.vmem [resolvable:$true] %s1434_s17 }
  0x18   : > { %721 = vmatpush.msra.mxu1 %v575_v4  ;;  %948 = vmatpush.msra.mxu3 %v606_v6  ;;  %v573_v12 = vld [vmem:[%s2436_s1 + $0xe8] sm:$0xff]  ;;  %v604_v13 = vld [vmem:[%s2436_s1 + $0x1e0] sm:$0xff]  ;;  %v587_v16 = vld [vmem:[%s2436_s1 + $0x158] sm:$0xff]  ;;  %p1747_p12 = scmp.ne.s32.totalorder %s1745_s25, %s1746_s7  ;;  %p1752_p2 = scmp.lt.s32.totalorder %s1750_s29, %s1746_s7 }
  0x19   : > { %609 = vmatpush.msra.mxu0 %v558_v7  ;;  %836 = vmatpush.msra.mxu2 %v589_v5  ;;  %v556_v14 = vld [vmem:[%s2436_s1 + $0x60] sm:$0xff]  ;;  %v603_v17 = vld [vmem:[%s2436_s1 + $0x1d8] sm:$0xff]  ;;  %v586_v20 = vld [vmem:[%s2436_s1 + $0x150] sm:$0xff] }
  0x1a   : > { %722 = vmatpush.msra.mxu1 %v574_v8  ;;  %949 = vmatpush.msra.mxu3 %v605_v9  ;;  %v572_v15 = vld [vmem:[%s2436_s1 + $0xe0] sm:$0xff]  ;;  %v555_v18 = vld [vmem:[%s2436_s1 + $0x58] sm:$0xff]  ;;  %v602_v21 = vld [vmem:[%s2436_s1 + $0x1d0] sm:$0xff]  ;;  %p1748_p13 = pnand %p1747_p12, %p1880_p4  ;;  %p1753_p3 = por %p1752_p2, %p1751_p1 }
  0x1b   : > { %610 = vmatpush.msra.mxu0 %v557_v10  ;;  %837 = vmatpush.msra.mxu2 %v588_v11  ;;  %v571_v19 = vld [vmem:[%s2436_s1 + $0xd8] sm:$0xff]  ;;  %v554_v22 = vld [vmem:[%s2436_s1 + $0x50] sm:$0xff]  ;;  %v585_v24 = vld [vmem:[%s2436_s1 + $0x148] sm:$0xff] }
  0x1c   : > { %723 = vmatpush.msra.mxu1 %v573_v12  ;;  %950 = vmatpush.msra.mxu3 %v604_v13  ;;  %v570_v23 = vld [vmem:[%s2436_s1 + $0xd0] sm:$0xff]  ;;  %v601_v25 = vld [vmem:[%s2436_s1 + $0x1c8] sm:$0xff]  ;;  %v584_v28 = vld [vmem:[%s2436_s1 + $0x140] sm:$0xff]  ;;  %p1749_p0 = pneg %p1748_p13 }
  0x1d   : > { %611 = vmatpush.msra.mxu0 %v556_v14  ;;  %838 = vmatpush.msra.mxu2 %v587_v16  ;;  %v553_v26 = vld [vmem:[%s2436_s1 + $0x48] sm:$0xff]  ;;  %v600_v29 = vld [vmem:[%s2436_s1 + $0x1c0] sm:$0xff]  ;;  %v583_v32 = vld [vmem:[%s2436_s1 + $0x138] sm:$0xff] }
  0x1e   : > { %724 = vmatpush.msra.mxu1 %v572_v15  ;;  %951 = vmatpush.msra.mxu3 %v603_v17  ;;  %v569_v27 = vld [vmem:[%s2436_s1 + $0xc8] sm:$0xff]  ;;  %v552_v30 = vld [vmem:[%s2436_s1 + $0x40] sm:$0xff]  ;;  %v599_v33 = vld [vmem:[%s2436_s1 + $0x1b8] sm:$0xff]  ;;  %p1754_p5 = pnand %p1753_p3, %p1749_p0 }
  0x1f   : > { %612 = vmatpush.msra.mxu0 %v555_v18  ;;  %839 = vmatpush.msra.mxu2 %v586_v20  ;;  %v568_v31 = vld [vmem:[%s2436_s1 + $0xc0] sm:$0xff]  ;;  %v551_v34 = vld [vmem:[%s2436_s1 + $0x38] sm:$0xff]  ;;  %v582_v36 = vld [vmem:[%s2436_s1 + $0x130] sm:$0xff] }
  0x20   : > { %725 = vmatpush.msra.mxu1 %v571_v19  ;;  %952 = vmatpush.msra.mxu3 %v602_v21  ;;  %v567_v35 = vld [vmem:[%s2436_s1 + $0xb8] sm:$0xff]  ;;  %v598_v37 = vld [vmem:[%s2436_s1 + $0x1b0] sm:$0xff]  ;;  %v581_v40 = vld [vmem:[%s2436_s1 + $0x128] sm:$0xff] }
  0x21   : > { %613 = vmatpush.msra.mxu0 %v554_v22  ;;  %840 = vmatpush.msra.mxu2 %v585_v24  ;;  %v550_v38 = vld [vmem:[%s2436_s1 + $0x30] sm:$0xff]  ;;  %v597_v41 = vld [vmem:[%s2436_s1 + $0x1a8] sm:$0xff]  ;;  %v580_v44 = vld [vmem:[%s2436_s1 + $0x120] sm:$0xff] }
  0x22   : > { %726 = vmatpush.msra.mxu1 %v570_v23  ;;  %953 = vmatpush.msra.mxu3 %v601_v25  ;;  %v566_v39 = vld [vmem:[%s2436_s1 + $0xb0] sm:$0xff]  ;;  %v549_v42 = vld [vmem:[%s2436_s1 + $0x28] sm:$0xff]  ;;  %v596_v45 = vld [vmem:[%s2436_s1 + $0x1a0] sm:$0xff] }
  0x23   : > { %614 = vmatpush.msra.mxu0 %v553_v26  ;;  %841 = vmatpush.msra.mxu2 %v584_v28  ;;  %v565_v43 = vld [vmem:[%s2436_s1 + $0xa8] sm:$0xff]  ;;  %v548_v46 = vld [vmem:[%s2436_s1 + $0x20] sm:$0xff]  ;;  %v579_v48 = vld [vmem:[%s2436_s1 + $0x118] sm:$0xff] }
  0x24   : > { %727 = vmatpush.msra.mxu1 %v569_v27  ;;  %954 = vmatpush.msra.mxu3 %v600_v29  ;;  %v564_v47 = vld [vmem:[%s2436_s1 + $0xa0] sm:$0xff]  ;;  %v595_v49 = vld [vmem:[%s2436_s1 + $0x198] sm:$0xff]  ;;  %v578_v52 = vld [vmem:[%s2436_s1 + $0x110] sm:$0xff] }
  0x25   : > { %615 = vmatpush.msra.mxu0 %v552_v30  ;;  %842 = vmatpush.msra.mxu2 %v583_v32  ;;  %v547_v50 = vld [vmem:[%s2436_s1 + $0x18] sm:$0xff]  ;;  %v594_v53 = vld [vmem:[%s2436_s1 + $0x190] sm:$0xff]  ;;  %v577_v56 = vld [vmem:[%s2436_s1 + $0x108] sm:$0xff] }
  0x26   : > { %728 = vmatpush.msra.mxu1 %v568_v31  ;;  %955 = vmatpush.msra.mxu3 %v599_v33  ;;  %v563_v51 = vld [vmem:[%s2436_s1 + $0x98] sm:$0xff]  ;;  %v546_v54 = vld [vmem:[%s2436_s1 + $0x10] sm:$0xff]  ;;  %v593_v57 = vld [vmem:[%s2436_s1 + $0x188] sm:$0xff] }
  0x27   : > { %616 = vmatpush.msra.mxu0 %v551_v34  ;;  %843 = vmatpush.msra.mxu2 %v582_v36  ;;  %v562_v55 = vld [vmem:[%s2436_s1 + $0x90] sm:$0xff]  ;;  %v545_v58 = vld [vmem:[%s2436_s1 + $0x8] sm:$0xff]  ;;  %v576_v60 = vld [vmem:[%s2436_s1 + $0x100] sm:$0xff] }
  0x28   : > { %729 = vmatpush.msra.mxu1 %v567_v35  ;;  %956 = vmatpush.msra.mxu3 %v598_v37  ;;  %v561_v59 = vld [vmem:[%s2436_s1 + $0x88] sm:$0xff]  ;;  %v592_v61 = vld [vmem:[%s2436_s1 + $0x180] sm:$0xff]  ;;  %v418_v62 = vld [vmem:[%s2086_s14 + $0x10] sm:$0xff] }
  0x29   : > { %617 = vmatpush.msra.mxu0 %v550_v38  ;;  %844 = vmatpush.msra.mxu2 %v581_v40  ;;  %v419_v63 = vld [vmem:[%s2086_s14 + $0x18] sm:$0xff]  ;;  %v544_v0 = vld [vmem:[%s2436_s1] sm:$0xff]  ;;  %v417_v3 = vld [vmem:[%s2086_s14 + $0x8] sm:$0xff] }
  0x2a   : > { %730 = vmatpush.msra.mxu1 %v566_v39  ;;  %957 = vmatpush.msra.mxu3 %v597_v41  ;;  %v560_v1 = vld [vmem:[%s2436_s1 + $0x80] sm:$0xff]  ;;  %v422_v4 = vld [vmem:[%s2086_s14 + $0x30] sm:$0xff]  ;;  %v423_v5 = vld [vmem:[%s2086_s14 + $0x38] sm:$0xff] }
  0x2b   : > { %618 = vmatpush.msra.mxu0 %v549_v42  ;;  %845 = vmatpush.msra.mxu2 %v580_v44  ;;  %v416_v2 = vld [vmem:[%s2086_s14] sm:$0xff]  ;;  %v421_v7 = vld [vmem:[%s2086_s14 + $0x28] sm:$0xff]  ;;  %v426_v8 = vld [vmem:[%s2086_s14 + $0x50] sm:$0xff] }
  0x2c   : > { %731 = vmatpush.msra.mxu1 %v565_v43  ;;  %958 = vmatpush.msra.mxu3 %v596_v45  ;;  %v420_v6 = vld [vmem:[%s2086_s14 + $0x20] sm:$0xff]  ;;  %v427_v9 = vld [vmem:[%s2086_s14 + $0x58] sm:$0xff]  ;;  %v425_v11 = vld [vmem:[%s2086_s14 + $0x48] sm:$0xff] }
  0x2d   : > { %619 = vmatpush.msra.mxu0 %v548_v46  ;;  %846 = vmatpush.msra.mxu2 %v579_v48  ;;  %v424_v10 = vld [vmem:[%s2086_s14 + $0x40] sm:$0xff]  ;;  %v430_v12 = vld [vmem:[%s2086_s14 + $0x70] sm:$0xff]  ;;  %v431_v13 = vld [vmem:[%s2086_s14 + $0x78] sm:$0xff] }
  0x2e   : > { %732 = vmatpush.msra.mxu1 %v564_v47  ;;  %959 = vmatpush.msra.mxu3 %v595_v49  ;;  %v428_v14 = vld [vmem:[%s2086_s14 + $0x60] sm:$0xff]  ;;  %v429_v15 = vld [vmem:[%s2086_s14 + $0x68] sm:$0xff]  ;;  %v434_v16 = vld [vmem:[%s2086_s14 + $0x90] sm:$0xff] }
  0x2f   : > { %620 = vmatpush.msra.mxu0 %v547_v50  ;;  %847 = vmatpush.msra.mxu2 %v578_v52  ;;  %v435_v17 = vld [vmem:[%s2086_s14 + $0x98] sm:$0xff]  ;;  %v432_v18 = vld [vmem:[%s2086_s14 + $0x80] sm:$0xff]  ;;  %v433_v19 = vld [vmem:[%s2086_s14 + $0x88] sm:$0xff] }
  0x30   : > { %733 = vmatpush.msra.mxu1 %v563_v51  ;;  %960 = vmatpush.msra.mxu3 %v594_v53  ;;  %v438_v20 = vld [vmem:[%s2086_s14 + $0xb0] sm:$0xff]  ;;  %v439_v21 = vld [vmem:[%s2086_s14 + $0xb8] sm:$0xff]  ;;  %v436_v22 = vld [vmem:[%s2086_s14 + $0xa0] sm:$0xff] }
  0x31   : > { %621 = vmatpush.msra.mxu0 %v546_v54  ;;  %848 = vmatpush.msra.mxu2 %v577_v56  ;;  %v437_v23 = vld [vmem:[%s2086_s14 + $0xa8] sm:$0xff]  ;;  %v442_v24 = vld [vmem:[%s2086_s14 + $0xd0] sm:$0xff]  ;;  %v443_v25 = vld [vmem:[%s2086_s14 + $0xd8] sm:$0xff] }
  0x32   : > { %734 = vmatpush.msra.mxu1 %v562_v55  ;;  %961 = vmatpush.msra.mxu3 %v593_v57  ;;  %v440_v26 = vld [vmem:[%s2086_s14 + $0xc0] sm:$0xff]  ;;  %v441_v27 = vld [vmem:[%s2086_s14 + $0xc8] sm:$0xff]  ;;  %v446_v28 = vld [vmem:[%s2086_s14 + $0xf0] sm:$0xff] }
  0x33   : > { %622 = vmatpush.msra.mxu0 %v545_v58  ;;  %849 = vmatpush.msra.mxu2 %v576_v60  ;;  %v447_v29 = vld [vmem:[%s2086_s14 + $0xf8] sm:$0xff]  ;;  %v444_v30 = vld [vmem:[%s2086_s14 + $0xe0] sm:$0xff]  ;;  %v445_v31 = vld [vmem:[%s2086_s14 + $0xe8] sm:$0xff] }
  0x34   : > { %735 = vmatpush.msra.mxu1 %v561_v59  ;;  %962 = vmatpush.msra.mxu3 %v592_v61  ;;  %v450_v32 = vld [vmem:[%s2086_s14 + $0x110] sm:$0xff]  ;;  %v451_v33 = vld [vmem:[%s2086_s14 + $0x118] sm:$0xff]  ;;  %v448_v34 = vld [vmem:[%s2086_s14 + $0x100] sm:$0xff] }
  0x35   : > { %850 = vmatmul.f32.vlgmr.msra.gmra.mxu2 %v418_v62  ;;  %963 = vmatmul.f32.vlgmr.msra.gmra.mxu3 %v419_v63  ;;  %v449_v35 = vld [vmem:[%s2086_s14 + $0x108] sm:$0xff]  ;;  %v454_v36 = vld [vmem:[%s2086_s14 + $0x130] sm:$0xff]  ;;  %v455_v37 = vld [vmem:[%s2086_s14 + $0x138] sm:$0xff] }
  0x36   : > { %623 = vmatpush.msra.mxu0 %v544_v0  ;;  %736 = vmatpush.msra.mxu1 %v560_v1  ;;  %v452_v38 = vld [vmem:[%s2086_s14 + $0x120] sm:$0xff]  ;;  %v453_v39 = vld [vmem:[%s2086_s14 + $0x128] sm:$0xff]  ;;  %v458_v40 = vld [vmem:[%s2086_s14 + $0x150] sm:$0xff] }
  0x37   : > { %624 = vmatmul.f32.vlgmr.msra.gmra.mxu0 %v416_v2  ;;  %737 = vmatmul.f32.vlgmr.msra.gmra.mxu1 %v417_v3  ;;  %v459_v41 = vld [vmem:[%s2086_s14 + $0x158] sm:$0xff]  ;;  %v456_v42 = vld [vmem:[%s2086_s14 + $0x140] sm:$0xff]  ;;  %v457_v43 = vld [vmem:[%s2086_s14 + $0x148] sm:$0xff] }
  0x38   : > { %v462_v44 = vld [vmem:[%s2086_s14 + $0x170] sm:$0xff]  ;;  %v463_v45 = vld [vmem:[%s2086_s14 + $0x178] sm:$0xff]  ;;  %v460_v46 = vld [vmem:[%s2086_s14 + $0x160] sm:$0xff] }
  0x39   : > { %v461_v47 = vld [vmem:[%s2086_s14 + $0x168] sm:$0xff]  ;;  %v466_v48 = vld [vmem:[%s2086_s14 + $0x190] sm:$0xff]  ;;  %v467_v49 = vld [vmem:[%s2086_s14 + $0x198] sm:$0xff] }
  0x3a   : > { %v464_v50 = vld [vmem:[%s2086_s14 + $0x180] sm:$0xff]  ;;  %v465_v51 = vld [vmem:[%s2086_s14 + $0x188] sm:$0xff]  ;;  %v470_v52 = vld [vmem:[%s2086_s14 + $0x1b0] sm:$0xff] }
  0x3b   : > { %v471_v53 = vld [vmem:[%s2086_s14 + $0x1b8] sm:$0xff]  ;;  %v468_v54 = vld [vmem:[%s2086_s14 + $0x1a0] sm:$0xff]  ;;  %v469_v55 = vld [vmem:[%s2086_s14 + $0x1a8] sm:$0xff] }
  0x3c   : > { %v474_v56 = vld [vmem:[%s2086_s14 + $0x1d0] sm:$0xff]  ;;  %v475_v57 = vld [vmem:[%s2086_s14 + $0x1d8] sm:$0xff]  ;;  %v472_v58 = vld [vmem:[%s2086_s14 + $0x1c0] sm:$0xff] }
  0x3d   : > { %853 = vmatmul.f32.gmra.mxu2 %v422_v4  ;;  %966 = vmatmul.f32.gmra.mxu3 %v423_v5  ;;  %v473_v59 = vld [vmem:[%s2086_s14 + $0x1c8] sm:$0xff]  ;;  %v478_v60 = vld [vmem:[%s2086_s14 + $0x1f0] sm:$0xff]  ;;  %v479_v61 = vld [vmem:[%s2086_s14 + $0x1f8] sm:$0xff] }
  0x3e   : > { %v476_v62 = vld [vmem:[%s2086_s14 + $0x1e0] sm:$0xff]  ;;  %v477_v63 = vld [vmem:[%s2086_s14 + $0x1e8] sm:$0xff]  ;;  %v482_v0 = vld [vmem:[%s2086_s14 + $0x210] sm:$0xff] }
  0x3f   : > { %627 = vmatmul.f32.gmra.mxu0 %v420_v6  ;;  %740 = vmatmul.f32.gmra.mxu1 %v421_v7  ;;  %v483_v1 = vld [vmem:[%s2086_s14 + $0x218] sm:$0xff]  ;;  %v480_v4 = vld [vmem:[%s2086_s14 + $0x200] sm:$0xff]  ;;  %v481_v5 = vld [vmem:[%s2086_s14 + $0x208] sm:$0xff] }
  0x45   : > { %856 = vmatmul.f32.gmra.mxu2 %v426_v8  ;;  %969 = vmatmul.f32.gmra.mxu3 %v427_v9 }
  0x47   : > { %630 = vmatmul.f32.gmra.mxu0 %v424_v10  ;;  %743 = vmatmul.f32.gmra.mxu1 %v425_v11  ;;  %v2177_v10 = vld [vmem:[%s2437_s2] ss:$0 sm:$0xff]  ;;  %v486_v11 = vld [vmem:[%s2086_s14 + $0x230] sm:$0xff] }
  0x4d   : > { %859 = vmatmul.f32.gmra.mxu2 %v430_v12  ;;  %972 = vmatmul.f32.gmra.mxu3 %v431_v13  ;;  %v487_v12 = vld [vmem:[%s2086_s14 + $0x238] sm:$0xff] }
  0x4f   : > { %633 = vmatmul.f32.gmra.mxu0 %v428_v14  ;;  %746 = vmatmul.f32.gmra.mxu1 %v429_v15  ;;  %v2184_v14 = vld [vmem:[%s2438_s3] ss:$0 sm:$0xff] }
  0x55   : > { %862 = vmatmul.f32.gmra.mxu2 %v434_v16  ;;  %975 = vmatmul.f32.gmra.mxu3 %v435_v17  ;;  %v484_v17 = vld [vmem:[%s2086_s14 + $0x220] sm:$0xff] }
  0x57   : > { %636 = vmatmul.f32.gmra.mxu0 %v432_v18  ;;  %749 = vmatmul.f32.gmra.mxu1 %v433_v19  ;;  %v485_v18 = vld [vmem:[%s2086_s14 + $0x228] sm:$0xff] }
  0x5d   : > { %865 = vmatmul.f32.gmra.mxu2 %v438_v20  ;;  %978 = vmatmul.f32.gmra.mxu3 %v439_v21 }
  0x5f   : > { %639 = vmatmul.f32.gmra.mxu0 %v436_v22  ;;  %752 = vmatmul.f32.gmra.mxu1 %v437_v23 }
  0x65   : > { %868 = vmatmul.f32.gmra.mxu2 %v442_v24  ;;  %981 = vmatmul.f32.gmra.mxu3 %v443_v25  ;;  %v490_v25 = vld [vmem:[%s2086_s14 + $0x250] sm:$0xff] }
  0x67   : > { %642 = vmatmul.f32.gmra.mxu0 %v440_v26  ;;  %755 = vmatmul.f32.gmra.mxu1 %v441_v27  ;;  %v491_v27 = vld [vmem:[%s2086_s14 + $0x258] sm:$0xff] }
  0x6d   : > { %871 = vmatmul.f32.gmra.mxu2 %v446_v28  ;;  %984 = vmatmul.f32.gmra.mxu3 %v447_v29 }
  0x6f   : > { %645 = vmatmul.f32.gmra.mxu0 %v444_v30  ;;  %758 = vmatmul.f32.gmra.mxu1 %v445_v31  ;;  %v488_v31 = vld [vmem:[%s2086_s14 + $0x240] sm:$0xff] }
  0x75   : > { %874 = vmatmul.f32.gmra.mxu2 %v450_v32  ;;  %987 = vmatmul.f32.gmra.mxu3 %v451_v33  ;;  %v489_v32 = vld [vmem:[%s2086_s14 + $0x248] sm:$0xff] }
  0x77   : > { %648 = vmatmul.f32.gmra.mxu0 %v448_v34  ;;  %761 = vmatmul.f32.gmra.mxu1 %v449_v35 }
  0x7d   : > { %877 = vmatmul.f32.gmra.mxu2 %v454_v36  ;;  %990 = vmatmul.f32.gmra.mxu3 %v455_v37 }
  0x7f   : > { %651 = vmatmul.f32.gmra.mxu0 %v452_v38  ;;  %764 = vmatmul.f32.gmra.mxu1 %v453_v39 }
  0x85   : > { %880 = vmatmul.f32.gmra.mxu2 %v458_v40  ;;  %993 = vmatmul.f32.gmra.mxu3 %v459_v41 }
  0x87   : > { %654 = vmatmul.f32.gmra.mxu0 %v456_v42  ;;  %767 = vmatmul.f32.gmra.mxu1 %v457_v43  ;;  %v494_v43 = vld [vmem:[%s2086_s14 + $0x270] sm:$0xff] }
  0x8d   : > { %883 = vmatmul.f32.gmra.mxu2 %v462_v44  ;;  %996 = vmatmul.f32.gmra.mxu3 %v463_v45  ;;  %v495_v45 = vld [vmem:[%s2086_s14 + $0x278] sm:$0xff] }
  0x8f   : > { %657 = vmatmul.f32.gmra.mxu0 %v460_v46  ;;  %770 = vmatmul.f32.gmra.mxu1 %v461_v47 }
  0x95   : > { %886 = vmatmul.f32.gmra.mxu2 %v466_v48  ;;  %999 = vmatmul.f32.gmra.mxu3 %v467_v49  ;;  %v492_v48 = vld [vmem:[%s2086_s14 + $0x260] sm:$0xff]  ;;  %v493_v49 = vld [vmem:[%s2086_s14 + $0x268] sm:$0xff] }
  0x97   : > { %660 = vmatmul.f32.gmra.mxu0 %v464_v50  ;;  %773 = vmatmul.f32.gmra.mxu1 %v465_v51 }
  0x9d   : > { %889 = vmatmul.f32.gmra.mxu2 %v470_v52  ;;  %1002 = vmatmul.f32.gmra.mxu3 %v471_v53 }
  0x9f   : > { %663 = vmatmul.f32.gmra.mxu0 %v468_v54  ;;  %776 = vmatmul.f32.gmra.mxu1 %v469_v55 }
  0xa5   : > { %892 = vmatmul.f32.gmra.mxu2 %v474_v56  ;;  %1005 = vmatmul.f32.gmra.mxu3 %v475_v57 }
  0xa7   : > { %666 = vmatmul.f32.gmra.mxu0 %v472_v58  ;;  %779 = vmatmul.f32.gmra.mxu1 %v473_v59 }
  0xad   : > { %895 = vmatmul.f32.gmra.mxu2 %v478_v60  ;;  %1008 = vmatmul.f32.gmra.mxu3 %v479_v61  ;;  %v498_v60 = vld [vmem:[%s2086_s14 + $0x290] sm:$0xff] }
  0xaf   : > { %669 = vmatmul.f32.gmra.mxu0 %v476_v62  ;;  %782 = vmatmul.f32.gmra.mxu1 %v477_v63  ;;  %v499_v62 = vld [vmem:[%s2086_s14 + $0x298] sm:$0xff] }
  0xb4   : > { %v625_v2 = vpop.f32.mrf.mxu0  ;;  %v738_v3 = vpop.f32.mrf.mxu1 }
  0xb5   : > { %898 = vmatmul.f32.gmra.mxu2 %v482_v0  ;;  %v739_v6 = vadd.f32 %v738_v3, %v625_v2  ;;  %1011 = vmatmul.f32.gmra.mxu3 %v483_v1  ;;  %v496_v1 = vld [vmem:[%s2086_s14 + $0x280] sm:$0xff]  ;;  %v497_v2 = vld [vmem:[%s2086_s14 + $0x288] sm:$0xff] }
  0xb7   : > { %672 = vmatmul.f32.gmra.mxu0 %v480_v4  ;;  %785 = vmatmul.f32.gmra.mxu1 %v481_v5 }
  0xb8   : > { %v851_v7 = vpop.f32.mrf.mxu2  ;;  %v964_v8 = vpop.f32.mrf.mxu3 }
  0xb9   : > { %v852_v9 = vadd.f32 %v851_v7, %v739_v6 }
  0xbb   : > { %v965_v13 = vadd.f32 %v964_v8, %v852_v9 }
  0xbc   : > { %v628_v15 = vpop.f32.mrf.mxu0  ;;  %v741_v16 = vpop.f32.mrf.mxu1 }
  0xbd   : > { %v1276_v19 = vmul.f32 %v2177_v10, %v965_v13  ;;  %901 = vmatmul.f32.gmra.mxu2 %v486_v11  ;;  %v742_v20 = vadd.f32 %v741_v16, %v628_v15  ;;  %1014 = vmatmul.f32.gmra.mxu3 %v487_v12  ;;  %v1196_v28 = vmul.f32 %v965_v13, %v965_v13  ;;  %v502_v15 = vld [vmem:[%s2086_s14 + $0x2b0] sm:$0xff] }
  0xbf   : > { %v1312_v21 = vadd.f32 %v2184_v14, %v1276_v19  ;;  %675 = vmatmul.f32.gmra.mxu0 %v484_v17  ;;  %788 = vmatmul.f32.gmra.mxu1 %v485_v18  ;;  %v503_v17 = vld [vmem:[%s2086_s14 + $0x2b8] sm:$0xff] }
  0xc0   : > { %v854_v22 = vpop.f32.mrf.mxu2  ;;  %v967_v23 = vpop.f32.mrf.mxu3 }
  0xc1   : > { %1664 = vtanh.f32 %v1312_v21  ;;  %v855_v24 = vadd.f32 %v854_v22, %v742_v20  ;;  %v500_v20 = vld [vmem:[%s2086_s14 + $0x2a0] sm:$0xff]  ;;  %v501_v21 = vld [vmem:[%s2086_s14 + $0x2a8] sm:$0xff] }
  0xc3   : > { %v968_v26 = vadd.f32 %v967_v23, %v855_v24 }
  0xc4   : > { %v631_v29 = vpop.f32.mrf.mxu0  ;;  %v744_v30 = vpop.f32.mrf.mxu1 }
  0xc5   : > { %v1159_v33 = vadd.f32 %v968_v26, %v965_v13  ;;  %v1197_v34 = vmul.f32 %v968_v26, %v968_v26  ;;  %v1277_v35 = vmul.f32 %v2177_v10, %v968_v26  ;;  %904 = vmatmul.f32.gmra.mxu2 %v490_v25  ;;  %v745_v36 = vadd.f32 %v744_v30, %v631_v29 }
  0xc6   : > { %1017 = vmatmul.f32.gmra.mxu3 %v491_v27 }
  0xc7   : > { %v1665_v37 = vpop.eup %1664  ;;  %v1228_v38 = vadd.f32 %v1197_v34, %v1196_v28  ;;  %v1313_v39 = vadd.f32 %v2184_v14, %v1277_v35  ;;  %678 = vmatmul.f32.gmra.mxu0 %v488_v31  ;;  %791 = vmatmul.f32.gmra.mxu1 %v489_v32  ;;  %v506_v32 = vld [vmem:[%s2086_s14 + $0x2d0] sm:$0xff]  ;;  %v507_v34 = vld [vmem:[%s2086_s14 + $0x2d8] sm:$0xff] }
  0xc8   : > { %1376 = vst [vmem:[%s2198_s12] sm:$0xff] %v1665_v37  ;;  %v857_v40 = vpop.f32.mrf.mxu2  ;;  %v970_v41 = vpop.f32.mrf.mxu3  ;;  %v504_v37 = vld [vmem:[%s2086_s14 + $0x2c0] sm:$0xff] }
  0xc9   : > { %1666 = vtanh.f32 %v1313_v39  ;;  %v858_v42 = vadd.f32 %v857_v40, %v745_v36 }
  0xcb   : > { %v971_v44 = vadd.f32 %v970_v41, %v858_v42 }
  0xcc   : > { %v634_v46 = vpop.f32.mrf.mxu0  ;;  %v747_v47 = vpop.f32.mrf.mxu1 }
  0xcd   : > { %v1160_v50 = vadd.f32 %v1159_v33, %v971_v44  ;;  %v1198_v51 = vmul.f32 %v971_v44, %v971_v44  ;;  %v1278_v52 = vmul.f32 %v2177_v10, %v971_v44  ;;  %907 = vmatmul.f32.gmra.mxu2 %v494_v43  ;;  %v748_v53 = vadd.f32 %v747_v47, %v634_v46 }
  0xce   : > { %1020 = vmatmul.f32.gmra.mxu3 %v495_v45 }
  0xcf   : > { %v1667_v54 = vpop.eup %1666  ;;  %v1229_v55 = vadd.f32 %v1228_v38, %v1198_v51  ;;  %v1314_v56 = vadd.f32 %v2184_v14, %v1278_v52  ;;  %681 = vmatmul.f32.gmra.mxu0 %v492_v48  ;;  %794 = vmatmul.f32.gmra.mxu1 %v493_v49  ;;  %v505_v38 = vld [vmem:[%s2086_s14 + $0x2c8] sm:$0xff]  ;;  %v510_v49 = vld [vmem:[%s2086_s14 + $0x2f0] sm:$0xff]  ;;  %v511_v51 = vld [vmem:[%s2086_s14 + $0x2f8] sm:$0xff] }
  0xd0   : > { %1377 = vst [vmem:[%s2198_s12 + $0x8] sm:$0xff] %v1667_v54  ;;  %v860_v57 = vpop.f32.mrf.mxu2  ;;  %v973_v58 = vpop.f32.mrf.mxu3  ;;  %v508_v54 = vld [vmem:[%s2086_s14 + $0x2e0] sm:$0xff] }
  0xd1   : > { %1668 = vtanh.f32 %v1314_v56  ;;  %v861_v59 = vadd.f32 %v860_v57, %v748_v53 }
  0xd3   : > { %v974_v61 = vadd.f32 %v973_v58, %v861_v59 }
  0xd4   : > { %v637_v63 = vpop.f32.mrf.mxu0  ;;  %v750_v0 = vpop.f32.mrf.mxu1 }
  0xd5   : > { %v1161_v3 = vadd.f32 %v1160_v50, %v974_v61  ;;  %v1199_v4 = vmul.f32 %v974_v61, %v974_v61  ;;  %v1279_v5 = vmul.f32 %v2177_v10, %v974_v61  ;;  %910 = vmatmul.f32.gmra.mxu2 %v498_v60  ;;  %v751_v6 = vadd.f32 %v750_v0, %v637_v63 }
  0xd6   : > { %1023 = vmatmul.f32.gmra.mxu3 %v499_v62 }
  0xd7   : > { %v1669_v7 = vpop.eup %1668  ;;  %v1230_v8 = vadd.f32 %v1229_v55, %v1199_v4  ;;  %v1315_v9 = vadd.f32 %v2184_v14, %v1279_v5  ;;  %684 = vmatmul.f32.gmra.mxu0 %v496_v1  ;;  %797 = vmatmul.f32.gmra.mxu1 %v497_v2  ;;  %v509_v55 = vld [vmem:[%s2086_s14 + $0x2e8] sm:$0xff]  ;;  %v514_v2 = vld [vmem:[%s2086_s14 + $0x310] sm:$0xff]  ;;  %v515_v4 = vld [vmem:[%s2086_s14 + $0x318] sm:$0xff] }
  0xd8   : > { %1378 = vst [vmem:[%s2198_s12 + $0x10] sm:$0xff] %v1669_v7  ;;  %v863_v11 = vpop.f32.mrf.mxu2  ;;  %v976_v12 = vpop.f32.mrf.mxu3  ;;  %v512_v7 = vld [vmem:[%s2086_s14 + $0x300] sm:$0xff] }
  0xd9   : > { %1670 = vtanh.f32 %v1315_v9  ;;  %v864_v13 = vadd.f32 %v863_v11, %v751_v6 }
  0xdb   : > { %v977_v16 = vadd.f32 %v976_v12, %v864_v13 }
  0xdc   : > { %v640_v18 = vpop.f32.mrf.mxu0  ;;  %v753_v19 = vpop.f32.mrf.mxu1 }
  0xdd   : > { %v1162_v22 = vadd.f32 %v1161_v3, %v977_v16  ;;  %v1200_v23 = vmul.f32 %v977_v16, %v977_v16  ;;  %v1280_v24 = vmul.f32 %v2177_v10, %v977_v16  ;;  %913 = vmatmul.f32.gmra.mxu2 %v502_v15  ;;  %v754_v25 = vadd.f32 %v753_v19, %v640_v18 }
  0xde   : > { %1026 = vmatmul.f32.gmra.mxu3 %v503_v17 }
  0xdf   : > { %v1671_v26 = vpop.eup %1670  ;;  %v1231_v27 = vadd.f32 %v1230_v8, %v1200_v23  ;;  %v1316_v28 = vadd.f32 %v2184_v14, %v1280_v24  ;;  %687 = vmatmul.f32.gmra.mxu0 %v500_v20  ;;  %800 = vmatmul.f32.gmra.mxu1 %v501_v21  ;;  %v513_v8 = vld [vmem:[%s2086_s14 + $0x308] sm:$0xff]  ;;  %v518_v21 = vld [vmem:[%s2086_s14 + $0x330] sm:$0xff]  ;;  %v519_v23 = vld [vmem:[%s2086_s14 + $0x338] sm:$0xff] }
  0xe0   : > { %1379 = vst [vmem:[%s2198_s12 + $0x18] sm:$0xff] %v1671_v26  ;;  %v866_v29 = vpop.f32.mrf.mxu2  ;;  %v979_v30 = vpop.f32.mrf.mxu3  ;;  %v516_v26 = vld [vmem:[%s2086_s14 + $0x320] sm:$0xff] }
  0xe1   : > { %1672 = vtanh.f32 %v1316_v28  ;;  %v867_v31 = vadd.f32 %v866_v29, %v754_v25 }
  0xe3   : > { %v980_v33 = vadd.f32 %v979_v30, %v867_v31 }
  0xe4   : > { %v643_v35 = vpop.f32.mrf.mxu0  ;;  %v756_v36 = vpop.f32.mrf.mxu1 }
  0xe5   : > { %v1163_v39 = vadd.f32 %v1162_v22, %v980_v33  ;;  %v1201_v40 = vmul.f32 %v980_v33, %v980_v33  ;;  %v1281_v41 = vmul.f32 %v2177_v10, %v980_v33  ;;  %916 = vmatmul.f32.gmra.mxu2 %v506_v32  ;;  %v757_v42 = vadd.f32 %v756_v36, %v643_v35 }
  0xe6   : > { %1029 = vmatmul.f32.gmra.mxu3 %v507_v34 }
  0xe7   : > { %v1673_v43 = vpop.eup %1672  ;;  %v1232_v44 = vadd.f32 %v1231_v27, %v1201_v40  ;;  %v1317_v45 = vadd.f32 %v2184_v14, %v1281_v41  ;;  %690 = vmatmul.f32.gmra.mxu0 %v504_v37  ;;  %803 = vmatmul.f32.gmra.mxu1 %v505_v38  ;;  %v517_v27 = vld [vmem:[%s2086_s14 + $0x328] sm:$0xff]  ;;  %v522_v38 = vld [vmem:[%s2086_s14 + $0x350] sm:$0xff]  ;;  %v523_v40 = vld [vmem:[%s2086_s14 + $0x358] sm:$0xff] }
  0xe8   : > { %1380 = vst [vmem:[%s2198_s12 + $0x20] sm:$0xff] %v1673_v43  ;;  %v869_v46 = vpop.f32.mrf.mxu2  ;;  %v982_v47 = vpop.f32.mrf.mxu3  ;;  %v520_v43 = vld [vmem:[%s2086_s14 + $0x340] sm:$0xff] }
  0xe9   : > { %1674 = vtanh.f32 %v1317_v45  ;;  %v870_v48 = vadd.f32 %v869_v46, %v757_v42 }
  0xeb   : > { %v983_v50 = vadd.f32 %v982_v47, %v870_v48 }
  0xec   : > { %v646_v52 = vpop.f32.mrf.mxu0  ;;  %v759_v53 = vpop.f32.mrf.mxu1 }
  0xed   : > { %v1164_v56 = vadd.f32 %v1163_v39, %v983_v50  ;;  %v1202_v57 = vmul.f32 %v983_v50, %v983_v50  ;;  %v1282_v58 = vmul.f32 %v2177_v10, %v983_v50  ;;  %919 = vmatmul.f32.gmra.mxu2 %v510_v49  ;;  %v760_v59 = vadd.f32 %v759_v53, %v646_v52 }
  0xee   : > { %1032 = vmatmul.f32.gmra.mxu3 %v511_v51 }
  0xef   : > { %v1675_v60 = vpop.eup %1674  ;;  %v1233_v61 = vadd.f32 %v1232_v44, %v1202_v57  ;;  %v1318_v62 = vadd.f32 %v2184_v14, %v1282_v58  ;;  %693 = vmatmul.f32.gmra.mxu0 %v508_v54  ;;  %806 = vmatmul.f32.gmra.mxu1 %v509_v55  ;;  %v521_v44 = vld [vmem:[%s2086_s14 + $0x348] sm:$0xff]  ;;  %v526_v55 = vld [vmem:[%s2086_s14 + $0x370] sm:$0xff]  ;;  %v527_v57 = vld [vmem:[%s2086_s14 + $0x378] sm:$0xff] }
  0xf0   : > { %1381 = vst [vmem:[%s2198_s12 + $0x28] sm:$0xff] %v1675_v60  ;;  %v872_v63 = vpop.f32.mrf.mxu2  ;;  %v985_v0 = vpop.f32.mrf.mxu3  ;;  %v524_v60 = vld [vmem:[%s2086_s14 + $0x360] sm:$0xff] }
  0xf1   : > { %1676 = vtanh.f32 %v1318_v62  ;;  %v873_v1 = vadd.f32 %v872_v63, %v760_v59 }
  0xf3   : > { %v986_v3 = vadd.f32 %v985_v0, %v873_v1 }
  0xf4   : > { %v649_v5 = vpop.f32.mrf.mxu0  ;;  %v762_v6 = vpop.f32.mrf.mxu1 }
  0xf5   : > { %v1165_v9 = vadd.f32 %v1164_v56, %v986_v3  ;;  %v1203_v11 = vmul.f32 %v986_v3, %v986_v3  ;;  %v1283_v12 = vmul.f32 %v2177_v10, %v986_v3  ;;  %922 = vmatmul.f32.gmra.mxu2 %v514_v2  ;;  %v763_v13 = vadd.f32 %v762_v6, %v649_v5 }
  0xf6   : > { %1035 = vmatmul.f32.gmra.mxu3 %v515_v4 }
  0xf7   : > { %v1677_v15 = vpop.eup %1676  ;;  %v1234_v16 = vadd.f32 %v1233_v61, %v1203_v11  ;;  %v1319_v17 = vadd.f32 %v2184_v14, %v1283_v12  ;;  %696 = vmatmul.f32.gmra.mxu0 %v512_v7  ;;  %809 = vmatmul.f32.gmra.mxu1 %v513_v8  ;;  %v525_v61 = vld [vmem:[%s2086_s14 + $0x368] sm:$0xff]  ;;  %v530_v8 = vld [vmem:[%s2086_s14 + $0x390] sm:$0xff]  ;;  %v531_v11 = vld [vmem:[%s2086_s14 + $0x398] sm:$0xff] }
  0xf8   : > { %1382 = vst [vmem:[%s2198_s12 + $0x30] sm:$0xff] %v1677_v15  ;;  %v875_v18 = vpop.f32.mrf.mxu2  ;;  %v988_v19 = vpop.f32.mrf.mxu3  ;;  %v528_v15 = vld [vmem:[%s2086_s14 + $0x380] sm:$0xff] }
  0xf9   : > { %1678 = vtanh.f32 %v1319_v17  ;;  %v876_v20 = vadd.f32 %v875_v18, %v763_v13 }
  0xfb   : > { %v989_v22 = vadd.f32 %v988_v19, %v876_v20 }
  0xfc   : > { %v652_v24 = vpop.f32.mrf.mxu0  ;;  %v765_v25 = vpop.f32.mrf.mxu1 }
  0xfd   : > { %v1166_v28 = vadd.f32 %v1165_v9, %v989_v22  ;;  %v1204_v29 = vmul.f32 %v989_v22, %v989_v22  ;;  %v1284_v30 = vmul.f32 %v2177_v10, %v989_v22  ;;  %925 = vmatmul.f32.gmra.mxu2 %v518_v21  ;;  %v766_v31 = vadd.f32 %v765_v25, %v652_v24 }
  0xfe   : > { %1038 = vmatmul.f32.gmra.mxu3 %v519_v23 }
  0xff   : > { %v1679_v32 = vpop.eup %1678  ;;  %v1235_v33 = vadd.f32 %v1234_v16, %v1204_v29  ;;  %v1320_v34 = vadd.f32 %v2184_v14, %v1284_v30  ;;  %699 = vmatmul.f32.gmra.mxu0 %v516_v26  ;;  %812 = vmatmul.f32.gmra.mxu1 %v517_v27  ;;  %v529_v16 = vld [vmem:[%s2086_s14 + $0x388] sm:$0xff]  ;;  %v534_v27 = vld [vmem:[%s2086_s14 + $0x3b0] sm:$0xff]  ;;  %v535_v29 = vld [vmem:[%s2086_s14 + $0x3b8] sm:$0xff] }
 0x100   : > { %1383 = vst [vmem:[%s2198_s12 + $0x38] sm:$0xff] %v1679_v32  ;;  %v878_v35 = vpop.f32.mrf.mxu2  ;;  %v991_v36 = vpop.f32.mrf.mxu3  ;;  %v532_v32 = vld [vmem:[%s2086_s14 + $0x3a0] sm:$0xff] }
 0x101   : > { %1680 = vtanh.f32 %v1320_v34  ;;  %v879_v37 = vadd.f32 %v878_v35, %v766_v31 }
 0x103   : > { %v992_v39 = vadd.f32 %v991_v36, %v879_v37 }
 0x104   : > { %v655_v41 = vpop.f32.mrf.mxu0  ;;  %v768_v42 = vpop.f32.mrf.mxu1 }
 0x105   : > { %v1167_v45 = vadd.f32 %v1166_v28, %v992_v39  ;;  %v1205_v46 = vmul.f32 %v992_v39, %v992_v39  ;;  %v1285_v47 = vmul.f32 %v2177_v10, %v992_v39  ;;  %928 = vmatmul.f32.gmra.mxu2 %v522_v38  ;;  %v769_v48 = vadd.f32 %v768_v42, %v655_v41 }
 0x106   : > { %1041 = vmatmul.f32.gmra.mxu3 %v523_v40 }
 0x107   : > { %v1681_v49 = vpop.eup %1680  ;;  %v1236_v50 = vadd.f32 %v1235_v33, %v1205_v46  ;;  %v1321_v51 = vadd.f32 %v2184_v14, %v1285_v47  ;;  %702 = vmatmul.f32.gmra.mxu0 %v520_v43  ;;  %815 = vmatmul.f32.gmra.mxu1 %v521_v44  ;;  %v533_v33 = vld [vmem:[%s2086_s14 + $0x3a8] sm:$0xff]  ;;  %v538_v44 = vld [vmem:[%s2086_s14 + $0x3d0] sm:$0xff]  ;;  %v539_v46 = vld [vmem:[%s2086_s14 + $0x3d8] sm:$0xff] }
 0x108   : > { %1384 = vst [vmem:[%s2198_s12 + $0x40] sm:$0xff] %v1681_v49  ;;  %v881_v52 = vpop.f32.mrf.mxu2  ;;  %v994_v53 = vpop.f32.mrf.mxu3  ;;  %v536_v49 = vld [vmem:[%s2086_s14 + $0x3c0] sm:$0xff] }
 0x109   : > { %1682 = vtanh.f32 %v1321_v51  ;;  %v882_v54 = vadd.f32 %v881_v52, %v769_v48 }
 0x10b   : > { %v995_v56 = vadd.f32 %v994_v53, %v882_v54 }
 0x10c   : > { %v658_v58 = vpop.f32.mrf.mxu0  ;;  %v771_v59 = vpop.f32.mrf.mxu1 }
 0x10d   : > { %v1168_v62 = vadd.f32 %v1167_v45, %v995_v56  ;;  %v1206_v63 = vmul.f32 %v995_v56, %v995_v56  ;;  %v1286_v0 = vmul.f32 %v2177_v10, %v995_v56  ;;  %931 = vmatmul.f32.gmra.mxu2 %v526_v55  ;;  %v772_v1 = vadd.f32 %v771_v59, %v658_v58 }
 0x10e   : > { %1044 = vmatmul.f32.gmra.mxu3 %v527_v57 }
 0x10f   : > { %v1683_v2 = vpop.eup %1682  ;;  %v1237_v3 = vadd.f32 %v1236_v50, %v1206_v63  ;;  %v1322_v4 = vadd.f32 %v2184_v14, %v1286_v0  ;;  %705 = vmatmul.f32.gmra.mxu0 %v524_v60  ;;  %818 = vmatmul.f32.gmra.mxu1 %v525_v61  ;;  %v537_v50 = vld [vmem:[%s2086_s14 + $0x3c8] sm:$0xff]  ;;  %v542_v61 = vld [vmem:[%s2086_s14 + $0x3f0] sm:$0xff]  ;;  %v543_v63 = vld [vmem:[%s2086_s14 + $0x3f8] sm:$0xff] }
 0x110   : > { %1385 = vst [vmem:[%s2198_s12 + $0x48] sm:$0xff] %v1683_v2  ;;  %v884_v5 = vpop.f32.mrf.mxu2  ;;  %v997_v6 = vpop.f32.mrf.mxu3  ;;  %v540_v2 = vld [vmem:[%s2086_s14 + $0x3e0] sm:$0xff] }
 0x111   : > { %1684 = vtanh.f32 %v1322_v4  ;;  %v885_v7 = vadd.f32 %v884_v5, %v772_v1 }
 0x113   : > { %v998_v9 = vadd.f32 %v997_v6, %v885_v7 }
 0x114   : > { %v661_v12 = vpop.f32.mrf.mxu0  ;;  %v774_v13 = vpop.f32.mrf.mxu1 }
 0x115   : > { %v1169_v17 = vadd.f32 %v1168_v62, %v998_v9  ;;  %v1207_v18 = vmul.f32 %v998_v9, %v998_v9  ;;  %v1287_v19 = vmul.f32 %v2177_v10, %v998_v9  ;;  %934 = vmatmul.f32.gmra.mxu2 %v530_v8  ;;  %v775_v20 = vadd.f32 %v774_v13, %v661_v12 }
 0x116   : > { %1047 = vmatmul.f32.gmra.mxu3 %v531_v11 }
 0x117   : > { %v1685_v21 = vpop.eup %1684  ;;  %v1238_v22 = vadd.f32 %v1237_v3, %v1207_v18  ;;  %v1323_v23 = vadd.f32 %v2184_v14, %v1287_v19  ;;  %708 = vmatmul.f32.gmra.mxu0 %v528_v15  ;;  %821 = vmatmul.f32.gmra.mxu1 %v529_v16  ;;  %v541_v3 = vld [vmem:[%s2086_s14 + $0x3e8] sm:$0xff] }
 0x118   : > { %1386 = vst [vmem:[%s2198_s12 + $0x50] sm:$0xff] %v1685_v21  ;;  %v887_v24 = vpop.f32.mrf.mxu2  ;;  %v1000_v25 = vpop.f32.mrf.mxu3 }
 0x119   : > { %1686 = vtanh.f32 %v1323_v23  ;;  %v888_v26 = vadd.f32 %v887_v24, %v775_v20 }
 0x11b   : > { %v1001_v28 = vadd.f32 %v1000_v25, %v888_v26 }
 0x11c   : > { %v664_v30 = vpop.f32.mrf.mxu0  ;;  %v777_v31 = vpop.f32.mrf.mxu1 }
 0x11d   : > { %v1170_v34 = vadd.f32 %v1169_v17, %v1001_v28  ;;  %v1208_v35 = vmul.f32 %v1001_v28, %v1001_v28  ;;  %v1288_v36 = vmul.f32 %v2177_v10, %v1001_v28  ;;  %937 = vmatmul.f32.gmra.mxu2 %v534_v27  ;;  %v778_v37 = vadd.f32 %v777_v31, %v664_v30 }
 0x11e   : > { %1050 = vmatmul.f32.gmra.mxu3 %v535_v29 }
 0x11f   : > { %v1687_v38 = vpop.eup %1686  ;;  %v1239_v39 = vadd.f32 %v1238_v22, %v1208_v35  ;;  %v1324_v40 = vadd.f32 %v2184_v14, %v1288_v36  ;;  %711 = vmatmul.f32.gmra.mxu0 %v532_v32  ;;  %824 = vmatmul.f32.gmra.mxu1 %v533_v33 }
 0x120   : > { %1387 = vst [vmem:[%s2198_s12 + $0x58] sm:$0xff] %v1687_v38  ;;  %v890_v41 = vpop.f32.mrf.mxu2  ;;  %v1003_v42 = vpop.f32.mrf.mxu3 }
 0x121   : > { %1688 = vtanh.f32 %v1324_v40  ;;  %v891_v43 = vadd.f32 %v890_v41, %v778_v37 }
 0x123   : > { %v1004_v45 = vadd.f32 %v1003_v42, %v891_v43 }
 0x124   : > { %v667_v47 = vpop.f32.mrf.mxu0  ;;  %v780_v48 = vpop.f32.mrf.mxu1 }
 0x125   : > { %v1171_v51 = vadd.f32 %v1170_v34, %v1004_v45  ;;  %v1209_v52 = vmul.f32 %v1004_v45, %v1004_v45  ;;  %v1289_v53 = vmul.f32 %v2177_v10, %v1004_v45  ;;  %940 = vmatmul.f32.gmra.mxu2 %v538_v44  ;;  %v781_v54 = vadd.f32 %v780_v48, %v667_v47 }
 0x126   : > { %1053 = vmatmul.f32.gmra.mxu3 %v539_v46 }
 0x127   : > { %v1689_v55 = vpop.eup %1688  ;;  %v1240_v56 = vadd.f32 %v1239_v39, %v1209_v52  ;;  %v1325_v57 = vadd.f32 %v2184_v14, %v1289_v53  ;;  %714 = vmatmul.f32.gmra.mxu0 %v536_v49  ;;  %827 = vmatmul.f32.gmra.mxu1 %v537_v50 }
 0x128   : > { %1388 = vst [vmem:[%s2198_s12 + $0x60] sm:$0xff] %v1689_v55  ;;  %v893_v58 = vpop.f32.mrf.mxu2  ;;  %v1006_v59 = vpop.f32.mrf.mxu3 }
 0x129   : > { %1690 = vtanh.f32 %v1325_v57  ;;  %v894_v60 = vadd.f32 %v893_v58, %v781_v54 }
 0x12b   : > { %v1007_v62 = vadd.f32 %v1006_v59, %v894_v60 }
 0x12c   : > { %v670_v0 = vpop.f32.mrf.mxu0  ;;  %v783_v1 = vpop.f32.mrf.mxu1 }
 0x12d   : > { %v1172_v4 = vadd.f32 %v1171_v51, %v1007_v62  ;;  %v1210_v5 = vmul.f32 %v1007_v62, %v1007_v62  ;;  %v1290_v6 = vmul.f32 %v2177_v10, %v1007_v62  ;;  %943 = vmatmul.f32.gmra.mxu2 %v542_v61  ;;  %v784_v7 = vadd.f32 %v783_v1, %v670_v0 }
 0x12e   : > { %1056 = vmatmul.f32.gmra.mxu3 %v543_v63 }
 0x12f   : > { %v1691_v8 = vpop.eup %1690  ;;  %v1241_v9 = vadd.f32 %v1240_v56, %v1210_v5  ;;  %v1326_v11 = vadd.f32 %v2184_v14, %v1290_v6  ;;  %717 = vmatmul.f32.gmra.mxu0 %v540_v2  ;;  %830 = vmatmul.f32.gmra.mxu1 %v541_v3 }
 0x130   : > { %1389 = vst [vmem:[%s2198_s12 + $0x68] sm:$0xff] %v1691_v8  ;;  %v896_v12 = vpop.f32.mrf.mxu2  ;;  %v1009_v13 = vpop.f32.mrf.mxu3 }
 0x131   : > { %1692 = vtanh.f32 %v1326_v11  ;;  %v897_v15 = vadd.f32 %v896_v12, %v784_v7 }
 0x133   : > { %v1010_v16 = vadd.f32 %v1009_v13, %v897_v15 }
 0x134   : > { %v673_v17 = vpop.f32.mrf.mxu0  ;;  %v786_v18 = vpop.f32.mrf.mxu1 }
 0x135   : > { %v1173_v19 = vadd.f32 %v1172_v4, %v1010_v16  ;;  %v1211_v20 = vmul.f32 %v1010_v16, %v1010_v16  ;;  %v1291_v21 = vmul.f32 %v2177_v10, %v1010_v16  ;;  %v787_v22 = vadd.f32 %v786_v18, %v673_v17 }
 0x137   : > { %v1693_v23 = vpop.eup %1692  ;;  %v1242_v24 = vadd.f32 %v1241_v9, %v1211_v20  ;;  %v1327_v25 = vadd.f32 %v2184_v14, %v1291_v21 }
 0x138   : > { %1390 = vst [vmem:[%s2198_s12 + $0x70] sm:$0xff] %v1693_v23  ;;  %v899_v26 = vpop.f32.mrf.mxu2  ;;  %v1012_v27 = vpop.f32.mrf.mxu3 }
 0x139   : > { %1694 = vtanh.f32 %v1327_v25  ;;  %v900_v28 = vadd.f32 %v899_v26, %v787_v22 }
 0x13b   : > { %v1013_v29 = vadd.f32 %v1012_v27, %v900_v28 }
 0x13c   : > { %v676_v30 = vpop.f32.mrf.mxu0  ;;  %v789_v31 = vpop.f32.mrf.mxu1 }
 0x13d   : > { %v1174_v32 = vadd.f32 %v1173_v19, %v1013_v29  ;;  %v1212_v33 = vmul.f32 %v1013_v29, %v1013_v29  ;;  %v1292_v34 = vmul.f32 %v2177_v10, %v1013_v29  ;;  %v790_v35 = vadd.f32 %v789_v31, %v676_v30 }
 0x13f   : > { %v1695_v36 = vpop.eup %1694  ;;  %v1243_v37 = vadd.f32 %v1242_v24, %v1212_v33  ;;  %v1328_v38 = vadd.f32 %v2184_v14, %v1292_v34 }
 0x140   : > { %1391 = vst [vmem:[%s2198_s12 + $0x78] sm:$0xff] %v1695_v36  ;;  %v902_v39 = vpop.f32.mrf.mxu2  ;;  %v1015_v40 = vpop.f32.mrf.mxu3 }
 0x141   : > { %1696 = vtanh.f32 %v1328_v38  ;;  %v903_v41 = vadd.f32 %v902_v39, %v790_v35 }
 0x143   : > { %v1016_v42 = vadd.f32 %v1015_v40, %v903_v41 }
 0x144   : > { %v679_v43 = vpop.f32.mrf.mxu0  ;;  %v792_v44 = vpop.f32.mrf.mxu1 }
 0x145   : > { %v1175_v45 = vadd.f32 %v1174_v32, %v1016_v42  ;;  %v1213_v46 = vmul.f32 %v1016_v42, %v1016_v42  ;;  %v1293_v47 = vmul.f32 %v2177_v10, %v1016_v42  ;;  %v793_v48 = vadd.f32 %v792_v44, %v679_v43 }
 0x147   : > { %v1697_v49 = vpop.eup %1696  ;;  %v1244_v50 = vadd.f32 %v1243_v37, %v1213_v46  ;;  %v1329_v51 = vadd.f32 %v2184_v14, %v1293_v47 }
 0x148   : > { %1392 = vst [vmem:[%s2198_s12 + $0x80] sm:$0xff] %v1697_v49  ;;  %v905_v52 = vpop.f32.mrf.mxu2 }
 0x149   : > { %1698 = vtanh.f32 %v1329_v51  ;;  %v906_v53 = vadd.f32 %v905_v52, %v793_v48  ;;  %v1018_v54 = vpop.f32.mrf.mxu3 }
 0x14b   : > { %v1019_v55 = vadd.f32 %v1018_v54, %v906_v53 }
 0x14c   : > { %v682_v56 = vpop.f32.mrf.mxu0  ;;  %v795_v57 = vpop.f32.mrf.mxu1 }
 0x14d   : > { %v1176_v58 = vadd.f32 %v1175_v45, %v1019_v55  ;;  %v1214_v59 = vmul.f32 %v1019_v55, %v1019_v55  ;;  %v1294_v60 = vmul.f32 %v2177_v10, %v1019_v55  ;;  %v796_v61 = vadd.f32 %v795_v57, %v682_v56 }
 0x14f   : > { %v1699_v62 = vpop.eup %1698  ;;  %v1245_v63 = vadd.f32 %v1244_v50, %v1214_v59  ;;  %v1330_v0 = vadd.f32 %v2184_v14, %v1294_v60 }
 0x150   : > { %1393 = vst [vmem:[%s2198_s12 + $0x88] sm:$0xff] %v1699_v62  ;;  %v908_v1 = vpop.f32.mrf.mxu2 }
 0x151   : > { %1700 = vtanh.f32 %v1330_v0  ;;  %v909_v2 = vadd.f32 %v908_v1, %v796_v61  ;;  %v1021_v3 = vpop.f32.mrf.mxu3 }
 0x153   : > { %v1022_v4 = vadd.f32 %v1021_v3, %v909_v2 }
 0x154   : > { %v685_v5 = vpop.f32.mrf.mxu0  ;;  %v798_v6 = vpop.f32.mrf.mxu1 }
 0x155   : > { %v1177_v7 = vadd.f32 %v1176_v58, %v1022_v4  ;;  %v1215_v8 = vmul.f32 %v1022_v4, %v1022_v4  ;;  %v1295_v9 = vmul.f32 %v2177_v10, %v1022_v4  ;;  %v799_v11 = vadd.f32 %v798_v6, %v685_v5 }
 0x157   : > { %v1701_v12 = vpop.eup %1700  ;;  %v1246_v13 = vadd.f32 %v1245_v63, %v1215_v8  ;;  %v1331_v15 = vadd.f32 %v2184_v14, %v1295_v9 }
 0x158   : > { %1394 = vst [vmem:[%s2198_s12 + $0x90] sm:$0xff] %v1701_v12  ;;  %v911_v16 = vpop.f32.mrf.mxu2 }
 0x159   : > { %1702 = vtanh.f32 %v1331_v15  ;;  %v912_v17 = vadd.f32 %v911_v16, %v799_v11  ;;  %v1024_v18 = vpop.f32.mrf.mxu3 }
 0x15b   : > { %v1025_v19 = vadd.f32 %v1024_v18, %v912_v17 }
 0x15c   : > { %v688_v20 = vpop.f32.mrf.mxu0  ;;  %v801_v21 = vpop.f32.mrf.mxu1 }
 0x15d   : > { %v1178_v22 = vadd.f32 %v1177_v7, %v1025_v19  ;;  %v1216_v23 = vmul.f32 %v1025_v19, %v1025_v19  ;;  %v1296_v24 = vmul.f32 %v2177_v10, %v1025_v19  ;;  %v802_v25 = vadd.f32 %v801_v21, %v688_v20 }
 0x15f   : > { %v1703_v26 = vpop.eup %1702  ;;  %v2310_v27 = vadd.f32 %v1246_v13, %v1216_v23  ;;  %v1332_v28 = vadd.f32 %v2184_v14, %v1296_v24 }
 0x160   : > { %1395 = vst [vmem:[%s2198_s12 + $0x98] sm:$0xff] %v1703_v26  ;;  %v914_v29 = vpop.f32.mrf.mxu2 }
 0x161   : > { %1704 = vtanh.f32 %v1332_v28  ;;  %v915_v30 = vadd.f32 %v914_v29, %v802_v25  ;;  %v1027_v31 = vpop.f32.mrf.mxu3 }
 0x163   : > { %v2314_v32 = vadd.f32 %v1027_v31, %v915_v30 }
 0x164   : > { %v691_v33 = vpop.f32.mrf.mxu0  ;;  %v804_v34 = vpop.f32.mrf.mxu1 }
 0x165   : > { %v2317_v35 = vadd.f32 %v1178_v22, %v2314_v32  ;;  %v1297_v36 = vmul.f32 %v2177_v10, %v2314_v32  ;;  %v805_v37 = vadd.f32 %v804_v34, %v691_v33 }
 0x167   : > { %v1705_v38 = vpop.eup %1704  ;;  %v1333_v39 = vadd.f32 %v2184_v14, %v1297_v36 }
 0x168   : > { %1396 = vst [vmem:[%s2198_s12 + $0xa0] sm:$0xff] %v1705_v38  ;;  %v917_v40 = vpop.f32.mrf.mxu2 }
 0x169   : > { %1706 = vtanh.f32 %v1333_v39  ;;  %v918_v41 = vadd.f32 %v917_v40, %v805_v37  ;;  %v1030_v42 = vpop.f32.mrf.mxu3 }
 0x16b   : > { %v2323_v43 = vadd.f32 %v1030_v42, %v918_v41 }
 0x16c   : > { %v694_v44 = vpop.f32.mrf.mxu0  ;;  %v807_v45 = vpop.f32.mrf.mxu1 }
 0x16d   : > { %v1298_v46 = vmul.f32 %v2177_v10, %v2323_v43  ;;  %v808_v47 = vadd.f32 %v807_v45, %v694_v44 }
 0x16f   : > { %v1707_v48 = vpop.eup %1706  ;;  %v1334_v49 = vadd.f32 %v2184_v14, %v1298_v46 }
 0x170   : > { %1397 = vst [vmem:[%s2198_s12 + $0xa8] sm:$0xff] %v1707_v48  ;;  %v920_v50 = vpop.f32.mrf.mxu2  ;;  %v2359_v48 = vld [vmem:[%s2437_s2] ss:$0 sm:$0xff] }
 0x171   : > { %1708 = vtanh.f32 %v1334_v49  ;;  %v921_v51 = vadd.f32 %v920_v50, %v808_v47  ;;  %v1033_v52 = vpop.f32.mrf.mxu3 }
 0x173   : > { %v2329_v53 = vadd.f32 %v1033_v52, %v921_v51  ;;  %v2367_v51 = vld [vmem:[%s2438_s3] ss:$0 sm:$0xff] }
 0x174   : > { %v697_v54 = vpop.f32.mrf.mxu0  ;;  %v810_v55 = vpop.f32.mrf.mxu1 }
 0x175   : > { %v1299_v56 = vmul.f32 %v2177_v10, %v2329_v53  ;;  %v811_v57 = vadd.f32 %v810_v55, %v697_v54  ;;  %v1218_v54 = vmul.f32 %v2323_v43, %v2323_v43 }
 0x177   : > { %v1709_v58 = vpop.eup %1708  ;;  %v1335_v59 = vadd.f32 %v2184_v14, %v1299_v56 }
 0x178   : > { %1398 = vst [vmem:[%s2198_s12 + $0xb0] sm:$0xff] %v1709_v58  ;;  %v923_v60 = vpop.f32.mrf.mxu2 }
 0x179   : > { %1710 = vtanh.f32 %v1335_v59  ;;  %v924_v61 = vadd.f32 %v923_v60, %v811_v57  ;;  %v1036_v62 = vpop.f32.mrf.mxu3  ;;  %v1180_v59 = vadd.f32 %v2317_v35, %v2323_v43 }
 0x17b   : > { %v2335_v63 = vadd.f32 %v1036_v62, %v924_v61 }
 0x17c   : > { %v700_v0 = vpop.f32.mrf.mxu0  ;;  %v813_v1 = vpop.f32.mrf.mxu1 }
 0x17d   : > { %v1300_v2 = vmul.f32 %v2177_v10, %v2335_v63  ;;  %v814_v3 = vadd.f32 %v813_v1, %v700_v0  ;;  %v1220_v62 = vmul.f32 %v2335_v63, %v2335_v63 }
 0x17f   : > { %v1711_v4 = vpop.eup %1710  ;;  %v1336_v5 = vadd.f32 %v2184_v14, %v1300_v2  ;;  %v1181_v2 = vadd.f32 %v1180_v59, %v2329_v53 }
 0x180   : > { %1399 = vst [vmem:[%s2198_s12 + $0xb8] sm:$0xff] %v1711_v4  ;;  %v926_v6 = vpop.f32.mrf.mxu2 }
 0x181   : > { %1712 = vtanh.f32 %v1336_v5  ;;  %v927_v7 = vadd.f32 %v926_v6, %v814_v3  ;;  %v1039_v8 = vpop.f32.mrf.mxu3  ;;  %v1182_v35 = vadd.f32 %v1181_v2, %v2335_v63 }
 0x183   : > { %v2341_v9 = vadd.f32 %v1039_v8, %v927_v7 }
 0x184   : > { %v703_v11 = vpop.f32.mrf.mxu0  ;;  %v816_v12 = vpop.f32.mrf.mxu1 }
 0x185   : > { %v1301_v13 = vmul.f32 %v2177_v10, %v2341_v9  ;;  %v817_v15 = vadd.f32 %v816_v12, %v703_v11  ;;  %v1221_v5 = vmul.f32 %v2341_v9, %v2341_v9 }
 0x187   : > { %v1713_v16 = vpop.eup %1712  ;;  %v1337_v17 = vadd.f32 %v2184_v14, %v1301_v13 }
 0x188   : > { %1400 = vst [vmem:[%s2198_s12 + $0xc0] sm:$0xff] %v1713_v16  ;;  %v929_v18 = vpop.f32.mrf.mxu2 }
 0x189   : > { %1714 = vtanh.f32 %v1337_v17  ;;  %v930_v19 = vadd.f32 %v929_v18, %v817_v15  ;;  %v1042_v20 = vpop.f32.mrf.mxu3 }
 0x18b   : > { %v2347_v21 = vadd.f32 %v1042_v20, %v930_v19 }
 0x18c   : > { %v706_v22 = vpop.f32.mrf.mxu0  ;;  %v819_v23 = vpop.f32.mrf.mxu1 }
 0x18d   : > { %v1302_v24 = vmul.f32 %v2177_v10, %v2347_v21  ;;  %v820_v25 = vadd.f32 %v819_v23, %v706_v22  ;;  %v1222_v8 = vmul.f32 %v2347_v21, %v2347_v21 }
 0x18f   : > { %v1715_v26 = vpop.eup %1714  ;;  %v1338_v28 = vadd.f32 %v2184_v14, %v1302_v24 }
 0x190   : > { %1401 = vst [vmem:[%s2198_s12 + $0xc8] sm:$0xff] %v1715_v26  ;;  %v932_v29 = vpop.f32.mrf.mxu2 }
 0x191   : > { %1716 = vtanh.f32 %v1338_v28  ;;  %v933_v30 = vadd.f32 %v932_v29, %v820_v25  ;;  %v1045_v31 = vpop.f32.mrf.mxu3 }
 0x193   : > { %v1046_v33 = vadd.f32 %v1045_v31, %v933_v30 }
 0x194   : > { %v709_v34 = vpop.f32.mrf.mxu0  ;;  %v822_v36 = vpop.f32.mrf.mxu1 }
 0x195   : > { %v1303_v37 = vmul.f32 %v2177_v10, %v1046_v33  ;;  %v823_v38 = vadd.f32 %v822_v36, %v709_v34  ;;  %v1223_v16 = vmul.f32 %v1046_v33, %v1046_v33 }
 0x197   : > { %v1717_v39 = vpop.eup %1716  ;;  %v1339_v40 = vadd.f32 %v2184_v14, %v1303_v37  ;;  %v1217_v14 = vmul.f32 %v2314_v32, %v2314_v32  ;;  %v1219_v32 = vmul.f32 %v2329_v53, %v2329_v53  ;;  %v1183_v53 = vadd.f32 %v1182_v35, %v2341_v9 }
 0x198   : > { %1402 = vst [vmem:[%s2198_s12 + $0xd0] sm:$0xff] %v1717_v39  ;;  %v935_v41 = vpop.f32.mrf.mxu2 }
 0x199   : > { %1718 = vtanh.f32 %v1339_v40  ;;  %v936_v42 = vadd.f32 %v935_v41, %v823_v38  ;;  %v1048_v44 = vpop.f32.mrf.mxu3  ;;  %v1248_v58 = vadd.f32 %v2310_v27, %v1217_v14  ;;  %v1184_v17 = vadd.f32 %v1183_v53, %v2347_v21 }
 0x19b   : > { %v1049_v45 = vadd.f32 %v1048_v44, %v936_v42  ;;  %v1249_v61 = vadd.f32 %v1248_v58, %v1218_v54  ;;  %v1185_v23 = vadd.f32 %v1184_v17, %v1046_v33 }
 0x19c   : > { %v712_v46 = vpop.f32.mrf.mxu0  ;;  %v825_v47 = vpop.f32.mrf.mxu1 }
 0x19d   : > { %v1304_v10 = vmul.f32 %v2359_v48, %v1049_v45  ;;  %v826_v49 = vadd.f32 %v825_v47, %v712_v46  ;;  %v1250_v27 = vadd.f32 %v1249_v61, %v1219_v32  ;;  %v1224_v19 = vmul.f32 %v1049_v45, %v1049_v45 }
 0x19e   : > { %v1186_v9 = vadd.f32 %v1185_v23, %v1049_v45 }
 0x19f   : > { %v1719_v50 = vpop.eup %1718  ;;  %v1340_v52 = vadd.f32 %v2367_v51, %v1304_v10  ;;  %v1251_v7 = vadd.f32 %v1250_v27, %v1220_v62 }
 0x1a0   : > { %1403 = vst [vmem:[%s2198_s12 + $0xd8] sm:$0xff] %v1719_v50  ;;  %v938_v55 = vpop.f32.mrf.mxu2 }
 0x1a1   : > { %1720 = vtanh.f32 %v1340_v52  ;;  %v939_v56 = vadd.f32 %v938_v55, %v826_v49  ;;  %v1051_v57 = vpop.f32.mrf.mxu3  ;;  %v1252_v15 = vadd.f32 %v1251_v7, %v1221_v5  ;;  %v1265_v52 = vlaneseq }
 0x1a3   : > { %v1052_v60 = vadd.f32 %v1051_v57, %v939_v56  ;;  %v1253_v63 = vadd.f32 %v1252_v15, %v1222_v8  ;;  %v1266_v58 = vshrl.u32 %v1265_v52, 7 }
 0x1a4   : > { %v715_v0 = vpop.f32.mrf.mxu0  ;;  %v828_v1 = vpop.f32.mrf.mxu1 }
 0x1a5   : > { %v1305_v3 = vmul.f32 %v2359_v48, %v1052_v60  ;;  %v829_v4 = vadd.f32 %v828_v1, %v715_v0  ;;  %v1254_v26 = vadd.f32 %v1253_v63, %v1223_v16  ;;  %v1225_v29 = vmul.f32 %v1052_v60, %v1052_v60 }
 0x1a6   : > { %v1187_v36 = vadd.f32 %v1186_v9, %v1052_v60  ;;  %vm1268_vm0 = vcmp.eq.s32.totalorder %v1266_v58, 1  ;;  %vm1267_vm1 = vcmp.eq.s32.totalorder %v1266_v58, 0 }
 0x1a7   : > { %v1721_v6 = vpop.eup %1720  ;;  %v1341_v43 = vadd.f32 %v2367_v51, %v1305_v3  ;;  %v1255_v31 = vadd.f32 %v1254_v26, %v1224_v19 }
 0x1a8   : > { %1404 = vst [vmem:[%s2198_s12 + $0xe0] sm:$0xff] %v1721_v6  ;;  %v941_v11 = vpop.f32.mrf.mxu2 }
 0x1a9   : > { %1722 = vtanh.f32 %v1341_v43  ;;  %v942_v12 = vadd.f32 %v941_v11, %v829_v4  ;;  %v1054_v13 = vpop.f32.mrf.mxu3  ;;  %v1256_v33 = vadd.f32 %v1255_v31, %v1225_v29 }
 0x1ab   : > { %v1055_v18 = vadd.f32 %v1054_v13, %v942_v12 }
 0x1ac   : > { %v718_v20 = vpop.f32.mrf.mxu0  ;;  %v831_v22 = vpop.f32.mrf.mxu1 }
 0x1ad   : > { %v1306_v24 = vmul.f32 %v2359_v48, %v1055_v18  ;;  %v832_v25 = vadd.f32 %v831_v22, %v718_v20  ;;  %v1226_v21 = vmul.f32 %v1055_v18, %v1055_v18  ;;  %v1188_v39 = vadd.f32 %v1187_v36, %v1055_v18 }
 0x1af   : > { %v1723_v28 = vpop.eup %1722  ;;  %v1342_v30 = vadd.f32 %v2367_v51, %v1306_v24  ;;  %v1257_v41 = vadd.f32 %v1256_v33, %v1226_v21 }
 0x1b0   : > { %1405 = vst [vmem:[%s2198_s12 + $0xe8] sm:$0xff] %v1723_v28  ;;  %v944_v34 = vpop.f32.mrf.mxu2 }
 0x1b1   : > { %1724 = vtanh.f32 %v1342_v30  ;;  %v945_v37 = vadd.f32 %v944_v34, %v832_v25  ;;  %v1057_v38 = vpop.f32.mrf.mxu3 }
 0x1b3   : > { %v1058_v40 = vadd.f32 %v1057_v38, %v945_v37 }
 0x1b5   : > { %v1189_v42 = vadd.f32 %v1188_v39, %v1058_v40  ;;  %v1227_v44 = vmul.f32 %v1058_v40, %v1058_v40  ;;  %v1307_v45 = vmul.f32 %v2359_v48, %v1058_v40 }
 0x1b7   : > { %v1725_v46 = vpop.eup %1724  ;;  %v1190_v47 = vrot.slane %v1189_v42, 4  ;;  %v1258_v10 = vadd.f32 %v1257_v41, %v1227_v44  ;;  %v1343_v49 = vadd.f32 %v2367_v51, %v1307_v45 }
 0x1b8   : > { %1406 = vst [vmem:[%s2198_s12 + $0xf0] sm:$0xff] %v1725_v46 }
 0x1b9   : > { %v1191_v14 = vadd.f32 %v1190_v47, %v1189_v42  ;;  %v1259_v50 = vrot.slane %v1258_v10, 4  ;;  %1726 = vtanh.f32 %v1343_v49 }
 0x1bb   : > { %v1192_v54 = vrot.slane %v1191_v14, 2  ;;  %v1260_v55 = vadd.f32 %v1259_v50, %v1258_v10 }
 0x1bd   : > { %v1193_v56 = vadd.f32 %v1192_v54, %v1191_v14  ;;  %v1261_v57 = vrot.slane %v1260_v55, 2 }
 0x1bf   : > { %v1727_v48 = vpop.eup %1726  ;;  %v1262_v32 = vadd.f32 %v1261_v57, %v1260_v55  ;;  %v1194_v51 = vrot.slane %v1193_v56, 1 }
 0x1c0   : > { %1407 = vst [vmem:[%s2198_s12 + $0xf8] sm:$0xff] %v1727_v48 }
 0x1c1   : > { %v1263_v59 = vrot.slane %v1262_v32, 1  ;;  %v1195_v61 = vadd.f32 %v1194_v51, %v1193_v56 }
 0x1c3   : > { %v1264_v60 = vadd.f32 %v1263_v59, %v1262_v32 }
 0x1c5   : > { %v1269_v62 = vsel %vm1268_vm0, %v1264_v60, 0.0 }
 0x1c6   : > { %v1270_v0 = vsel %vm1267_vm1, %v1195_v61, %v1269_v62 }
 0x1c7   : > { %1271 = vst [vmem:[%s311_s16] sm:$0xff] %v1270_v0 }
 0x1c8   : > { %1757 = shalt.err (!%p1754_p5)
}
 0x1c9   : > { %1607 = dma.vmem_to_hbm [thread:$0]  (%p1880_p4), %s1435_s17, 128, %s1437_s24, %s1417_s21  }
 0x1ca PF: > { %p1613_p6 = scmp.ge.s32.totalorder %s1808_s23, 2  ;;  %s1459_s9 = sand.u32 1, %s1788_s18  }
 0x1cb   : > { %s1460_s11 = scalar_lea.sflag [#allocation4], %s1459_s9 }
 0x1cc   : > { %p1610_p7 = pnand %p1613_p6, %p1887_p8 }
 0x1ce   : > { %p1611_p9 = pneg %p1610_p7 }
 0x1d0   : > { %1783 = dma.done.wait (%p1611_p9), %s1460_s11, 128  }
 0x1d1   : > { %1785 = vsyncadd (%p1611_p9), %s1460_s11, 4294967168  ;;  %s19_s23 = sadd.s32 1, %s1808_s23   ;;  %s2444_s18 = smov %s1792_s19 }
 0x1d2   : > { %p16_p10 = scmp.ge.s32.totalorder %s19_s23, 10   ;;  %s2445_s19 = smov %s1796_s20 }
 0x1d3   : > { %s2446_s20 = smov %s1893_s6  ;;  %s2447_s21 = smov %s1804_s22 }
 0x1d4   : > { %s2448_s22 = smov %s2450_s26  ;;  %18 = sbr.rel (!%p16_p10) target bundleno = 4 (0x4), region = 100 }
 0x1d9   :  { %1466 = vsyncpa [#allocation4], 1 }
 0x1da   :  { %1468 = vsyncpa [#allocation4 + $0x1], 1 }

</bundles_post_ra>
